<compile_context>
chip_gen: v7x
topology: tpu7x:2x2x1
jax: 0.10.0
libtpu: 0.0.40
codegen_flags: <defaults>
</compile_context>

<pallas_src>
import functools

import jax
import jax.numpy as jnp
from jax import lax
from jax.experimental import pallas as pl
from jax.experimental.pallas import tpu as pltpu


_INV_SQRT2 = 0.7071067811865476


# ----------------------------------------------------------------------------
# Fused decoder-layer kernel (one grid step == one batch element)
# ----------------------------------------------------------------------------
def _decoder_layer_kernel(*refs, heads, dim_head, has_q_pos, has_v_pos):
    it = iter(refs)
    q_ref = next(it)                                   # [1, Nq, C]
    v_ref = next(it)                                   # [1, Nk, C]
    qpos_ref = next(it) if has_q_pos else None         # [1, Nq, C]
    vpos_ref = next(it) if has_v_pos else None         # [1, Nk, C]
    ln1_g, ln1_b = next(it), next(it)                  # [1, C]
    sa_wqkv, sa_wo, sa_bo = next(it), next(it), next(it)
    ln2_g, ln2_b = next(it), next(it)
    ca_wq, ca_wkv, ca_wo, ca_bo = next(it), next(it), next(it), next(it)
    ln3_g, ln3_b = next(it), next(it)
    w1, b1, w2, b2 = next(it), next(it), next(it), next(it)
    qout_ref = next(it)                                # [1, Nq, C]
    sattn_ref = next(it)                               # [1, H, Nq, Nq]
    cattn_ref = next(it)                               # [1, H, Nq, Nk]

    inner = heads * dim_head
    scale = dim_head ** -0.5

    q_tok = q_ref[0]                                   # [Nq, C]
    v_tok = v_ref[0]                                   # [Nk, C]
    q_pos = qpos_ref[0] if has_q_pos else None
    v_pos = vpos_ref[0] if has_v_pos else None

    def layer_norm(x, g_ref2, b_ref2):
        mean = jnp.mean(x, axis=-1, keepdims=True)
        var = jnp.mean((x - mean) ** 2, axis=-1, keepdims=True)
        return (x - mean) * lax.rsqrt(var + 1e-5) * g_ref2[...] + b_ref2[...]

    def softmax(s):
        m = jnp.max(s, axis=-1, keepdims=True)
        e = jnp.exp(s - m)
        return e * pl.reciprocal(jnp.sum(e, axis=-1, keepdims=True), approx=True)

    def attention(q, k, v, attn_ref):
        # q: [Nq, inner], k/v: [Nk, inner]; heads via static (free) slices.
        outs = []
        for h in range(heads):
            sl = slice(h * dim_head, (h + 1) * dim_head)
            # contract on the last axis of both operands -> no transpose needed
            s = lax.dot_general(q[:, sl], k[:, sl], (((1,), (1,)), ((), ())),
                                preferred_element_type=jnp.float32) * scale
            p = softmax(s)
            attn_ref[0, h, :, :] = p
            outs.append(jnp.dot(p, v[:, sl], preferred_element_type=jnp.float32))
        return jnp.concatenate(outs, axis=-1)          # [Nq, inner]

    # ---- self-attention (pre-norm; pos added to q/k only, not to value) ----
    h_ln = layer_norm(q_tok, ln1_g, ln1_b)
    qkv = jnp.dot(h_ln, sa_wqkv[...], preferred_element_type=jnp.float32)   # [Nq, 3*inner]
    q_sa = qkv[:, 0 * inner:1 * inner]
    k_sa = qkv[:, 1 * inner:2 * inner]
    v_sa = qkv[:, 2 * inner:3 * inner]
    if has_q_pos:
        pos_qk = jnp.dot(q_pos, sa_wqkv[:, :2 * inner],
                         preferred_element_type=jnp.float32)
        q_sa = q_sa + pos_qk[:, :inner]
        k_sa = k_sa + pos_qk[:, inner:]
    sa = attention(q_sa, k_sa, v_sa, sattn_ref)
    q_tok = q_tok + jnp.dot(sa, sa_wo[...],
                            preferred_element_type=jnp.float32) + sa_bo[...]

    # ---- cross-attention (pre-norm on query; raw v_tokens as value) --------
    h_ln = layer_norm(q_tok, ln2_g, ln2_b)
    q_in = h_ln + q_pos if has_q_pos else h_ln
    q_ca = jnp.dot(q_in, ca_wq[...], preferred_element_type=jnp.float32)    # [Nq, inner]
    kv = jnp.dot(v_tok, ca_wkv[...], preferred_element_type=jnp.float32)    # [Nk, 2*inner]
    k_ca = kv[:, :inner]
    v_ca = kv[:, inner:]
    if has_v_pos:
        k_ca = k_ca + jnp.dot(v_pos, ca_wkv[:, :inner],
                              preferred_element_type=jnp.float32)
    ca = attention(q_ca, k_ca, v_ca, cattn_ref)
    q_tok = q_tok + jnp.dot(ca, ca_wo[...],
                            preferred_element_type=jnp.float32) + ca_bo[...]

    # ---- MLP (pre-norm, Linear -> exact-erf GELU -> Linear) ----------------
    h_ln = layer_norm(q_tok, ln3_g, ln3_b)
    mid = jnp.dot(h_ln, w1[...], preferred_element_type=jnp.float32) + b1[...]
    mid = 0.5 * mid * (1.0 + lax.erf(mid * _INV_SQRT2))
    mlp = jnp.dot(mid, w2[...], preferred_element_type=jnp.float32) + b2[...]
    q_tok = q_tok + mlp

    qout_ref[0] = q_tok


# ----------------------------------------------------------------------------
# Wrapper: one fused pallas_call per decoder layer
# ----------------------------------------------------------------------------
def decoder_layer(q_tokens, v_tokens, q_pos, v_pos, p, heads, dim_head):
    B, Nq, C = q_tokens.shape
    Nk = v_tokens.shape[1]
    mlp_dim = p["w1"].shape[1]
    has_q_pos = q_pos is not None
    has_v_pos = v_pos is not None

    tok_spec_q = pl.BlockSpec((1, Nq, C), lambda b: (b, 0, 0))
    tok_spec_v = pl.BlockSpec((1, Nk, C), lambda b: (b, 0, 0))

    inputs = [q_tokens, v_tokens]
    in_specs = [tok_spec_q, tok_spec_v]
    if has_q_pos:
        inputs.append(q_pos)
        in_specs.append(tok_spec_q)
    if has_v_pos:
        inputs.append(v_pos)
        in_specs.append(tok_spec_v)

    weights = [
        p["ln1_g"].reshape(1, C), p["ln1_b"].reshape(1, C),
        p["sa_wqkv"], p["sa_wo"], p["sa_bo"].reshape(1, C),
        p["ln2_g"].reshape(1, C), p["ln2_b"].reshape(1, C),
        p["ca_wq"], p["ca_wkv"], p["ca_wo"], p["ca_bo"].reshape(1, C),
        p["ln3_g"].reshape(1, C), p["ln3_b"].reshape(1, C),
        p["w1"], p["b1"].reshape(1, mlp_dim), p["w2"], p["b2"].reshape(1, C),
    ]
    for w in weights:
        # Grid-invariant full-array blocks: same block index every step, so the
        # weights are DMA'd into VMEM once and reused across the batch grid.
        in_specs.append(pl.BlockSpec(w.shape, lambda b: (0, 0)))
    inputs.extend(weights)

    kernel = functools.partial(
        _decoder_layer_kernel, heads=heads, dim_head=dim_head,
        has_q_pos=has_q_pos, has_v_pos=has_v_pos)

    q_out, self_attn, cross_attn = pl.pallas_call(
        kernel,
        out_shape=(
            jax.ShapeDtypeStruct((B, Nq, C), jnp.float32),
            jax.ShapeDtypeStruct((B, heads, Nq, Nq), jnp.float32),
            jax.ShapeDtypeStruct((B, heads, Nq, Nk), jnp.float32),
        ),
        grid=(B,),
        in_specs=in_specs,
        out_specs=(
            pl.BlockSpec((1, Nq, C), lambda b: (b, 0, 0)),
            pl.BlockSpec((1, heads, Nq, Nq), lambda b: (b, 0, 0, 0)),
            pl.BlockSpec((1, heads, Nq, Nk), lambda b: (b, 0, 0, 0)),
        ),
        compiler_params=pltpu.CompilerParams(
            dimension_semantics=("parallel",)),   # batch splits across v7x's 2 TCs
    )(*inputs)
    return q_out, self_attn, cross_attn


@functools.partial(jax.jit, static_argnames=("heads", "dim_head"))
def transformer_decoder(q_tokens, v_tokens, q_pos, v_pos, params, *, heads, dim_head):
    self_attn_maps, cross_attn_maps = [], []
    for p in params:
        q_tokens, sa, ca = decoder_layer(
            q_tokens, v_tokens, q_pos, v_pos, p, heads, dim_head)
        self_attn_maps.append(sa)
        cross_attn_maps.append(ca)
    return q_tokens, self_attn_maps, cross_attn_maps


# ----------------------------------------------------------------------------
# Deterministic parameter construction (QKV / KV projections pre-fused)
# ----------------------------------------------------------------------------
def init_params(key, depth, C, heads, dim_head, mlp_dim):
    inner = heads * dim_head
    params = []
    for _ in range(depth):
        key, k1, k2, k3, k4, k5, k6, k7 = jax.random.split(key, 8)

        def nrm(k, shape):
            return jax.random.normal(k, shape, jnp.float32) * 0.02

        params.append({
            "ln1_g": jnp.ones((C,), jnp.float32), "ln1_b": jnp.zeros((C,), jnp.float32),
            "sa_wqkv": nrm(k1, (C, 3 * inner)),          # fused Wq|Wk|Wv
            "sa_wo": nrm(k2, (inner, C)),
            "sa_bo": jnp.zeros((C,), jnp.float32),
            "ln2_g": jnp.ones((C,), jnp.float32), "ln2_b": jnp.zeros((C,), jnp.float32),
            "ca_wq": nrm(k3, (C, inner)),
            "ca_wkv": nrm(k4, (C, 2 * inner)),           # fused Wk|Wv
            "ca_wo": nrm(k5, (inner, C)),
            "ca_bo": jnp.zeros((C,), jnp.float32),
            "ln3_g": jnp.ones((C,), jnp.float32), "ln3_b": jnp.zeros((C,), jnp.float32),
            "w1": nrm(k6, (C, mlp_dim)), "b1": jnp.zeros((mlp_dim,), jnp.float32),
            "w2": nrm(k7, (mlp_dim, C)), "b2": jnp.zeros((C,), jnp.float32),
        })
    return params


# ----------------------------------------------------------------------------
if __name__ == "__main__":
    token_channels = 32
    q_token_num = 8
    v_token_num = 16
    batchsize = 2
    depth = 2
    heads = 2
    dim_head = 8
    mlp_dim = 64

    root = jax.random.PRNGKey(0)
    k_q, k_v, k_pos, k_params = jax.random.split(root, 4)

    q_tokens = jax.random.normal(k_q, (batchsize, q_token_num, token_channels), jnp.float32)
    v_tokens = jax.random.normal(k_v, (batchsize, v_token_num, token_channels), jnp.float32)
    v_pos = jax.random.normal(k_pos, (batchsize, v_token_num, token_channels), jnp.float32)
    q_pos = None  # matches the demo usage: decoder(q_tokens, v_tokens, None, v_pos_emb)

    params = init_params(k_params, depth, token_channels, heads, dim_head, mlp_dim)

    q_out, self_maps, cross_maps = transformer_decoder(
        q_tokens, v_tokens, q_pos, v_pos, params, heads=heads, dim_head=dim_head)

    q_out = jax.block_until_ready(q_out)
    for m in self_maps + cross_maps:
        jax.block_until_ready(m)

    assert q_out.shape == (batchsize, q_token_num, token_channels)
    assert all(m.shape == (batchsize, heads, q_token_num, q_token_num) for m in self_maps)
    assert all(m.shape == (batchsize, heads, q_token_num, v_token_num) for m in cross_maps)
    assert bool(jnp.all(jnp.isfinite(q_out)))
    print("KERNEL_OK")
</pallas_src>

<mosaic_0001>
module attributes {stable_mosaic.version = 11 : i64} {
  func.func @_decoder_layer_kernel(%arg0: i32, %arg1: memref<1x8x32xf32, #tpu.memory_space<vmem>>, %arg2: memref<1x16x32xf32, #tpu.memory_space<vmem>>, %arg3: memref<1x16x32xf32, #tpu.memory_space<vmem>>, %arg4: memref<1x32xf32, #tpu.memory_space<vmem>>, %arg5: memref<1x32xf32, #tpu.memory_space<vmem>>, %arg6: memref<32x48xf32, #tpu.memory_space<vmem>>, %arg7: memref<16x32xf32, #tpu.memory_space<vmem>>, %arg8: memref<1x32xf32, #tpu.memory_space<vmem>>, %arg9: memref<1x32xf32, #tpu.memory_space<vmem>>, %arg10: memref<1x32xf32, #tpu.memory_space<vmem>>, %arg11: memref<32x16xf32, #tpu.memory_space<vmem>>, %arg12: memref<32x32xf32, #tpu.memory_space<vmem>>, %arg13: memref<16x32xf32, #tpu.memory_space<vmem>>, %arg14: memref<1x32xf32, #tpu.memory_space<vmem>>, %arg15: memref<1x32xf32, #tpu.memory_space<vmem>>, %arg16: memref<1x32xf32, #tpu.memory_space<vmem>>, %arg17: memref<32x64xf32, #tpu.memory_space<vmem>>, %arg18: memref<1x64xf32, #tpu.memory_space<vmem>>, %arg19: memref<64x32xf32, #tpu.memory_space<vmem>>, %arg20: memref<1x32xf32, #tpu.memory_space<vmem>>, %arg21: memref<1x8x32xf32, #tpu.memory_space<vmem>>, %arg22: memref<1x2x8x8xf32, #tpu.memory_space<vmem>>, %arg23: memref<1x2x8x16xf32, #tpu.memory_space<vmem>>) attributes {dimension_semantics = [#tpu.dimension_semantics<parallel>], iteration_bounds = array<i64: 2>, scalar_prefetch = 0 : i64, scratch_operands = 0 : i64, tpu.core_type = #tpu.core_type<tc>, window_params = [{transform_indices = @transform_0, window_bounds = array<i64: 1, 8, 32>}, {transform_indices = @transform_1, window_bounds = array<i64: 1, 16, 32>}, {transform_indices = @transform_2, window_bounds = array<i64: 1, 16, 32>}, {pipeline_mode = #tpu.pipeline_mode<synchronous>, transform_indices = @transform_3, window_bounds = array<i64: 1, 32>}, {pipeline_mode = #tpu.pipeline_mode<synchronous>, transform_indices = @transform_4, window_bounds = array<i64: 1, 32>}, {pipeline_mode = #tpu.pipeline_mode<synchronous>, transform_indices = @transform_5, window_bounds = array<i64: 32, 48>}, {pipeline_mode = #tpu.pipeline_mode<synchronous>, transform_indices = @transform_6, window_bounds = array<i64: 16, 32>}, {pipeline_mode = #tpu.pipeline_mode<synchronous>, transform_indices = @transform_7, window_bounds = array<i64: 1, 32>}, {pipeline_mode = #tpu.pipeline_mode<synchronous>, transform_indices = @transform_8, window_bounds = array<i64: 1, 32>}, {pipeline_mode = #tpu.pipeline_mode<synchronous>, transform_indices = @transform_9, window_bounds = array<i64: 1, 32>}, {pipeline_mode = #tpu.pipeline_mode<synchronous>, transform_indices = @transform_10, window_bounds = array<i64: 32, 16>}, {pipeline_mode = #tpu.pipeline_mode<synchronous>, transform_indices = @transform_11, window_bounds = array<i64: 32, 32>}, {pipeline_mode = #tpu.pipeline_mode<synchronous>, transform_indices = @transform_12, window_bounds = array<i64: 16, 32>}, {pipeline_mode = #tpu.pipeline_mode<synchronous>, transform_indices = @transform_13, window_bounds = array<i64: 1, 32>}, {pipeline_mode = #tpu.pipeline_mode<synchronous>, transform_indices = @transform_14, window_bounds = array<i64: 1, 32>}, {pipeline_mode = #tpu.pipeline_mode<synchronous>, transform_indices = @transform_15, window_bounds = array<i64: 1, 32>}, {pipeline_mode = #tpu.pipeline_mode<synchronous>, transform_indices = @transform_16, window_bounds = array<i64: 32, 64>}, {pipeline_mode = #tpu.pipeline_mode<synchronous>, transform_indices = @transform_17, window_bounds = array<i64: 1, 64>}, {pipeline_mode = #tpu.pipeline_mode<synchronous>, transform_indices = @transform_18, window_bounds = array<i64: 64, 32>}, {pipeline_mode = #tpu.pipeline_mode<synchronous>, transform_indices = @transform_19, window_bounds = array<i64: 1, 32>}, {transform_indices = @transform_20, window_bounds = array<i64: 1, 8, 32>}, {transform_indices = @transform_21, window_bounds = array<i64: 1, 2, 8, 8>}, {transform_indices = @transform_22, window_bounds = array<i64: 1, 2, 8, 16>}]} {
    %c0 = arith.constant 0 : index
    %c0_0 = arith.constant 0 : index
    %c0_1 = arith.constant 0 : index
    %0 = vector.load %arg1[%c0, %c0_0, %c0_1] : memref<1x8x32xf32, #tpu.memory_space<vmem>>, vector<1x8x32xf32>
    %1 = vector.shape_cast %0 : vector<1x8x32xf32> to vector<8x32xf32>
    %c0_2 = arith.constant 0 : index
    %c0_3 = arith.constant 0 : index
    %c0_4 = arith.constant 0 : index
    %2 = vector.load %arg2[%c0_2, %c0_3, %c0_4] : memref<1x16x32xf32, #tpu.memory_space<vmem>>, vector<1x16x32xf32>
    %3 = vector.shape_cast %2 : vector<1x16x32xf32> to vector<16x32xf32>
    %c0_5 = arith.constant 0 : index
    %c0_6 = arith.constant 0 : index
    %c0_7 = arith.constant 0 : index
    %4 = vector.load %arg3[%c0_5, %c0_6, %c0_7] : memref<1x16x32xf32, #tpu.memory_space<vmem>>, vector<1x16x32xf32>
    %5 = vector.shape_cast %4 : vector<1x16x32xf32> to vector<16x32xf32>
    %cst = arith.constant dense<0.000000e+00> : vector<8xf32>
    %6 = vector.multi_reduction <add>, %1, %cst [1] : vector<8x32xf32> to vector<8xf32>
    %7 = vector.shape_cast %6 : vector<8xf32> to vector<8x1xf32>
    %cst_8 = arith.constant 3.200000e+01 : f32
    %8 = vector.broadcast %cst_8 : f32 to vector<8x1xf32>
    %9 = arith.divf %7, %8 : vector<8x1xf32>
    %10 = vector.broadcast %9 : vector<8x1xf32> to vector<8x32xf32>
    %11 = arith.subf %1, %10 : vector<8x32xf32>
    %12 = arith.mulf %11, %11 : vector<8x32xf32>
    %cst_9 = arith.constant dense<0.000000e+00> : vector<8xf32>
    %13 = vector.multi_reduction <add>, %12, %cst_9 [1] : vector<8x32xf32> to vector<8xf32>
    %14 = vector.shape_cast %13 : vector<8xf32> to vector<8x1xf32>
    %cst_10 = arith.constant 3.200000e+01 : f32
    %15 = vector.broadcast %cst_10 : f32 to vector<8x1xf32>
    %16 = arith.divf %14, %15 : vector<8x1xf32>
    %17 = vector.broadcast %9 : vector<8x1xf32> to vector<8x32xf32>
    %18 = arith.subf %1, %17 : vector<8x32xf32>
    %cst_11 = arith.constant 9.99999974E-6 : f32
    %19 = vector.broadcast %cst_11 : f32 to vector<8x1xf32>
    %20 = arith.addf %16, %19 : vector<8x1xf32>
    %21 = math.rsqrt %20 : vector<8x1xf32>
    %22 = vector.broadcast %21 : vector<8x1xf32> to vector<8x32xf32>
    %23 = arith.mulf %18, %22 : vector<8x32xf32>
    %c0_12 = arith.constant 0 : index
    %c0_13 = arith.constant 0 : index
    %24 = vector.load %arg4[%c0_12, %c0_13] : memref<1x32xf32, #tpu.memory_space<vmem>>, vector<1x32xf32>
    %25 = vector.broadcast %24 : vector<1x32xf32> to vector<8x32xf32>
    %26 = arith.mulf %23, %25 : vector<8x32xf32>
    %c0_14 = arith.constant 0 : index
    %c0_15 = arith.constant 0 : index
    %27 = vector.load %arg5[%c0_14, %c0_15] : memref<1x32xf32, #tpu.memory_space<vmem>>, vector<1x32xf32>
    %28 = vector.broadcast %27 : vector<1x32xf32> to vector<8x32xf32>
    %29 = arith.addf %26, %28 : vector<8x32xf32>
    %c0_16 = arith.constant 0 : index
    %c0_17 = arith.constant 0 : index
    %30 = vector.load %arg6[%c0_16, %c0_17] : memref<32x48xf32, #tpu.memory_space<vmem>>, vector<32x48xf32>
    %cst_18 = arith.constant dense<0.000000e+00> : vector<8x48xf32>
    %31 = tpu.matmul %29, %30, %cst_18 {dimension_numbers = #tpu.dot_dimension_numbers<[1], [0], [0], [1], [0, 0, 1, 1], [], []>} : vector<8x32xf32>, vector<32x48xf32>, vector<8x48xf32> -> vector<8x48xf32>
    %32 = vector.extract_strided_slice %31 {offsets = [0, 0], sizes = [8, 16], strides = [1, 1]} : vector<8x48xf32> to vector<8x16xf32>
    %33 = vector.extract_strided_slice %31 {offsets = [0, 16], sizes = [8, 16], strides = [1, 1]} : vector<8x48xf32> to vector<8x16xf32>
    %34 = vector.extract_strided_slice %31 {offsets = [0, 32], sizes = [8, 16], strides = [1, 1]} : vector<8x48xf32> to vector<8x16xf32>
    %35 = vector.extract_strided_slice %32 {offsets = [0, 0], sizes = [8, 8], strides = [1, 1]} : vector<8x16xf32> to vector<8x8xf32>
    %36 = vector.extract_strided_slice %33 {offsets = [0, 0], sizes = [8, 8], strides = [1, 1]} : vector<8x16xf32> to vector<8x8xf32>
    %cst_19 = arith.constant dense<0.000000e+00> : vector<8x8xf32>
    %37 = tpu.matmul %35, %36, %cst_19 {dimension_numbers = #tpu.dot_dimension_numbers<[1], [1], [0], [0], [0, 0, 1, 0], [], []>} : vector<8x8xf32>, vector<8x8xf32>, vector<8x8xf32> -> vector<8x8xf32>
    %cst_20 = arith.constant 0.353553385 : f32
    %38 = vector.broadcast %cst_20 : f32 to vector<8x8xf32>
    %39 = arith.mulf %37, %38 : vector<8x8xf32>
    %cst_21 = arith.constant dense<0xFF800000> : vector<8xf32>
    %40 = vector.multi_reduction <maximumf>, %39, %cst_21 [1] : vector<8x8xf32> to vector<8xf32>
    %41 = vector.shape_cast %40 : vector<8xf32> to vector<8x1xf32>
    %42 = vector.broadcast %41 : vector<8x1xf32> to vector<8x8xf32>
    %43 = arith.subf %39, %42 : vector<8x8xf32>
    %44 = math.exp %43 : vector<8x8xf32>
    %cst_22 = arith.constant dense<0.000000e+00> : vector<8xf32>
    %45 = vector.multi_reduction <add>, %44, %cst_22 [1] : vector<8x8xf32> to vector<8xf32>
    %46 = vector.shape_cast %45 : vector<8xf32> to vector<8x1xf32>
    %47 = tpu.reciprocal %46 {approx = true} : vector<8x1xf32> -> vector<8x1xf32>
    %48 = vector.broadcast %47 : vector<8x1xf32> to vector<8x8xf32>
    %49 = arith.mulf %44, %48 : vector<8x8xf32>
    %c0_23 = arith.constant 0 : index
    %c0_24 = arith.constant 0 : index
    %c0_25 = arith.constant 0 : index
    %c0_26 = arith.constant 0 : index
    %50 = vector.load %arg22[%c0_23, %c0_24, %c0_25, %c0_26] : memref<1x2x8x8xf32, #tpu.memory_space<vmem>>, vector<1x1x8x8xf32>
    %51 = vector.shape_cast %50 : vector<1x1x8x8xf32> to vector<8x8xf32>
    %52 = vector.shape_cast %49 : vector<8x8xf32> to vector<1x1x8x8xf32>
    tpu.vector_store %arg22[%c0_23, %c0_24, %c0_25, %c0_26], %52 {strides = array<i32>} : memref<1x2x8x8xf32, #tpu.memory_space<vmem>>, vector<1x1x8x8xf32>,
    %53 = vector.extract_strided_slice %34 {offsets = [0, 0], sizes = [8, 8], strides = [1, 1]} : vector<8x16xf32> to vector<8x8xf32>
    %cst_27 = arith.constant dense<0.000000e+00> : vector<8x8xf32>
    %54 = tpu.matmul %49, %53, %cst_27 {dimension_numbers = #tpu.dot_dimension_numbers<[1], [0], [0], [1], [0, 0, 1, 1], [], []>} : vector<8x8xf32>, vector<8x8xf32>, vector<8x8xf32> -> vector<8x8xf32>
    %55 = vector.extract_strided_slice %32 {offsets = [0, 8], sizes = [8, 8], strides = [1, 1]} : vector<8x16xf32> to vector<8x8xf32>
    %56 = vector.extract_strided_slice %33 {offsets = [0, 8], sizes = [8, 8], strides = [1, 1]} : vector<8x16xf32> to vector<8x8xf32>
    %cst_28 = arith.constant dense<0.000000e+00> : vector<8x8xf32>
    %57 = tpu.matmul %55, %56, %cst_28 {dimension_numbers = #tpu.dot_dimension_numbers<[1], [1], [0], [0], [0, 0, 1, 0], [], []>} : vector<8x8xf32>, vector<8x8xf32>, vector<8x8xf32> -> vector<8x8xf32>
    %cst_29 = arith.constant 0.353553385 : f32
    %58 = vector.broadcast %cst_29 : f32 to vector<8x8xf32>
    %59 = arith.mulf %57, %58 : vector<8x8xf32>
    %cst_30 = arith.constant dense<0xFF800000> : vector<8xf32>
    %60 = vector.multi_reduction <maximumf>, %59, %cst_30 [1] : vector<8x8xf32> to vector<8xf32>
    %61 = vector.shape_cast %60 : vector<8xf32> to vector<8x1xf32>
    %62 = vector.broadcast %61 : vector<8x1xf32> to vector<8x8xf32>
    %63 = arith.subf %59, %62 : vector<8x8xf32>
    %64 = math.exp %63 : vector<8x8xf32>
    %cst_31 = arith.constant dense<0.000000e+00> : vector<8xf32>
    %65 = vector.multi_reduction <add>, %64, %cst_31 [1] : vector<8x8xf32> to vector<8xf32>
    %66 = vector.shape_cast %65 : vector<8xf32> to vector<8x1xf32>
    %67 = tpu.reciprocal %66 {approx = true} : vector<8x1xf32> -> vector<8x1xf32>
    %68 = vector.broadcast %67 : vector<8x1xf32> to vector<8x8xf32>
    %69 = arith.mulf %64, %68 : vector<8x8xf32>
    %c0_32 = arith.constant 0 : index
    %c1 = arith.constant 1 : index
    %c0_33 = arith.constant 0 : index
    %c0_34 = arith.constant 0 : index
    %70 = vector.load %arg22[%c0_32, %c1, %c0_33, %c0_34] : memref<1x2x8x8xf32, #tpu.memory_space<vmem>>, vector<1x1x8x8xf32>
    %71 = vector.shape_cast %70 : vector<1x1x8x8xf32> to vector<8x8xf32>
    %72 = vector.shape_cast %69 : vector<8x8xf32> to vector<1x1x8x8xf32>
    tpu.vector_store %arg22[%c0_32, %c1, %c0_33, %c0_34], %72 {strides = array<i32>} : memref<1x2x8x8xf32, #tpu.memory_space<vmem>>, vector<1x1x8x8xf32>,
    %73 = vector.extract_strided_slice %34 {offsets = [0, 8], sizes = [8, 8], strides = [1, 1]} : vector<8x16xf32> to vector<8x8xf32>
    %cst_35 = arith.constant dense<0.000000e+00> : vector<8x8xf32>
    %74 = tpu.matmul %69, %73, %cst_35 {dimension_numbers = #tpu.dot_dimension_numbers<[1], [0], [0], [1], [0, 0, 1, 1], [], []>} : vector<8x8xf32>, vector<8x8xf32>, vector<8x8xf32> -> vector<8x8xf32>
    %75 = tpu.concatenate %54, %74 in 1 : vector<8x8xf32>, vector<8x8xf32> -> vector<8x16xf32>
    %c0_36 = arith.constant 0 : index
    %c0_37 = arith.constant 0 : index
    %76 = vector.load %arg7[%c0_36, %c0_37] : memref<16x32xf32, #tpu.memory_space<vmem>>, vector<16x32xf32>
    %cst_38 = arith.constant dense<0.000000e+00> : vector<8x32xf32>
    %77 = tpu.matmul %75, %76, %cst_38 {dimension_numbers = #tpu.dot_dimension_numbers<[1], [0], [0], [1], [0, 0, 1, 1], [], []>} : vector<8x16xf32>, vector<16x32xf32>, vector<8x32xf32> -> vector<8x32xf32>
    %78 = arith.addf %1, %77 : vector<8x32xf32>
    %c0_39 = arith.constant 0 : index
    %c0_40 = arith.constant 0 : index
    %79 = vector.load %arg8[%c0_39, %c0_40] : memref<1x32xf32, #tpu.memory_space<vmem>>, vector<1x32xf32>
    %80 = vector.broadcast %79 : vector<1x32xf32> to vector<8x32xf32>
    %81 = arith.addf %78, %80 : vector<8x32xf32>
    %cst_41 = arith.constant dense<0.000000e+00> : vector<8xf32>
    %82 = vector.multi_reduction <add>, %81, %cst_41 [1] : vector<8x32xf32> to vector<8xf32>
    %83 = vector.shape_cast %82 : vector<8xf32> to vector<8x1xf32>
    %cst_42 = arith.constant 3.200000e+01 : f32
    %84 = vector.broadcast %cst_42 : f32 to vector<8x1xf32>
    %85 = arith.divf %83, %84 : vector<8x1xf32>
    %86 = vector.broadcast %85 : vector<8x1xf32> to vector<8x32xf32>
    %87 = arith.subf %81, %86 : vector<8x32xf32>
    %88 = arith.mulf %87, %87 : vector<8x32xf32>
    %cst_43 = arith.constant dense<0.000000e+00> : vector<8xf32>
    %89 = vector.multi_reduction <add>, %88, %cst_43 [1] : vector<8x32xf32> to vector<8xf32>
    %90 = vector.shape_cast %89 : vector<8xf32> to vector<8x1xf32>
    %cst_44 = arith.constant 3.200000e+01 : f32
    %91 = vector.broadcast %cst_44 : f32 to vector<8x1xf32>
    %92 = arith.divf %90, %91 : vector<8x1xf32>
    %93 = vector.broadcast %85 : vector<8x1xf32> to vector<8x32xf32>
    %94 = arith.subf %81, %93 : vector<8x32xf32>
    %cst_45 = arith.constant 9.99999974E-6 : f32
    %95 = vector.broadcast %cst_45 : f32 to vector<8x1xf32>
    %96 = arith.addf %92, %95 : vector<8x1xf32>
    %97 = math.rsqrt %96 : vector<8x1xf32>
    %98 = vector.broadcast %97 : vector<8x1xf32> to vector<8x32xf32>
    %99 = arith.mulf %94, %98 : vector<8x32xf32>
    %c0_46 = arith.constant 0 : index
    %c0_47 = arith.constant 0 : index
    %100 = vector.load %arg9[%c0_46, %c0_47] : memref<1x32xf32, #tpu.memory_space<vmem>>, vector<1x32xf32>
    %101 = vector.broadcast %100 : vector<1x32xf32> to vector<8x32xf32>
    %102 = arith.mulf %99, %101 : vector<8x32xf32>
    %c0_48 = arith.constant 0 : index
    %c0_49 = arith.constant 0 : index
    %103 = vector.load %arg10[%c0_48, %c0_49] : memref<1x32xf32, #tpu.memory_space<vmem>>, vector<1x32xf32>
    %104 = vector.broadcast %103 : vector<1x32xf32> to vector<8x32xf32>
    %105 = arith.addf %102, %104 : vector<8x32xf32>
    %c0_50 = arith.constant 0 : index
    %c0_51 = arith.constant 0 : index
    %106 = vector.load %arg11[%c0_50, %c0_51] : memref<32x16xf32, #tpu.memory_space<vmem>>, vector<32x16xf32>
    %cst_52 = arith.constant dense<0.000000e+00> : vector<8x16xf32>
    %107 = tpu.matmul %105, %106, %cst_52 {dimension_numbers = #tpu.dot_dimension_numbers<[1], [0], [0], [1], [0, 0, 1, 1], [], []>} : vector<8x32xf32>, vector<32x16xf32>, vector<8x16xf32> -> vector<8x16xf32>
    %c0_53 = arith.constant 0 : index
    %c0_54 = arith.constant 0 : index
    %108 = vector.load %arg12[%c0_53, %c0_54] : memref<32x32xf32, #tpu.memory_space<vmem>>, vector<32x32xf32>
    %cst_55 = arith.constant dense<0.000000e+00> : vector<16x32xf32>
    %109 = tpu.matmul %3, %108, %cst_55 {dimension_numbers = #tpu.dot_dimension_numbers<[1], [0], [0], [1], [0, 0, 1, 1], [], []>} : vector<16x32xf32>, vector<32x32xf32>, vector<16x32xf32> -> vector<16x32xf32>
    %110 = vector.extract_strided_slice %109 {offsets = [0, 0], sizes = [16, 16], strides = [1, 1]} : vector<16x32xf32> to vector<16x16xf32>
    %111 = vector.extract_strided_slice %109 {offsets = [0, 16], sizes = [16, 16], strides = [1, 1]} : vector<16x32xf32> to vector<16x16xf32>
    %c0_56 = arith.constant 0 : index
    %c0_57 = arith.constant 0 : index
    %112 = vector.load %arg12[%c0_56, %c0_57] : memref<32x32xf32, #tpu.memory_space<vmem>>, vector<32x16xf32>
    %cst_58 = arith.constant dense<0.000000e+00> : vector<16x16xf32>
    %113 = tpu.matmul %5, %112, %cst_58 {dimension_numbers = #tpu.dot_dimension_numbers<[1], [0], [0], [1], [0, 0, 1, 1], [], []>} : vector<16x32xf32>, vector<32x16xf32>, vector<16x16xf32> -> vector<16x16xf32>
    %114 = arith.addf %110, %113 : vector<16x16xf32>
    %115 = vector.extract_strided_slice %107 {offsets = [0, 0], sizes = [8, 8], strides = [1, 1]} : vector<8x16xf32> to vector<8x8xf32>
    %116 = vector.extract_strided_slice %114 {offsets = [0, 0], sizes = [16, 8], strides = [1, 1]} : vector<16x16xf32> to vector<16x8xf32>
    %cst_59 = arith.constant dense<0.000000e+00> : vector<8x16xf32>
    %117 = tpu.matmul %115, %116, %cst_59 {dimension_numbers = #tpu.dot_dimension_numbers<[1], [1], [0], [0], [0, 0, 1, 0], [], []>} : vector<8x8xf32>, vector<16x8xf32>, vector<8x16xf32> -> vector<8x16xf32>
    %cst_60 = arith.constant 0.353553385 : f32
    %118 = vector.broadcast %cst_60 : f32 to vector<8x16xf32>
    %119 = arith.mulf %117, %118 : vector<8x16xf32>
    %cst_61 = arith.constant dense<0xFF800000> : vector<8xf32>
    %120 = vector.multi_reduction <maximumf>, %119, %cst_61 [1] : vector<8x16xf32> to vector<8xf32>
    %121 = vector.shape_cast %120 : vector<8xf32> to vector<8x1xf32>
    %122 = vector.broadcast %121 : vector<8x1xf32> to vector<8x16xf32>
    %123 = arith.subf %119, %122 : vector<8x16xf32>
    %124 = math.exp %123 : vector<8x16xf32>
    %cst_62 = arith.constant dense<0.000000e+00> : vector<8xf32>
    %125 = vector.multi_reduction <add>, %124, %cst_62 [1] : vector<8x16xf32> to vector<8xf32>
    %126 = vector.shape_cast %125 : vector<8xf32> to vector<8x1xf32>
    %127 = tpu.reciprocal %126 {approx = true} : vector<8x1xf32> -> vector<8x1xf32>
    %128 = vector.broadcast %127 : vector<8x1xf32> to vector<8x16xf32>
    %129 = arith.mulf %124, %128 : vector<8x16xf32>
    %c0_63 = arith.constant 0 : index
    %c0_64 = arith.constant 0 : index
    %c0_65 = arith.constant 0 : index
    %c0_66 = arith.constant 0 : index
    %130 = vector.load %arg23[%c0_63, %c0_64, %c0_65, %c0_66] : memref<1x2x8x16xf32, #tpu.memory_space<vmem>>, vector<1x1x8x16xf32>
    %131 = vector.shape_cast %130 : vector<1x1x8x16xf32> to vector<8x16xf32>
    %132 = vector.shape_cast %129 : vector<8x16xf32> to vector<1x1x8x16xf32>
    tpu.vector_store %arg23[%c0_63, %c0_64, %c0_65, %c0_66], %132 {strides = array<i32>} : memref<1x2x8x16xf32, #tpu.memory_space<vmem>>, vector<1x1x8x16xf32>,
    %133 = vector.extract_strided_slice %111 {offsets = [0, 0], sizes = [16, 8], strides = [1, 1]} : vector<16x16xf32> to vector<16x8xf32>
    %cst_67 = arith.constant dense<0.000000e+00> : vector<8x8xf32>
    %134 = tpu.matmul %129, %133, %cst_67 {dimension_numbers = #tpu.dot_dimension_numbers<[1], [0], [0], [1], [0, 0, 1, 1], [], []>} : vector<8x16xf32>, vector<16x8xf32>, vector<8x8xf32> -> vector<8x8xf32>
    %135 = vector.extract_strided_slice %107 {offsets = [0, 8], sizes = [8, 8], strides = [1, 1]} : vector<8x16xf32> to vector<8x8xf32>
    %136 = vector.extract_strided_slice %114 {offsets = [0, 8], sizes = [16, 8], strides = [1, 1]} : vector<16x16xf32> to vector<16x8xf32>
    %cst_68 = arith.constant dense<0.000000e+00> : vector<8x16xf32>
    %137 = tpu.matmul %135, %136, %cst_68 {dimension_numbers = #tpu.dot_dimension_numbers<[1], [1], [0], [0], [0, 0, 1, 0], [], []>} : vector<8x8xf32>, vector<16x8xf32>, vector<8x16xf32> -> vector<8x16xf32>
    %cst_69 = arith.constant 0.353553385 : f32
    %138 = vector.broadcast %cst_69 : f32 to vector<8x16xf32>
    %139 = arith.mulf %137, %138 : vector<8x16xf32>
    %cst_70 = arith.constant dense<0xFF800000> : vector<8xf32>
    %140 = vector.multi_reduction <maximumf>, %139, %cst_70 [1] : vector<8x16xf32> to vector<8xf32>
    %141 = vector.shape_cast %140 : vector<8xf32> to vector<8x1xf32>
    %142 = vector.broadcast %141 : vector<8x1xf32> to vector<8x16xf32>
    %143 = arith.subf %139, %142 : vector<8x16xf32>
    %144 = math.exp %143 : vector<8x16xf32>
    %cst_71 = arith.constant dense<0.000000e+00> : vector<8xf32>
    %145 = vector.multi_reduction <add>, %144, %cst_71 [1] : vector<8x16xf32> to vector<8xf32>
    %146 = vector.shape_cast %145 : vector<8xf32> to vector<8x1xf32>
    %147 = tpu.reciprocal %146 {approx = true} : vector<8x1xf32> -> vector<8x1xf32>
    %148 = vector.broadcast %147 : vector<8x1xf32> to vector<8x16xf32>
    %149 = arith.mulf %144, %148 : vector<8x16xf32>
    %c0_72 = arith.constant 0 : index
    %c1_73 = arith.constant 1 : index
    %c0_74 = arith.constant 0 : index
    %c0_75 = arith.constant 0 : index
    %150 = vector.load %arg23[%c0_72, %c1_73, %c0_74, %c0_75] : memref<1x2x8x16xf32, #tpu.memory_space<vmem>>, vector<1x1x8x16xf32>
    %151 = vector.shape_cast %150 : vector<1x1x8x16xf32> to vector<8x16xf32>
    %152 = vector.shape_cast %149 : vector<8x16xf32> to vector<1x1x8x16xf32>
    tpu.vector_store %arg23[%c0_72, %c1_73, %c0_74, %c0_75], %152 {strides = array<i32>} : memref<1x2x8x16xf32, #tpu.memory_space<vmem>>, vector<1x1x8x16xf32>,
    %153 = vector.extract_strided_slice %111 {offsets = [0, 8], sizes = [16, 8], strides = [1, 1]} : vector<16x16xf32> to vector<16x8xf32>
    %cst_76 = arith.constant dense<0.000000e+00> : vector<8x8xf32>
    %154 = tpu.matmul %149, %153, %cst_76 {dimension_numbers = #tpu.dot_dimension_numbers<[1], [0], [0], [1], [0, 0, 1, 1], [], []>} : vector<8x16xf32>, vector<16x8xf32>, vector<8x8xf32> -> vector<8x8xf32>
    %155 = tpu.concatenate %134, %154 in 1 : vector<8x8xf32>, vector<8x8xf32> -> vector<8x16xf32>
    %c0_77 = arith.constant 0 : index
    %c0_78 = arith.constant 0 : index
    %156 = vector.load %arg13[%c0_77, %c0_78] : memref<16x32xf32, #tpu.memory_space<vmem>>, vector<16x32xf32>
    %cst_79 = arith.constant dense<0.000000e+00> : vector<8x32xf32>
    %157 = tpu.matmul %155, %156, %cst_79 {dimension_numbers = #tpu.dot_dimension_numbers<[1], [0], [0], [1], [0, 0, 1, 1], [], []>} : vector<8x16xf32>, vector<16x32xf32>, vector<8x32xf32> -> vector<8x32xf32>
    %158 = arith.addf %81, %157 : vector<8x32xf32>
    %c0_80 = arith.constant 0 : index
    %c0_81 = arith.constant 0 : index
    %159 = vector.load %arg14[%c0_80, %c0_81] : memref<1x32xf32, #tpu.memory_space<vmem>>, vector<1x32xf32>
    %160 = vector.broadcast %159 : vector<1x32xf32> to vector<8x32xf32>
    %161 = arith.addf %158, %160 : vector<8x32xf32>
    %cst_82 = arith.constant dense<0.000000e+00> : vector<8xf32>
    %162 = vector.multi_reduction <add>, %161, %cst_82 [1] : vector<8x32xf32> to vector<8xf32>
    %163 = vector.shape_cast %162 : vector<8xf32> to vector<8x1xf32>
    %cst_83 = arith.constant 3.200000e+01 : f32
    %164 = vector.broadcast %cst_83 : f32 to vector<8x1xf32>
    %165 = arith.divf %163, %164 : vector<8x1xf32>
    %166 = vector.broadcast %165 : vector<8x1xf32> to vector<8x32xf32>
    %167 = arith.subf %161, %166 : vector<8x32xf32>
    %168 = arith.mulf %167, %167 : vector<8x32xf32>
    %cst_84 = arith.constant dense<0.000000e+00> : vector<8xf32>
    %169 = vector.multi_reduction <add>, %168, %cst_84 [1] : vector<8x32xf32> to vector<8xf32>
    %170 = vector.shape_cast %169 : vector<8xf32> to vector<8x1xf32>
    %cst_85 = arith.constant 3.200000e+01 : f32
    %171 = vector.broadcast %cst_85 : f32 to vector<8x1xf32>
    %172 = arith.divf %170, %171 : vector<8x1xf32>
    %173 = vector.broadcast %165 : vector<8x1xf32> to vector<8x32xf32>
    %174 = arith.subf %161, %173 : vector<8x32xf32>
    %cst_86 = arith.constant 9.99999974E-6 : f32
    %175 = vector.broadcast %cst_86 : f32 to vector<8x1xf32>
    %176 = arith.addf %172, %175 : vector<8x1xf32>
    %177 = math.rsqrt %176 : vector<8x1xf32>
    %178 = vector.broadcast %177 : vector<8x1xf32> to vector<8x32xf32>
    %179 = arith.mulf %174, %178 : vector<8x32xf32>
    %c0_87 = arith.constant 0 : index
    %c0_88 = arith.constant 0 : index
    %180 = vector.load %arg15[%c0_87, %c0_88] : memref<1x32xf32, #tpu.memory_space<vmem>>, vector<1x32xf32>
    %181 = vector.broadcast %180 : vector<1x32xf32> to vector<8x32xf32>
    %182 = arith.mulf %179, %181 : vector<8x32xf32>
    %c0_89 = arith.constant 0 : index
    %c0_90 = arith.constant 0 : index
    %183 = vector.load %arg16[%c0_89, %c0_90] : memref<1x32xf32, #tpu.memory_space<vmem>>, vector<1x32xf32>
    %184 = vector.broadcast %183 : vector<1x32xf32> to vector<8x32xf32>
    %185 = arith.addf %182, %184 : vector<8x32xf32>
    %c0_91 = arith.constant 0 : index
    %c0_92 = arith.constant 0 : index
    %186 = vector.load %arg17[%c0_91, %c0_92] : memref<32x64xf32, #tpu.memory_space<vmem>>, vector<32x64xf32>
    %cst_93 = arith.constant dense<0.000000e+00> : vector<8x64xf32>
    %187 = tpu.matmul %185, %186, %cst_93 {dimension_numbers = #tpu.dot_dimension_numbers<[1], [0], [0], [1], [0, 0, 1, 1], [], []>} : vector<8x32xf32>, vector<32x64xf32>, vector<8x64xf32> -> vector<8x64xf32>
    %c0_94 = arith.constant 0 : index
    %c0_95 = arith.constant 0 : index
    %188 = vector.load %arg18[%c0_94, %c0_95] : memref<1x64xf32, #tpu.memory_space<vmem>>, vector<1x64xf32>
    %189 = vector.broadcast %188 : vector<1x64xf32> to vector<8x64xf32>
    %190 = arith.addf %187, %189 : vector<8x64xf32>
    %cst_96 = arith.constant 5.000000e-01 : f32
    %191 = vector.broadcast %cst_96 : f32 to vector<8x64xf32>
    %192 = arith.mulf %191, %190 : vector<8x64xf32>
    %cst_97 = arith.constant 0.707106769 : f32
    %193 = vector.broadcast %cst_97 : f32 to vector<8x64xf32>
    %194 = arith.mulf %190, %193 : vector<8x64xf32>
    %195 = math.erf %194 : vector<8x64xf32>
    %cst_98 = arith.constant 1.000000e+00 : f32
    %196 = vector.broadcast %cst_98 : f32 to vector<8x64xf32>
    %197 = arith.addf %196, %195 : vector<8x64xf32>
    %198 = arith.mulf %192, %197 : vector<8x64xf32>
    %c0_99 = arith.constant 0 : index
    %c0_100 = arith.constant 0 : index
    %199 = vector.load %arg19[%c0_99, %c0_100] : memref<64x32xf32, #tpu.memory_space<vmem>>, vector<64x32xf32>
    %cst_101 = arith.constant dense<0.000000e+00> : vector<8x32xf32>
    %200 = tpu.matmul %198, %199, %cst_101 {dimension_numbers = #tpu.dot_dimension_numbers<[1], [0], [0], [1], [0, 0, 1, 1], [], []>} : vector<8x64xf32>, vector<64x32xf32>, vector<8x32xf32> -> vector<8x32xf32>
    %c0_102 = arith.constant 0 : index
    %c0_103 = arith.constant 0 : index
    %201 = vector.load %arg20[%c0_102, %c0_103] : memref<1x32xf32, #tpu.memory_space<vmem>>, vector<1x32xf32>
    %202 = vector.broadcast %201 : vector<1x32xf32> to vector<8x32xf32>
    %203 = arith.addf %200, %202 : vector<8x32xf32>
    %204 = arith.addf %161, %203 : vector<8x32xf32>
    %c0_104 = arith.constant 0 : index
    %c0_105 = arith.constant 0 : index
    %c0_106 = arith.constant 0 : index
    %205 = vector.load %arg21[%c0_104, %c0_105, %c0_106] : memref<1x8x32xf32, #tpu.memory_space<vmem>>, vector<1x8x32xf32>
    %206 = vector.shape_cast %205 : vector<1x8x32xf32> to vector<8x32xf32>
    %207 = vector.shape_cast %204 : vector<8x32xf32> to vector<1x8x32xf32>
    tpu.vector_store %arg21[%c0_104, %c0_105, %c0_106], %207 {strides = array<i32>} : memref<1x8x32xf32, #tpu.memory_space<vmem>>, vector<1x8x32xf32>,
    return
  }
  func.func @transform_0(%arg0: i32) -> (i32, i32, i32) {
    %c0_i32 = arith.constant 0 : i32
    %c0_i32_0 = arith.constant 0 : i32
    %c0_i32_1 = arith.constant 0 : i32
    return %arg0, %c0_i32, %c0_i32_0 : i32, i32, i32
  }
  func.func @transform_1(%arg0: i32) -> (i32, i32, i32) {
    %c0_i32 = arith.constant 0 : i32
    %c0_i32_0 = arith.constant 0 : i32
    %c0_i32_1 = arith.constant 0 : i32
    return %arg0, %c0_i32, %c0_i32_0 : i32, i32, i32
  }
  func.func @transform_2(%arg0: i32) -> (i32, i32, i32) {
    %c0_i32 = arith.constant 0 : i32
    %c0_i32_0 = arith.constant 0 : i32
    %c0_i32_1 = arith.constant 0 : i32
    return %arg0, %c0_i32, %c0_i32_0 : i32, i32, i32
  }
  func.func @transform_3(%arg0: i32) -> (i32, i32) {
    %c0_i32 = arith.constant 0 : i32
    %c0_i32_0 = arith.constant 0 : i32
    %c0_i32_1 = arith.constant 0 : i32
    return %c0_i32, %c0_i32_0 : i32, i32
  }
  func.func @transform_4(%arg0: i32) -> (i32, i32) {
    %c0_i32 = arith.constant 0 : i32
    %c0_i32_0 = arith.constant 0 : i32
    %c0_i32_1 = arith.constant 0 : i32
    return %c0_i32, %c0_i32_0 : i32, i32
  }
  func.func @transform_5(%arg0: i32) -> (i32, i32) {
    %c0_i32 = arith.constant 0 : i32
    %c0_i32_0 = arith.constant 0 : i32
    %c0_i32_1 = arith.constant 0 : i32
    return %c0_i32, %c0_i32_0 : i32, i32
  }
  func.func @transform_6(%arg0: i32) -> (i32, i32) {
    %c0_i32 = arith.constant 0 : i32
    %c0_i32_0 = arith.constant 0 : i32
    %c0_i32_1 = arith.constant 0 : i32
    return %c0_i32, %c0_i32_0 : i32, i32
  }
  func.func @transform_7(%arg0: i32) -> (i32, i32) {
    %c0_i32 = arith.constant 0 : i32
    %c0_i32_0 = arith.constant 0 : i32
    %c0_i32_1 = arith.constant 0 : i32
    return %c0_i32, %c0_i32_0 : i32, i32
  }
  func.func @transform_8(%arg0: i32) -> (i32, i32) {
    %c0_i32 = arith.constant 0 : i32
    %c0_i32_0 = arith.constant 0 : i32
    %c0_i32_1 = arith.constant 0 : i32
    return %c0_i32, %c0_i32_0 : i32, i32
  }
  func.func @transform_9(%arg0: i32) -> (i32, i32) {
    %c0_i32 = arith.constant 0 : i32
    %c0_i32_0 = arith.constant 0 : i32
    %c0_i32_1 = arith.constant 0 : i32
    return %c0_i32, %c0_i32_0 : i32, i32
  }
  func.func @transform_10(%arg0: i32) -> (i32, i32) {
    %c0_i32 = arith.constant 0 : i32
    %c0_i32_0 = arith.constant 0 : i32
    %c0_i32_1 = arith.constant 0 : i32
    return %c0_i32, %c0_i32_0 : i32, i32
  }
  func.func @transform_11(%arg0: i32) -> (i32, i32) {
    %c0_i32 = arith.constant 0 : i32
    %c0_i32_0 = arith.constant 0 : i32
    %c0_i32_1 = arith.constant 0 : i32
    return %c0_i32, %c0_i32_0 : i32, i32
  }
  func.func @transform_12(%arg0: i32) -> (i32, i32) {
    %c0_i32 = arith.constant 0 : i32
    %c0_i32_0 = arith.constant 0 : i32
    %c0_i32_1 = arith.constant 0 : i32
    return %c0_i32, %c0_i32_0 : i32, i32
  }
  func.func @transform_13(%arg0: i32) -> (i32, i32) {
    %c0_i32 = arith.constant 0 : i32
    %c0_i32_0 = arith.constant 0 : i32
    %c0_i32_1 = arith.constant 0 : i32
    return %c0_i32, %c0_i32_0 : i32, i32
  }
  func.func @transform_14(%arg0: i32) -> (i32, i32) {
    %c0_i32 = arith.constant 0 : i32
    %c0_i32_0 = arith.constant 0 : i32
    %c0_i32_1 = arith.constant 0 : i32
    return %c0_i32, %c0_i32_0 : i32, i32
  }
  func.func @transform_15(%arg0: i32) -> (i32, i32) {
    %c0_i32 = arith.constant 0 : i32
    %c0_i32_0 = arith.constant 0 : i32
    %c0_i32_1 = arith.constant 0 : i32
    return %c0_i32, %c0_i32_0 : i32, i32
  }
  func.func @transform_16(%arg0: i32) -> (i32, i32) {
    %c0_i32 = arith.constant 0 : i32
    %c0_i32_0 = arith.constant 0 : i32
    %c0_i32_1 = arith.constant 0 : i32
    return %c0_i32, %c0_i32_0 : i32, i32
  }
  func.func @transform_17(%arg0: i32) -> (i32, i32) {
    %c0_i32 = arith.constant 0 : i32
    %c0_i32_0 = arith.constant 0 : i32
    %c0_i32_1 = arith.constant 0 : i32
    return %c0_i32, %c0_i32_0 : i32, i32
  }
  func.func @transform_18(%arg0: i32) -> (i32, i32) {
    %c0_i32 = arith.constant 0 : i32
    %c0_i32_0 = arith.constant 0 : i32
    %c0_i32_1 = arith.constant 0 : i32
    return %c0_i32, %c0_i32_0 : i32, i32
  }
  func.func @transform_19(%arg0: i32) -> (i32, i32) {
    %c0_i32 = arith.constant 0 : i32
    %c0_i32_0 = arith.constant 0 : i32
    %c0_i32_1 = arith.constant 0 : i32
    return %c0_i32, %c0_i32_0 : i32, i32
  }
  func.func @transform_20(%arg0: i32) -> (i32, i32, i32) {
    %c0_i32 = arith.constant 0 : i32
    %c0_i32_0 = arith.constant 0 : i32
    %c0_i32_1 = arith.constant 0 : i32
    return %arg0, %c0_i32, %c0_i32_0 : i32, i32, i32
  }
  func.func @transform_21(%arg0: i32) -> (i32, i32, i32, i32) {
    %c0_i32 = arith.constant 0 : i32
    %c0_i32_0 = arith.constant 0 : i32
    %c0_i32_1 = arith.constant 0 : i32
    %c0_i32_2 = arith.constant 0 : i32
    return %arg0, %c0_i32, %c0_i32_0, %c0_i32_1 : i32, i32, i32, i32
  }
  func.func @transform_22(%arg0: i32) -> (i32, i32, i32, i32) {
    %c0_i32 = arith.constant 0 : i32
    %c0_i32_0 = arith.constant 0 : i32
    %c0_i32_1 = arith.constant 0 : i32
    %c0_i32_2 = arith.constant 0 : i32
    return %arg0, %c0_i32, %c0_i32_0, %c0_i32_1 : i32, i32, i32, i32
  }
}

module attributes {stable_mosaic.version = 11 : i64} {
  func.func @_decoder_layer_kernel(%arg0: i32, %arg1: memref<1x8x32xf32, #tpu.memory_space<vmem>>, %arg2: memref<1x16x32xf32, #tpu.memory_space<vmem>>, %arg3: memref<1x16x32xf32, #tpu.memory_space<vmem>>, %arg4: memref<1x32xf32, #tpu.memory_space<vmem>>, %arg5: memref<1x32xf32, #tpu.memory_space<vmem>>, %arg6: memref<32x48xf32, #tpu.memory_space<vmem>>, %arg7: memref<16x32xf32, #tpu.memory_space<vmem>>, %arg8: memref<1x32xf32, #tpu.memory_space<vmem>>, %arg9: memref<1x32xf32, #tpu.memory_space<vmem>>, %arg10: memref<1x32xf32, #tpu.memory_space<vmem>>, %arg11: memref<32x16xf32, #tpu.memory_space<vmem>>, %arg12: memref<32x32xf32, #tpu.memory_space<vmem>>, %arg13: memref<16x32xf32, #tpu.memory_space<vmem>>, %arg14: memref<1x32xf32, #tpu.memory_space<vmem>>, %arg15: memref<1x32xf32, #tpu.memory_space<vmem>>, %arg16: memref<1x32xf32, #tpu.memory_space<vmem>>, %arg17: memref<32x64xf32, #tpu.memory_space<vmem>>, %arg18: memref<1x64xf32, #tpu.memory_space<vmem>>, %arg19: memref<64x32xf32, #tpu.memory_space<vmem>>, %arg20: memref<1x32xf32, #tpu.memory_space<vmem>>, %arg21: memref<1x8x32xf32, #tpu.memory_space<vmem>>, %arg22: memref<1x2x8x8xf32, #tpu.memory_space<vmem>>, %arg23: memref<1x2x8x16xf32, #tpu.memory_space<vmem>>) attributes {dimension_semantics = [#tpu.dimension_semantics<parallel>], iteration_bounds = array<i64: 2>, scalar_prefetch = 0 : i64, scratch_operands = 0 : i64, tpu.core_type = #tpu.core_type<tc>, window_params = [{transform_indices = @transform_0, window_bounds = array<i64: 1, 8, 32>}, {transform_indices = @transform_1, window_bounds = array<i64: 1, 16, 32>}, {transform_indices = @transform_2, window_bounds = array<i64: 1, 16, 32>}, {pipeline_mode = #tpu.pipeline_mode<synchronous>, transform_indices = @transform_3, window_bounds = array<i64: 1, 32>}, {pipeline_mode = #tpu.pipeline_mode<synchronous>, transform_indices = @transform_4, window_bounds = array<i64: 1, 32>}, {pipeline_mode = #tpu.pipeline_mode<synchronous>, transform_indices = @transform_5, window_bounds = array<i64: 32, 48>}, {pipeline_mode = #tpu.pipeline_mode<synchronous>, transform_indices = @transform_6, window_bounds = array<i64: 16, 32>}, {pipeline_mode = #tpu.pipeline_mode<synchronous>, transform_indices = @transform_7, window_bounds = array<i64: 1, 32>}, {pipeline_mode = #tpu.pipeline_mode<synchronous>, transform_indices = @transform_8, window_bounds = array<i64: 1, 32>}, {pipeline_mode = #tpu.pipeline_mode<synchronous>, transform_indices = @transform_9, window_bounds = array<i64: 1, 32>}, {pipeline_mode = #tpu.pipeline_mode<synchronous>, transform_indices = @transform_10, window_bounds = array<i64: 32, 16>}, {pipeline_mode = #tpu.pipeline_mode<synchronous>, transform_indices = @transform_11, window_bounds = array<i64: 32, 32>}, {pipeline_mode = #tpu.pipeline_mode<synchronous>, transform_indices = @transform_12, window_bounds = array<i64: 16, 32>}, {pipeline_mode = #tpu.pipeline_mode<synchronous>, transform_indices = @transform_13, window_bounds = array<i64: 1, 32>}, {pipeline_mode = #tpu.pipeline_mode<synchronous>, transform_indices = @transform_14, window_bounds = array<i64: 1, 32>}, {pipeline_mode = #tpu.pipeline_mode<synchronous>, transform_indices = @transform_15, window_bounds = array<i64: 1, 32>}, {pipeline_mode = #tpu.pipeline_mode<synchronous>, transform_indices = @transform_16, window_bounds = array<i64: 32, 64>}, {pipeline_mode = #tpu.pipeline_mode<synchronous>, transform_indices = @transform_17, window_bounds = array<i64: 1, 64>}, {pipeline_mode = #tpu.pipeline_mode<synchronous>, transform_indices = @transform_18, window_bounds = array<i64: 64, 32>}, {pipeline_mode = #tpu.pipeline_mode<synchronous>, transform_indices = @transform_19, window_bounds = array<i64: 1, 32>}, {transform_indices = @transform_20, window_bounds = array<i64: 1, 8, 32>}, {transform_indices = @transform_21, window_bounds = array<i64: 1, 2, 8, 8>}, {transform_indices = @transform_22, window_bounds = array<i64: 1, 2, 8, 16>}]} {
    %c0 = arith.constant 0 : index
    %c0_0 = arith.constant 0 : index
    %c0_1 = arith.constant 0 : index
    %0 = vector.load %arg1[%c0, %c0_0, %c0_1] : memref<1x8x32xf32, #tpu.memory_space<vmem>>, vector<1x8x32xf32>
    %1 = vector.shape_cast %0 : vector<1x8x32xf32> to vector<8x32xf32>
    %c0_2 = arith.constant 0 : index
    %c0_3 = arith.constant 0 : index
    %c0_4 = arith.constant 0 : index
    %2 = vector.load %arg2[%c0_2, %c0_3, %c0_4] : memref<1x16x32xf32, #tpu.memory_space<vmem>>, vector<1x16x32xf32>
    %3 = vector.shape_cast %2 : vector<1x16x32xf32> to vector<16x32xf32>
    %c0_5 = arith.constant 0 : index
    %c0_6 = arith.constant 0 : index
    %c0_7 = arith.constant 0 : index
    %4 = vector.load %arg3[%c0_5, %c0_6, %c0_7] : memref<1x16x32xf32, #tpu.memory_space<vmem>>, vector<1x16x32xf32>
    %5 = vector.shape_cast %4 : vector<1x16x32xf32> to vector<16x32xf32>
    %cst = arith.constant dense<0.000000e+00> : vector<8xf32>
    %6 = vector.multi_reduction <add>, %1, %cst [1] : vector<8x32xf32> to vector<8xf32>
    %7 = vector.shape_cast %6 : vector<8xf32> to vector<8x1xf32>
    %cst_8 = arith.constant 3.200000e+01 : f32
    %8 = vector.broadcast %cst_8 : f32 to vector<8x1xf32>
    %9 = arith.divf %7, %8 : vector<8x1xf32>
    %10 = vector.broadcast %9 : vector<8x1xf32> to vector<8x32xf32>
    %11 = arith.subf %1, %10 : vector<8x32xf32>
    %12 = arith.mulf %11, %11 : vector<8x32xf32>
    %cst_9 = arith.constant dense<0.000000e+00> : vector<8xf32>
    %13 = vector.multi_reduction <add>, %12, %cst_9 [1] : vector<8x32xf32> to vector<8xf32>
    %14 = vector.shape_cast %13 : vector<8xf32> to vector<8x1xf32>
    %cst_10 = arith.constant 3.200000e+01 : f32
    %15 = vector.broadcast %cst_10 : f32 to vector<8x1xf32>
    %16 = arith.divf %14, %15 : vector<8x1xf32>
    %17 = vector.broadcast %9 : vector<8x1xf32> to vector<8x32xf32>
    %18 = arith.subf %1, %17 : vector<8x32xf32>
    %cst_11 = arith.constant 9.99999974E-6 : f32
    %19 = vector.broadcast %cst_11 : f32 to vector<8x1xf32>
    %20 = arith.addf %16, %19 : vector<8x1xf32>
    %21 = math.rsqrt %20 : vector<8x1xf32>
    %22 = vector.broadcast %21 : vector<8x1xf32> to vector<8x32xf32>
    %23 = arith.mulf %18, %22 : vector<8x32xf32>
    %c0_12 = arith.constant 0 : index
    %c0_13 = arith.constant 0 : index
    %24 = vector.load %arg4[%c0_12, %c0_13] : memref<1x32xf32, #tpu.memory_space<vmem>>, vector<1x32xf32>
    %25 = vector.broadcast %24 : vector<1x32xf32> to vector<8x32xf32>
    %26 = arith.mulf %23, %25 : vector<8x32xf32>
    %c0_14 = arith.constant 0 : index
    %c0_15 = arith.constant 0 : index
    %27 = vector.load %arg5[%c0_14, %c0_15] : memref<1x32xf32, #tpu.memory_space<vmem>>, vector<1x32xf32>
    %28 = vector.broadcast %27 : vector<1x32xf32> to vector<8x32xf32>
    %29 = arith.addf %26, %28 : vector<8x32xf32>
    %c0_16 = arith.constant 0 : index
    %c0_17 = arith.constant 0 : index
    %30 = vector.load %arg6[%c0_16, %c0_17] : memref<32x48xf32, #tpu.memory_space<vmem>>, vector<32x48xf32>
    %cst_18 = arith.constant dense<0.000000e+00> : vector<8x48xf32>
    %31 = tpu.matmul %29, %30, %cst_18 {dimension_numbers = #tpu.dot_dimension_numbers<[1], [0], [0], [1], [0, 0, 1, 1], [], []>} : vector<8x32xf32>, vector<32x48xf32>, vector<8x48xf32> -> vector<8x48xf32>
    %32 = vector.extract_strided_slice %31 {offsets = [0, 0], sizes = [8, 16], strides = [1, 1]} : vector<8x48xf32> to vector<8x16xf32>
    %33 = vector.extract_strided_slice %31 {offsets = [0, 16], sizes = [8, 16], strides = [1, 1]} : vector<8x48xf32> to vector<8x16xf32>
    %34 = vector.extract_strided_slice %31 {offsets = [0, 32], sizes = [8, 16], strides = [1, 1]} : vector<8x48xf32> to vector<8x16xf32>
    %35 = vector.extract_strided_slice %32 {offsets = [0, 0], sizes = [8, 8], strides = [1, 1]} : vector<8x16xf32> to vector<8x8xf32>
    %36 = vector.extract_strided_slice %33 {offsets = [0, 0], sizes = [8, 8], strides = [1, 1]} : vector<8x16xf32> to vector<8x8xf32>
    %cst_19 = arith.constant dense<0.000000e+00> : vector<8x8xf32>
    %37 = tpu.matmul %35, %36, %cst_19 {dimension_numbers = #tpu.dot_dimension_numbers<[1], [1], [0], [0], [0, 0, 1, 0], [], []>} : vector<8x8xf32>, vector<8x8xf32>, vector<8x8xf32> -> vector<8x8xf32>
    %cst_20 = arith.constant 0.353553385 : f32
    %38 = vector.broadcast %cst_20 : f32 to vector<8x8xf32>
    %39 = arith.mulf %37, %38 : vector<8x8xf32>
    %cst_21 = arith.constant dense<0xFF800000> : vector<8xf32>
    %40 = vector.multi_reduction <maximumf>, %39, %cst_21 [1] : vector<8x8xf32> to vector<8xf32>
    %41 = vector.shape_cast %40 : vector<8xf32> to vector<8x1xf32>
    %42 = vector.broadcast %41 : vector<8x1xf32> to vector<8x8xf32>
    %43 = arith.subf %39, %42 : vector<8x8xf32>
    %44 = math.exp %43 : vector<8x8xf32>
    %cst_22 = arith.constant dense<0.000000e+00> : vector<8xf32>
    %45 = vector.multi_reduction <add>, %44, %cst_22 [1] : vector<8x8xf32> to vector<8xf32>
    %46 = vector.shape_cast %45 : vector<8xf32> to vector<8x1xf32>
    %47 = tpu.reciprocal %46 {approx = true} : vector<8x1xf32> -> vector<8x1xf32>
    %48 = vector.broadcast %47 : vector<8x1xf32> to vector<8x8xf32>
    %49 = arith.mulf %44, %48 : vector<8x8xf32>
    %c0_23 = arith.constant 0 : index
    %c0_24 = arith.constant 0 : index
    %c0_25 = arith.constant 0 : index
    %c0_26 = arith.constant 0 : index
    %50 = vector.load %arg22[%c0_23, %c0_24, %c0_25, %c0_26] : memref<1x2x8x8xf32, #tpu.memory_space<vmem>>, vector<1x1x8x8xf32>
    %51 = vector.shape_cast %50 : vector<1x1x8x8xf32> to vector<8x8xf32>
    %52 = vector.shape_cast %49 : vector<8x8xf32> to vector<1x1x8x8xf32>
    tpu.vector_store %arg22[%c0_23, %c0_24, %c0_25, %c0_26], %52 {strides = array<i32>} : memref<1x2x8x8xf32, #tpu.memory_space<vmem>>, vector<1x1x8x8xf32>,
    %53 = vector.extract_strided_slice %34 {offsets = [0, 0], sizes = [8, 8], strides = [1, 1]} : vector<8x16xf32> to vector<8x8xf32>
    %cst_27 = arith.constant dense<0.000000e+00> : vector<8x8xf32>
    %54 = tpu.matmul %49, %53, %cst_27 {dimension_numbers = #tpu.dot_dimension_numbers<[1], [0], [0], [1], [0, 0, 1, 1], [], []>} : vector<8x8xf32>, vector<8x8xf32>, vector<8x8xf32> -> vector<8x8xf32>
    %55 = vector.extract_strided_slice %32 {offsets = [0, 8], sizes = [8, 8], strides = [1, 1]} : vector<8x16xf32> to vector<8x8xf32>
    %56 = vector.extract_strided_slice %33 {offsets = [0, 8], sizes = [8, 8], strides = [1, 1]} : vector<8x16xf32> to vector<8x8xf32>
    %cst_28 = arith.constant dense<0.000000e+00> : vector<8x8xf32>
    %57 = tpu.matmul %55, %56, %cst_28 {dimension_numbers = #tpu.dot_dimension_numbers<[1], [1], [0], [0], [0, 0, 1, 0], [], []>} : vector<8x8xf32>, vector<8x8xf32>, vector<8x8xf32> -> vector<8x8xf32>
    %cst_29 = arith.constant 0.353553385 : f32
    %58 = vector.broadcast %cst_29 : f32 to vector<8x8xf32>
    %59 = arith.mulf %57, %58 : vector<8x8xf32>
    %cst_30 = arith.constant dense<0xFF800000> : vector<8xf32>
    %60 = vector.multi_reduction <maximumf>, %59, %cst_30 [1] : vector<8x8xf32> to vector<8xf32>
    %61 = vector.shape_cast %60 : vector<8xf32> to vector<8x1xf32>
    %62 = vector.broadcast %61 : vector<8x1xf32> to vector<8x8xf32>
    %63 = arith.subf %59, %62 : vector<8x8xf32>
    %64 = math.exp %63 : vector<8x8xf32>
    %cst_31 = arith.constant dense<0.000000e+00> : vector<8xf32>
    %65 = vector.multi_reduction <add>, %64, %cst_31 [1] : vector<8x8xf32> to vector<8xf32>
    %66 = vector.shape_cast %65 : vector<8xf32> to vector<8x1xf32>
    %67 = tpu.reciprocal %66 {approx = true} : vector<8x1xf32> -> vector<8x1xf32>
    %68 = vector.broadcast %67 : vector<8x1xf32> to vector<8x8xf32>
    %69 = arith.mulf %64, %68 : vector<8x8xf32>
    %c0_32 = arith.constant 0 : index
    %c1 = arith.constant 1 : index
    %c0_33 = arith.constant 0 : index
    %c0_34 = arith.constant 0 : index
    %70 = vector.load %arg22[%c0_32, %c1, %c0_33, %c0_34] : memref<1x2x8x8xf32, #tpu.memory_space<vmem>>, vector<1x1x8x8xf32>
    %71 = vector.shape_cast %70 : vector<1x1x8x8xf32> to vector<8x8xf32>
    %72 = vector.shape_cast %69 : vector<8x8xf32> to vector<1x1x8x8xf32>
    tpu.vector_store %arg22[%c0_32, %c1, %c0_33, %c0_34], %72 {strides = array<i32>} : memref<1x2x8x8xf32, #tpu.memory_space<vmem>>, vector<1x1x8x8xf32>,
    %73 = vector.extract_strided_slice %34 {offsets = [0, 8], sizes = [8, 8], strides = [1, 1]} : vector<8x16xf32> to vector<8x8xf32>
    %cst_35 = arith.constant dense<0.000000e+00> : vector<8x8xf32>
    %74 = tpu.matmul %69, %73, %cst_35 {dimension_numbers = #tpu.dot_dimension_numbers<[1], [0], [0], [1], [0, 0, 1, 1], [], []>} : vector<8x8xf32>, vector<8x8xf32>, vector<8x8xf32> -> vector<8x8xf32>
    %75 = tpu.concatenate %54, %74 in 1 : vector<8x8xf32>, vector<8x8xf32> -> vector<8x16xf32>
    %c0_36 = arith.constant 0 : index
    %c0_37 = arith.constant 0 : index
    %76 = vector.load %arg7[%c0_36, %c0_37] : memref<16x32xf32, #tpu.memory_space<vmem>>, vector<16x32xf32>
    %cst_38 = arith.constant dense<0.000000e+00> : vector<8x32xf32>
    %77 = tpu.matmul %75, %76, %cst_38 {dimension_numbers = #tpu.dot_dimension_numbers<[1], [0], [0], [1], [0, 0, 1, 1], [], []>} : vector<8x16xf32>, vector<16x32xf32>, vector<8x32xf32> -> vector<8x32xf32>
    %78 = arith.addf %1, %77 : vector<8x32xf32>
    %c0_39 = arith.constant 0 : index
    %c0_40 = arith.constant 0 : index
    %79 = vector.load %arg8[%c0_39, %c0_40] : memref<1x32xf32, #tpu.memory_space<vmem>>, vector<1x32xf32>
    %80 = vector.broadcast %79 : vector<1x32xf32> to vector<8x32xf32>
    %81 = arith.addf %78, %80 : vector<8x32xf32>
    %cst_41 = arith.constant dense<0.000000e+00> : vector<8xf32>
    %82 = vector.multi_reduction <add>, %81, %cst_41 [1] : vector<8x32xf32> to vector<8xf32>
    %83 = vector.shape_cast %82 : vector<8xf32> to vector<8x1xf32>
    %cst_42 = arith.constant 3.200000e+01 : f32
    %84 = vector.broadcast %cst_42 : f32 to vector<8x1xf32>
    %85 = arith.divf %83, %84 : vector<8x1xf32>
    %86 = vector.broadcast %85 : vector<8x1xf32> to vector<8x32xf32>
    %87 = arith.subf %81, %86 : vector<8x32xf32>
    %88 = arith.mulf %87, %87 : vector<8x32xf32>
    %cst_43 = arith.constant dense<0.000000e+00> : vector<8xf32>
    %89 = vector.multi_reduction <add>, %88, %cst_43 [1] : vector<8x32xf32> to vector<8xf32>
    %90 = vector.shape_cast %89 : vector<8xf32> to vector<8x1xf32>
    %cst_44 = arith.constant 3.200000e+01 : f32
    %91 = vector.broadcast %cst_44 : f32 to vector<8x1xf32>
    %92 = arith.divf %90, %91 : vector<8x1xf32>
    %93 = vector.broadcast %85 : vector<8x1xf32> to vector<8x32xf32>
    %94 = arith.subf %81, %93 : vector<8x32xf32>
    %cst_45 = arith.constant 9.99999974E-6 : f32
    %95 = vector.broadcast %cst_45 : f32 to vector<8x1xf32>
    %96 = arith.addf %92, %95 : vector<8x1xf32>
    %97 = math.rsqrt %96 : vector<8x1xf32>
    %98 = vector.broadcast %97 : vector<8x1xf32> to vector<8x32xf32>
    %99 = arith.mulf %94, %98 : vector<8x32xf32>
    %c0_46 = arith.constant 0 : index
    %c0_47 = arith.constant 0 : index
    %100 = vector.load %arg9[%c0_46, %c0_47] : memref<1x32xf32, #tpu.memory_space<vmem>>, vector<1x32xf32>
    %101 = vector.broadcast %100 : vector<1x32xf32> to vector<8x32xf32>
    %102 = arith.mulf %99, %101 : vector<8x32xf32>
    %c0_48 = arith.constant 0 : index
    %c0_49 = arith.constant 0 : index
    %103 = vector.load %arg10[%c0_48, %c0_49] : memref<1x32xf32, #tpu.memory_space<vmem>>, vector<1x32xf32>
    %104 = vector.broadcast %103 : vector<1x32xf32> to vector<8x32xf32>
    %105 = arith.addf %102, %104 : vector<8x32xf32>
    %c0_50 = arith.constant 0 : index
    %c0_51 = arith.constant 0 : index
    %106 = vector.load %arg11[%c0_50, %c0_51] : memref<32x16xf32, #tpu.memory_space<vmem>>, vector<32x16xf32>
    %cst_52 = arith.constant dense<0.000000e+00> : vector<8x16xf32>
    %107 = tpu.matmul %105, %106, %cst_52 {dimension_numbers = #tpu.dot_dimension_numbers<[1], [0], [0], [1], [0, 0, 1, 1], [], []>} : vector<8x32xf32>, vector<32x16xf32>, vector<8x16xf32> -> vector<8x16xf32>
    %c0_53 = arith.constant 0 : index
    %c0_54 = arith.constant 0 : index
    %108 = vector.load %arg12[%c0_53, %c0_54] : memref<32x32xf32, #tpu.memory_space<vmem>>, vector<32x32xf32>
    %cst_55 = arith.constant dense<0.000000e+00> : vector<16x32xf32>
    %109 = tpu.matmul %3, %108, %cst_55 {dimension_numbers = #tpu.dot_dimension_numbers<[1], [0], [0], [1], [0, 0, 1, 1], [], []>} : vector<16x32xf32>, vector<32x32xf32>, vector<16x32xf32> -> vector<16x32xf32>
    %110 = vector.extract_strided_slice %109 {offsets = [0, 0], sizes = [16, 16], strides = [1, 1]} : vector<16x32xf32> to vector<16x16xf32>
    %111 = vector.extract_strided_slice %109 {offsets = [0, 16], sizes = [16, 16], strides = [1, 1]} : vector<16x32xf32> to vector<16x16xf32>
    %c0_56 = arith.constant 0 : index
    %c0_57 = arith.constant 0 : index
    %112 = vector.load %arg12[%c0_56, %c0_57] : memref<32x32xf32, #tpu.memory_space<vmem>>, vector<32x16xf32>
    %cst_58 = arith.constant dense<0.000000e+00> : vector<16x16xf32>
    %113 = tpu.matmul %5, %112, %cst_58 {dimension_numbers = #tpu.dot_dimension_numbers<[1], [0], [0], [1], [0, 0, 1, 1], [], []>} : vector<16x32xf32>, vector<32x16xf32>, vector<16x16xf32> -> vector<16x16xf32>
    %114 = arith.addf %110, %113 : vector<16x16xf32>
    %115 = vector.extract_strided_slice %107 {offsets = [0, 0], sizes = [8, 8], strides = [1, 1]} : vector<8x16xf32> to vector<8x8xf32>
    %116 = vector.extract_strided_slice %114 {offsets = [0, 0], sizes = [16, 8], strides = [1, 1]} : vector<16x16xf32> to vector<16x8xf32>
    %cst_59 = arith.constant dense<0.000000e+00> : vector<8x16xf32>
    %117 = tpu.matmul %115, %116, %cst_59 {dimension_numbers = #tpu.dot_dimension_numbers<[1], [1], [0], [0], [0, 0, 1, 0], [], []>} : vector<8x8xf32>, vector<16x8xf32>, vector<8x16xf32> -> vector<8x16xf32>
    %cst_60 = arith.constant 0.353553385 : f32
    %118 = vector.broadcast %cst_60 : f32 to vector<8x16xf32>
    %119 = arith.mulf %117, %118 : vector<8x16xf32>
    %cst_61 = arith.constant dense<0xFF800000> : vector<8xf32>
    %120 = vector.multi_reduction <maximumf>, %119, %cst_61 [1] : vector<8x16xf32> to vector<8xf32>
    %121 = vector.shape_cast %120 : vector<8xf32> to vector<8x1xf32>
    %122 = vector.broadcast %121 : vector<8x1xf32> to vector<8x16xf32>
    %123 = arith.subf %119, %122 : vector<8x16xf32>
    %124 = math.exp %123 : vector<8x16xf32>
    %cst_62 = arith.constant dense<0.000000e+00> : vector<8xf32>
    %125 = vector.multi_reduction <add>, %124, %cst_62 [1] : vector<8x16xf32> to vector<8xf32>
    %126 = vector.shape_cast %125 : vector<8xf32> to vector<8x1xf32>
    %127 = tpu.reciprocal %126 {approx = true} : vector<8x1xf32> -> vector<8x1xf32>
    %128 = vector.broadcast %127 : vector<8x1xf32> to vector<8x16xf32>
    %129 = arith.mulf %124, %128 : vector<8x16xf32>
    %c0_63 = arith.constant 0 : index
    %c0_64 = arith.constant 0 : index
    %c0_65 = arith.constant 0 : index
    %c0_66 = arith.constant 0 : index
    %130 = vector.load %arg23[%c0_63, %c0_64, %c0_65, %c0_66] : memref<1x2x8x16xf32, #tpu.memory_space<vmem>>, vector<1x1x8x16xf32>
    %131 = vector.shape_cast %130 : vector<1x1x8x16xf32> to vector<8x16xf32>
    %132 = vector.shape_cast %129 : vector<8x16xf32> to vector<1x1x8x16xf32>
    tpu.vector_store %arg23[%c0_63, %c0_64, %c0_65, %c0_66], %132 {strides = array<i32>} : memref<1x2x8x16xf32, #tpu.memory_space<vmem>>, vector<1x1x8x16xf32>,
    %133 = vector.extract_strided_slice %111 {offsets = [0, 0], sizes = [16, 8], strides = [1, 1]} : vector<16x16xf32> to vector<16x8xf32>
    %cst_67 = arith.constant dense<0.000000e+00> : vector<8x8xf32>
    %134 = tpu.matmul %129, %133, %cst_67 {dimension_numbers = #tpu.dot_dimension_numbers<[1], [0], [0], [1], [0, 0, 1, 1], [], []>} : vector<8x16xf32>, vector<16x8xf32>, vector<8x8xf32> -> vector<8x8xf32>
    %135 = vector.extract_strided_slice %107 {offsets = [0, 8], sizes = [8, 8], strides = [1, 1]} : vector<8x16xf32> to vector<8x8xf32>
    %136 = vector.extract_strided_slice %114 {offsets = [0, 8], sizes = [16, 8], strides = [1, 1]} : vector<16x16xf32> to vector<16x8xf32>
    %cst_68 = arith.constant dense<0.000000e+00> : vector<8x16xf32>
    %137 = tpu.matmul %135, %136, %cst_68 {dimension_numbers = #tpu.dot_dimension_numbers<[1], [1], [0], [0], [0, 0, 1, 0], [], []>} : vector<8x8xf32>, vector<16x8xf32>, vector<8x16xf32> -> vector<8x16xf32>
    %cst_69 = arith.constant 0.353553385 : f32
    %138 = vector.broadcast %cst_69 : f32 to vector<8x16xf32>
    %139 = arith.mulf %137, %138 : vector<8x16xf32>
    %cst_70 = arith.constant dense<0xFF800000> : vector<8xf32>
    %140 = vector.multi_reduction <maximumf>, %139, %cst_70 [1] : vector<8x16xf32> to vector<8xf32>
    %141 = vector.shape_cast %140 : vector<8xf32> to vector<8x1xf32>
    %142 = vector.broadcast %141 : vector<8x1xf32> to vector<8x16xf32>
    %143 = arith.subf %139, %142 : vector<8x16xf32>
    %144 = math.exp %143 : vector<8x16xf32>
    %cst_71 = arith.constant dense<0.000000e+00> : vector<8xf32>
    %145 = vector.multi_reduction <add>, %144, %cst_71 [1] : vector<8x16xf32> to vector<8xf32>
    %146 = vector.shape_cast %145 : vector<8xf32> to vector<8x1xf32>
    %147 = tpu.reciprocal %146 {approx = true} : vector<8x1xf32> -> vector<8x1xf32>
    %148 = vector.broadcast %147 : vector<8x1xf32> to vector<8x16xf32>
    %149 = arith.mulf %144, %148 : vector<8x16xf32>
    %c0_72 = arith.constant 0 : index
    %c1_73 = arith.constant 1 : index
    %c0_74 = arith.constant 0 : index
    %c0_75 = arith.constant 0 : index
    %150 = vector.load %arg23[%c0_72, %c1_73, %c0_74, %c0_75] : memref<1x2x8x16xf32, #tpu.memory_space<vmem>>, vector<1x1x8x16xf32>
    %151 = vector.shape_cast %150 : vector<1x1x8x16xf32> to vector<8x16xf32>
    %152 = vector.shape_cast %149 : vector<8x16xf32> to vector<1x1x8x16xf32>
    tpu.vector_store %arg23[%c0_72, %c1_73, %c0_74, %c0_75], %152 {strides = array<i32>} : memref<1x2x8x16xf32, #tpu.memory_space<vmem>>, vector<1x1x8x16xf32>,
    %153 = vector.extract_strided_slice %111 {offsets = [0, 8], sizes = [16, 8], strides = [1, 1]} : vector<16x16xf32> to vector<16x8xf32>
    %cst_76 = arith.constant dense<0.000000e+00> : vector<8x8xf32>
    %154 = tpu.matmul %149, %153, %cst_76 {dimension_numbers = #tpu.dot_dimension_numbers<[1], [0], [0], [1], [0, 0, 1, 1], [], []>} : vector<8x16xf32>, vector<16x8xf32>, vector<8x8xf32> -> vector<8x8xf32>
    %155 = tpu.concatenate %134, %154 in 1 : vector<8x8xf32>, vector<8x8xf32> -> vector<8x16xf32>
    %c0_77 = arith.constant 0 : index
    %c0_78 = arith.constant 0 : index
    %156 = vector.load %arg13[%c0_77, %c0_78] : memref<16x32xf32, #tpu.memory_space<vmem>>, vector<16x32xf32>
    %cst_79 = arith.constant dense<0.000000e+00> : vector<8x32xf32>
    %157 = tpu.matmul %155, %156, %cst_79 {dimension_numbers = #tpu.dot_dimension_numbers<[1], [0], [0], [1], [0, 0, 1, 1], [], []>} : vector<8x16xf32>, vector<16x32xf32>, vector<8x32xf32> -> vector<8x32xf32>
    %158 = arith.addf %81, %157 : vector<8x32xf32>
    %c0_80 = arith.constant 0 : index
    %c0_81 = arith.constant 0 : index
    %159 = vector.load %arg14[%c0_80, %c0_81] : memref<1x32xf32, #tpu.memory_space<vmem>>, vector<1x32xf32>
    %160 = vector.broadcast %159 : vector<1x32xf32> to vector<8x32xf32>
    %161 = arith.addf %158, %160 : vector<8x32xf32>
    %cst_82 = arith.constant dense<0.000000e+00> : vector<8xf32>
    %162 = vector.multi_reduction <add>, %161, %cst_82 [1] : vector<8x32xf32> to vector<8xf32>
    %163 = vector.shape_cast %162 : vector<8xf32> to vector<8x1xf32>
    %cst_83 = arith.constant 3.200000e+01 : f32
    %164 = vector.broadcast %cst_83 : f32 to vector<8x1xf32>
    %165 = arith.divf %163, %164 : vector<8x1xf32>
    %166 = vector.broadcast %165 : vector<8x1xf32> to vector<8x32xf32>
    %167 = arith.subf %161, %166 : vector<8x32xf32>
    %168 = arith.mulf %167, %167 : vector<8x32xf32>
    %cst_84 = arith.constant dense<0.000000e+00> : vector<8xf32>
    %169 = vector.multi_reduction <add>, %168, %cst_84 [1] : vector<8x32xf32> to vector<8xf32>
    %170 = vector.shape_cast %169 : vector<8xf32> to vector<8x1xf32>
    %cst_85 = arith.constant 3.200000e+01 : f32
    %171 = vector.broadcast %cst_85 : f32 to vector<8x1xf32>
    %172 = arith.divf %170, %171 : vector<8x1xf32>
    %173 = vector.broadcast %165 : vector<8x1xf32> to vector<8x32xf32>
    %174 = arith.subf %161, %173 : vector<8x32xf32>
    %cst_86 = arith.constant 9.99999974E-6 : f32
    %175 = vector.broadcast %cst_86 : f32 to vector<8x1xf32>
    %176 = arith.addf %172, %175 : vector<8x1xf32>
    %177 = math.rsqrt %176 : vector<8x1xf32>
    %178 = vector.broadcast %177 : vector<8x1xf32> to vector<8x32xf32>
    %179 = arith.mulf %174, %178 : vector<8x32xf32>
    %c0_87 = arith.constant 0 : index
    %c0_88 = arith.constant 0 : index
    %180 = vector.load %arg15[%c0_87, %c0_88] : memref<1x32xf32, #tpu.memory_space<vmem>>, vector<1x32xf32>
    %181 = vector.broadcast %180 : vector<1x32xf32> to vector<8x32xf32>
    %182 = arith.mulf %179, %181 : vector<8x32xf32>
    %c0_89 = arith.constant 0 : index
    %c0_90 = arith.constant 0 : index
    %183 = vector.load %arg16[%c0_89, %c0_90] : memref<1x32xf32, #tpu.memory_space<vmem>>, vector<1x32xf32>
    %184 = vector.broadcast %183 : vector<1x32xf32> to vector<8x32xf32>
    %185 = arith.addf %182, %184 : vector<8x32xf32>
    %c0_91 = arith.constant 0 : index
    %c0_92 = arith.constant 0 : index
    %186 = vector.load %arg17[%c0_91, %c0_92] : memref<32x64xf32, #tpu.memory_space<vmem>>, vector<32x64xf32>
    %cst_93 = arith.constant dense<0.000000e+00> : vector<8x64xf32>
    %187 = tpu.matmul %185, %186, %cst_93 {dimension_numbers = #tpu.dot_dimension_numbers<[1], [0], [0], [1], [0, 0, 1, 1], [], []>} : vector<8x32xf32>, vector<32x64xf32>, vector<8x64xf32> -> vector<8x64xf32>
    %c0_94 = arith.constant 0 : index
    %c0_95 = arith.constant 0 : index
    %188 = vector.load %arg18[%c0_94, %c0_95] : memref<1x64xf32, #tpu.memory_space<vmem>>, vector<1x64xf32>
    %189 = vector.broadcast %188 : vector<1x64xf32> to vector<8x64xf32>
    %190 = arith.addf %187, %189 : vector<8x64xf32>
    %cst_96 = arith.constant 5.000000e-01 : f32
    %191 = vector.broadcast %cst_96 : f32 to vector<8x64xf32>
    %192 = arith.mulf %191, %190 : vector<8x64xf32>
    %cst_97 = arith.constant 0.707106769 : f32
    %193 = vector.broadcast %cst_97 : f32 to vector<8x64xf32>
    %194 = arith.mulf %190, %193 : vector<8x64xf32>
    %195 = math.erf %194 : vector<8x64xf32>
    %cst_98 = arith.constant 1.000000e+00 : f32
    %196 = vector.broadcast %cst_98 : f32 to vector<8x64xf32>
    %197 = arith.addf %196, %195 : vector<8x64xf32>
    %198 = arith.mulf %192, %197 : vector<8x64xf32>
    %c0_99 = arith.constant 0 : index
    %c0_100 = arith.constant 0 : index
    %199 = vector.load %arg19[%c0_99, %c0_100] : memref<64x32xf32, #tpu.memory_space<vmem>>, vector<64x32xf32>
    %cst_101 = arith.constant dense<0.000000e+00> : vector<8x32xf32>
    %200 = tpu.matmul %198, %199, %cst_101 {dimension_numbers = #tpu.dot_dimension_numbers<[1], [0], [0], [1], [0, 0, 1, 1], [], []>} : vector<8x64xf32>, vector<64x32xf32>, vector<8x32xf32> -> vector<8x32xf32>
    %c0_102 = arith.constant 0 : index
    %c0_103 = arith.constant 0 : index
    %201 = vector.load %arg20[%c0_102, %c0_103] : memref<1x32xf32, #tpu.memory_space<vmem>>, vector<1x32xf32>
    %202 = vector.broadcast %201 : vector<1x32xf32> to vector<8x32xf32>
    %203 = arith.addf %200, %202 : vector<8x32xf32>
    %204 = arith.addf %161, %203 : vector<8x32xf32>
    %c0_104 = arith.constant 0 : index
    %c0_105 = arith.constant 0 : index
    %c0_106 = arith.constant 0 : index
    %205 = vector.load %arg21[%c0_104, %c0_105, %c0_106] : memref<1x8x32xf32, #tpu.memory_space<vmem>>, vector<1x8x32xf32>
    %206 = vector.shape_cast %205 : vector<1x8x32xf32> to vector<8x32xf32>
    %207 = vector.shape_cast %204 : vector<8x32xf32> to vector<1x8x32xf32>
    tpu.vector_store %arg21[%c0_104, %c0_105, %c0_106], %207 {strides = array<i32>} : memref<1x8x32xf32, #tpu.memory_space<vmem>>, vector<1x8x32xf32>,
    return
  }
  func.func @transform_0(%arg0: i32) -> (i32, i32, i32) {
    %c0_i32 = arith.constant 0 : i32
    %c0_i32_0 = arith.constant 0 : i32
    %c0_i32_1 = arith.constant 0 : i32
    return %arg0, %c0_i32, %c0_i32_0 : i32, i32, i32
  }
  func.func @transform_1(%arg0: i32) -> (i32, i32, i32) {
    %c0_i32 = arith.constant 0 : i32
    %c0_i32_0 = arith.constant 0 : i32
    %c0_i32_1 = arith.constant 0 : i32
    return %arg0, %c0_i32, %c0_i32_0 : i32, i32, i32
  }
  func.func @transform_2(%arg0: i32) -> (i32, i32, i32) {
    %c0_i32 = arith.constant 0 : i32
    %c0_i32_0 = arith.constant 0 : i32
    %c0_i32_1 = arith.constant 0 : i32
    return %arg0, %c0_i32, %c0_i32_0 : i32, i32, i32
  }
  func.func @transform_3(%arg0: i32) -> (i32, i32) {
    %c0_i32 = arith.constant 0 : i32
    %c0_i32_0 = arith.constant 0 : i32
    %c0_i32_1 = arith.constant 0 : i32
    return %c0_i32, %c0_i32_0 : i32, i32
  }
  func.func @transform_4(%arg0: i32) -> (i32, i32) {
    %c0_i32 = arith.constant 0 : i32
    %c0_i32_0 = arith.constant 0 : i32
    %c0_i32_1 = arith.constant 0 : i32
    return %c0_i32, %c0_i32_0 : i32, i32
  }
  func.func @transform_5(%arg0: i32) -> (i32, i32) {
    %c0_i32 = arith.constant 0 : i32
    %c0_i32_0 = arith.constant 0 : i32
    %c0_i32_1 = arith.constant 0 : i32
    return %c0_i32, %c0_i32_0 : i32, i32
  }
  func.func @transform_6(%arg0: i32) -> (i32, i32) {
    %c0_i32 = arith.constant 0 : i32
    %c0_i32_0 = arith.constant 0 : i32
    %c0_i32_1 = arith.constant 0 : i32
    return %c0_i32, %c0_i32_0 : i32, i32
  }
  func.func @transform_7(%arg0: i32) -> (i32, i32) {
    %c0_i32 = arith.constant 0 : i32
    %c0_i32_0 = arith.constant 0 : i32
    %c0_i32_1 = arith.constant 0 : i32
    return %c0_i32, %c0_i32_0 : i32, i32
  }
  func.func @transform_8(%arg0: i32) -> (i32, i32) {
    %c0_i32 = arith.constant 0 : i32
    %c0_i32_0 = arith.constant 0 : i32
    %c0_i32_1 = arith.constant 0 : i32
    return %c0_i32, %c0_i32_0 : i32, i32
  }
  func.func @transform_9(%arg0: i32) -> (i32, i32) {
    %c0_i32 = arith.constant 0 : i32
    %c0_i32_0 = arith.constant 0 : i32
    %c0_i32_1 = arith.constant 0 : i32
    return %c0_i32, %c0_i32_0 : i32, i32
  }
  func.func @transform_10(%arg0: i32) -> (i32, i32) {
    %c0_i32 = arith.constant 0 : i32
    %c0_i32_0 = arith.constant 0 : i32
    %c0_i32_1 = arith.constant 0 : i32
    return %c0_i32, %c0_i32_0 : i32, i32
  }
  func.func @transform_11(%arg0: i32) -> (i32, i32) {
    %c0_i32 = arith.constant 0 : i32
    %c0_i32_0 = arith.constant 0 : i32
    %c0_i32_1 = arith.constant 0 : i32
    return %c0_i32, %c0_i32_0 : i32, i32
  }
  func.func @transform_12(%arg0: i32) -> (i32, i32) {
    %c0_i32 = arith.constant 0 : i32
    %c0_i32_0 = arith.constant 0 : i32
    %c0_i32_1 = arith.constant 0 : i32
    return %c0_i32, %c0_i32_0 : i32, i32
  }
  func.func @transform_13(%arg0: i32) -> (i32, i32) {
    %c0_i32 = arith.constant 0 : i32
    %c0_i32_0 = arith.constant 0 : i32
    %c0_i32_1 = arith.constant 0 : i32
    return %c0_i32, %c0_i32_0 : i32, i32
  }
  func.func @transform_14(%arg0: i32) -> (i32, i32) {
    %c0_i32 = arith.constant 0 : i32
    %c0_i32_0 = arith.constant 0 : i32
    %c0_i32_1 = arith.constant 0 : i32
    return %c0_i32, %c0_i32_0 : i32, i32
  }
  func.func @transform_15(%arg0: i32) -> (i32, i32) {
    %c0_i32 = arith.constant 0 : i32
    %c0_i32_0 = arith.constant 0 : i32
    %c0_i32_1 = arith.constant 0 : i32
    return %c0_i32, %c0_i32_0 : i32, i32
  }
  func.func @transform_16(%arg0: i32) -> (i32, i32) {
    %c0_i32 = arith.constant 0 : i32
    %c0_i32_0 = arith.constant 0 : i32
    %c0_i32_1 = arith.constant 0 : i32
    return %c0_i32, %c0_i32_0 : i32, i32
  }
  func.func @transform_17(%arg0: i32) -> (i32, i32) {
    %c0_i32 = arith.constant 0 : i32
    %c0_i32_0 = arith.constant 0 : i32
    %c0_i32_1 = arith.constant 0 : i32
    return %c0_i32, %c0_i32_0 : i32, i32
  }
  func.func @transform_18(%arg0: i32) -> (i32, i32) {
    %c0_i32 = arith.constant 0 : i32
    %c0_i32_0 = arith.constant 0 : i32
    %c0_i32_1 = arith.constant 0 : i32
    return %c0_i32, %c0_i32_0 : i32, i32
  }
  func.func @transform_19(%arg0: i32) -> (i32, i32) {
    %c0_i32 = arith.constant 0 : i32
    %c0_i32_0 = arith.constant 0 : i32
    %c0_i32_1 = arith.constant 0 : i32
    return %c0_i32, %c0_i32_0 : i32, i32
  }
  func.func @transform_20(%arg0: i32) -> (i32, i32, i32) {
    %c0_i32 = arith.constant 0 : i32
    %c0_i32_0 = arith.constant 0 : i32
    %c0_i32_1 = arith.constant 0 : i32
    return %arg0, %c0_i32, %c0_i32_0 : i32, i32, i32
  }
  func.func @transform_21(%arg0: i32) -> (i32, i32, i32, i32) {
    %c0_i32 = arith.constant 0 : i32
    %c0_i32_0 = arith.constant 0 : i32
    %c0_i32_1 = arith.constant 0 : i32
    %c0_i32_2 = arith.constant 0 : i32
    return %arg0, %c0_i32, %c0_i32_0, %c0_i32_1 : i32, i32, i32, i32
  }
  func.func @transform_22(%arg0: i32) -> (i32, i32, i32, i32) {
    %c0_i32 = arith.constant 0 : i32
    %c0_i32_0 = arith.constant 0 : i32
    %c0_i32_1 = arith.constant 0 : i32
    %c0_i32_2 = arith.constant 0 : i32
    return %arg0, %c0_i32, %c0_i32_0, %c0_i32_1 : i32, i32, i32, i32
  }
}

</mosaic_0001>

<bundles_post_ra>
// kernel: transformer_decoder.3
= control target key start
LH: loop header
LB: loop body
LE: loop exit
PB: predicated region body
PF: predicated region fallthrough
CT: control target
= control target key end

     0   :  { %s3504_s0 = inlined_call_operand.vmem [shape: f32[2,8,32], index: 0, kind: input, shape index: {}]   ;;  %s3505_s1 = inlined_call_operand.vmem [shape: f32[2,16,32], index: 1, kind: input, shape index: {}]   ;;  %s3506_s2 = inlined_call_operand.vmem [shape: f32[2,16,32], index: 2, kind: input, shape index: {}]   ;;  %s3507_s3 = inlined_call_operand.vmem [shape: f32[1,32], index: 3, kind: input, shape index: {}]   ;;  %s3508_s4 = inlined_call_operand.vmem [shape: f32[1,32], index: 4, kind: input, shape index: {}]   ;;  %s3509_s5 = inlined_call_operand.vmem [shape: f32[32,48], index: 5, kind: input, shape index: {}]   ;;  %s3510_s6 = inlined_call_operand.vmem [shape: f32[16,32], index: 6, kind: input, shape index: {}]   ;;  %s3511_s7 = inlined_call_operand.vmem [shape: f32[1,32], index: 7, kind: input, shape index: {}]   ;;  %s3512_s8 = inlined_call_operand.vmem [shape: f32[1,32], index: 8, kind: input, shape index: {}]   ;;  %s3513_s9 = inlined_call_operand.vmem [shape: f32[1,32], index: 9, kind: input, shape index: {}]   ;;  %s3514_s10 = inlined_call_operand.vmem [shape: f32[32,16], index: 10, kind: input, shape index: {}]   ;;  %s3515_s11 = inlined_call_operand.vmem [shape: f32[32,32], index: 11, kind: input, shape index: {}]   ;;  %s3516_s12 = inlined_call_operand.vmem [shape: f32[16,32], index: 12, kind: input, shape index: {}]   ;;  %s3517_s13 = inlined_call_operand.vmem [shape: f32[1,32], index: 13, kind: input, shape index: {}]   ;;  %s3518_s14 = inlined_call_operand.vmem [shape: f32[1,32], index: 14, kind: input, shape index: {}]   ;;  %s3519_s15 = inlined_call_operand.vmem [shape: f32[1,32], index: 15, kind: input, shape index: {}]   ;;  %s3520_s16 = inlined_call_operand.vmem [shape: f32[32,64], index: 16, kind: input, shape index: {}]   ;;  %s3521_s17 = inlined_call_operand.vmem [shape: f32[1,64], index: 17, kind: input, shape index: {}]   ;;  %s3522_s18 = inlined_call_operand.vmem [shape: f32[64,32], index: 18, kind: input, shape index: {}]   ;;  %s3523_s19 = inlined_call_operand.vmem [shape: f32[1,32], index: 19, kind: input, shape index: {}]   ;;  %s3524_s20 = inlined_call_operand.hbm [shape: f32[2,8,32], index: 20, kind: output, shape index: {0}]   ;;  %s3525_s21 = inlined_call_operand.hbm [shape: f32[2,2,8,8], index: 21, kind: output, shape index: {1}]   ;;  %s3526_s22 = inlined_call_operand.hbm [shape: f32[2,2,8,16], index: 22, kind: output, shape index: {2}]  }
   0x1   :  { %3544 = sst [smem:[#allocation14_spill]] %s3504_s0 }
   0x2   :  { %3545 = sst [smem:[#allocation15_spill]] %s3505_s1 }
   0x3   :  { %3546 = sst [smem:[#allocation16_spill]] %s3506_s2 }
   0x4   :  { %3547 = sst [smem:[#allocation17_spill]] %s3507_s3 }
   0x5   :  { %3548 = sst [smem:[#allocation18_spill]] %s3508_s4 }
   0x6   :  { %3549 = sst [smem:[#allocation19_spill]] %s3509_s5 }
   0x7   :  { %3550 = sst [smem:[#allocation20_spill]] %s3510_s6 }
   0x8   :  { %3551 = sst [smem:[#allocation21_spill]] %s3511_s7 }
   0x9   :  { %3552 = sst [smem:[#allocation22_spill]] %s3512_s8 }
   0xa   :  { %3553 = sst [smem:[#allocation23_spill]] %s3513_s9 }
   0xb   :  { %3554 = sst [smem:[#allocation24_spill]] %s3514_s10 }
   0xc   :  { %28 = vsyncpa [#allocation3], 0 }
   0xd   :  { %30 = vsyncpa [#allocation3 + $0x1], 0 }
   0xe   :  { %31 = vsyncpa [#allocation5], 0 }
   0xf   :  { %33 = vsyncpa [#allocation5 + $0x1], 0  ;;  %s3071_s3 = smov 0   ;;  %s3073_s28 = smov 0  }
  0x10   :  { %s3075_s29 = smov 0   ;;  %s3077_s30 = smov 0  }
  0x11 LB: > { %3555 = sst [smem:[#allocation9_spill]] %s2933_s28  ;;  %s3092_s4 = sadd.s32 4294967295, %s2941_s30   ;;  %s2941_s30 = sphi %s3077_s30, %s3580_s30   ;;  %s2937_s29 = sphi %s3075_s29, %s3583_s29   ;;  %s2933_s28 = sphi %s3073_s28, %s3582_s28   ;;  %s2929_s3 = sphi %s3071_s3, %s3581_s3  }
  0x12   : > { %3556 = sst [smem:[#allocation10_spill]] %s2937_s29  ;;  %s3529_s0 = sadd.s32 4294967294, %s2941_s30  }
  0x13   : > { %s3096_s23 = sadd.s32 1, %s2941_s30   ;;  %s481_s1 = sadd.s32 1, %s2937_s29 }
  0x14   : > { %3557 = sst [smem:[#allocation11_spill]] %s3096_s23  ;;  %s478_s5 = ssub.s32 %s2941_s30, %s3096_s23 }
  0x15   : > { %p491_p0 = scmp.ne.s32.totalorder %s2937_s29, %s2933_s28  ;;  %p479_p1 = scmp.eq.s32.totalorder %s478_s5, 0 }
  0x16   : > { %p492_p2 = scmp.eq.s32.totalorder %s3092_s4, 1  ;;  %p497_p3 = scmp.ne.s32.totalorder %s2933_s28, %s2929_s3 }
  0x17   : > { %p498_p4 = scmp.eq.s32.totalorder %s3529_s0, 1  ;;  %p2398_p7 = scmp.ge.s32.totalorder %s2941_s30, 1 }
  0x18   : > { %s3109_s24 = scalar_select %p479_p1, %s2937_s29, %s481_s1  }
  0x19   : > { %p3111_p5 = por %p492_p2, %p491_p0  ;;  %p3115_p6 = por %p498_p4, %p497_p3 }
  0x1a   : > { %3558 = sst [smem:[#allocation12_spill]] %s3109_s24  ;;  %p642_p8 = scmp.lt.s32.totalorder %s2941_s30, 3 }
  0x1b   : > { %s3560_s25 = scalar_select %p3115_p6, 1, 0 }
  0x1c   : > { %p643_p9 = pnand %p2398_p7, %p642_p8 }
  0x1d   : > { %3561 = sst [smem:[#allocation13_spill]] %s3560_s25  ;;  %p723_p10 = scmp.lt.s32.totalorder (!%p643_p9), %s3092_s4, 1  ;;  %vm742_vm0 = vcmask (!%p643_p9), 261120   ;;  %v2943_v10 = vmov (!%p643_p9), 0.0|0.0   ;;  %vm2944_vm1 = vmmov (!%p643_p9), 0   ;;  %v2945_v13 = vmov (!%p643_p9), 0.0  }
  0x1e   : > { %646 = sbr.rel (%p643_p9) target bundleno = 4271 (0x10af), region = 100  ;;  %s3562_s5 = sld [smem:[#allocation14_spill]] (!%p643_p9)  ;;  %2655 = vmatprep.subr.bf16.mxu0 (!%p643_p9), %v2943_v10  ;;  %2527 = vmatprep.mubr.msk.f32.mxu0 (!%p643_p9), %vm2944_vm1, %v2945_v13  ;;  %vm853_vm2 = vcmask (!%p643_p9), 64512   ;;  %vm1192_vm3 = vcmask (!%p643_p9), 130048   ;;  %vm2119_vm5 = vcmask (!%p643_p9), 523264  }
  0x1f   : > { %s3563_s23 = sld [smem:[#allocation19_spill]] (!%p643_p9)  ;;  %2535 = vmatprep.subr.mxu1 (!%p643_p9), %v2945_v13  ;;  %2537 = vmatprep.mubr.msk.f32.mxu1 (!%p643_p9), %vm2944_vm1, %v2945_v13  ;;  %s3564_s25 = sld [smem:[#allocation17_spill]] (!%p643_p9)  ;;  %vm2688_vm4 = vmpackc.low (!%p643_p9), %vm853_vm2, %vm853_vm2 }
  0x20   : > { %s3537_s1 = smov (!%p643_p9), 120   ;;  %s3535_s29 = smov (!%p643_p9), 104  }
  0x21   : > { %s2949_s24 = smov (!%p643_p9), 88   ;;  %s3182_s27 = sand.u32 (!%p643_p9), 1, %s2933_s28  }
  0x22   : > { %s3567_s7 = sld [smem:[#allocation21_spill]] (!%p643_p9)  ;;  %s3568_s10 = sld [smem:[#allocation24_spill]] (!%p643_p9) }
  0x23   : > { %s3570_s8 = sld [smem:[#allocation22_spill]] (!%p643_p9)  ;;  %s3571_s9 = sld [smem:[#allocation23_spill]] (!%p643_p9) }
  0x25   : > { %s3123_s26 = scalar_select %p723_p10, %s3092_s4, 1  ;;  %v773_v7 = vld [vmem:[%s3563_s23] sm:$0xff]  ;;  %v774_v8 = vld [vmem:[%s3563_s23 + $0x8] sm:$0xff]  ;;  %v775_v9 = vld [vmem:[%s3563_s23 + $0x10] sm:$0xff] }
  0x26   : > { %v2656_v11 = vpack.c.bf16 %v774_v8, %v773_v7  ;;  %v776_v12 = vld [vmem:[%s3563_s23 + $0x18] sm:$0xff]  ;;  %v2407_v19 = vld [vmem:[%s3564_s25] ss:$0 sm:$0xff]  ;;  %s2950_s25 = smov 96  }
  0x27   : > { %s2402_s2 = sshll.u32 %s3123_s26, 3  ;;  %v2659_v14 = vpack.c.bf16 %v776_v12, %v775_v9  ;;  %s2453_s28 = sshll.u32 %s3123_s26, 4 }
  0x28   : > { %s726_s0 = scalar_lea.vmem %s3562_s5, %s2402_s2  ;;  %2657 = vmatpush3.bf16.msra.mxu0 %v2656_v11  ;;  %s3536_s5 = smov 112  }
  0x29   : > { %v3129_v0 = vld [vmem:[%s726_s0] sm:$0xff]  ;;  %2658 = vmatprep.subr.bf16.mxu0 %v2943_v10  ;;  %s3565_s0 = sld [smem:[#allocation18_spill]]  ;;  %s3534_s2 = sshll.u32 %s3182_s27, 4 }
  0x2a   : > { %v743_v1 = vsel %vm742_vm0, %v3129_v0, 0.0  ;;  %s3575_s26 = smov 104  }
  0x2b   : > { %744 = vadd.xlane.f32.xlu0 %v743_v1 }
  0x2c   : > { %2660 = vmatpush3.bf16.msra.mxu0 %v2659_v14  ;;  %v1304_v14 = vld [vmem:[%s3568_s10] sm:$0xff] }
  0x2d   : > { %2530 = vmatprep.subr.mxu0 %v2945_v13 }
  0x2f   : > { %v2408_v21 = vld [vmem:[%s3565_s0] ss:$0 sm:$0xff]  ;;  %s3189_s0 = scalar_lea.vmem [#allocation4], %s3534_s2  ;;  %s3566_s2 = sld [smem:[#allocation20_spill]] }
  0x30   : > { %s2232_s23 = sshll.u32 %s3189_s0, 4  ;;  %s3385_s23 = int_to_ptr.vmem [resolvable:$true] %s2232_s23 }
  0x35   : > { %v1190_v55 = vld [vmem:[%s3566_s2] sm:$0xff]  ;;  %v1191_v56 = vld [vmem:[%s3566_s2 + $0x8] sm:$0xff] }
  0x36   : > { %v2662_v57 = vpack.c.bf16 %v1191_v56, %v1190_v55 }
  0xb8   : > { %v745_v2 = vpop.xlane.xlu0 %744 }
  0xb9   : > { %v747_v3 = vmul.f32 0.03125, %v745_v2  ;;  %v2418_v2 = vld [vmem:[%s3567_s7] ss:$0 sm:$0xff] }
  0xbb   : > { %v748_v4 = vsub.f32 %v3129_v0, %v747_v3 }
  0xbd   : > { %v749_v5 = vmul.f32 %v748_v4, %v748_v4 }
  0xbf   : > { %v750_v6 = vsel %vm742_vm0, %v749_v5, 0.0 }
  0xc0   : > { %751 = vadd.xlane.f32.xlu0 %v750_v6 }
 0x14d   : > { %v752_v15 = vpop.xlane.xlu0 %751 }
 0x14e   : > { %v753_v16 = vmul.f32 0.03125, %v752_v15 }
 0x150   : > { %v754_v17 = vadd.f32 1e-05, %v753_v16  ;;  %v1306_v16 = vld [vmem:[%s3568_s10 + $0x10] sm:$0xff] }
 0x152   : > { %2795 = vrsqrt.f32 %v754_v17  ;;  %v1307_v17 = vld [vmem:[%s3568_s10 + $0x18] sm:$0xff] }
 0x15c   : > { %v2796_v18 = vpop.eup %2795 }
 0x15d   : > { %v756_v20 = vmul.f32 %v2796_v18, %v748_v4  ;;  %v1381_v18 = vld [vmem:[%s3515_s11] sm:$0xff] }
 0x15f   : > { %v764_v22 = vmul.f32 %v2407_v19, %v756_v20  ;;  %v2668_v19 = vpack.c.bf16 %v1307_v17, %v1306_v16  ;;  %v1382_v20 = vld [vmem:[%s3515_s11 + $0x8] sm:$0xff] }
 0x161   : > { %v772_v23 = vadd.f32 %v2408_v21, %v764_v22  ;;  %v2670_v21 = vpack.c.bf16 %v1382_v20, %v1381_v18  ;;  %v1383_v22 = vld [vmem:[%s3515_s11 + $0x10] sm:$0xff] }
 0x163   : > { %2528 = vmatmul.mubr.msk.f32.vlgmr.msra.gmra.mrb[0].mxu0 %vm742_vm0, %v772_v23  ;;  %v1384_v23 = vld [vmem:[%s3515_s11 + $0x18] sm:$0xff] }
 0x164   : > { %2532 = vmatprep.mubr.msk.f32.mxu0 %vm2944_vm1, %v2945_v13 }
 0x236   : > { %v846_v24 = vpop.f32.mrb[0].mxu0 }
 0x237   : > { %1017 = vrot.lane.b32.xlu0 %v846_v24, %s3537_s1  ;;  %851 = vrot.lane.b32.xlu1 %v846_v24, %s3536_s5  ;;  %v2529_v25 = vpop.f32.mrb[1].mxu0  ;;  %s3539_s1 = smov 8   ;;  %s3572_s5 = sld [smem:[#allocation16_spill]] }
 0x23b   : > { %1019 = vrot.lane.b32.xlu1 %v846_v24, %s3535_s29  ;;  %s3569_s29 = sld [smem:[#allocation15_spill]] }
 0x2a9   : > { %v852_v26 = vpop.permute.xlu1 %851  ;;  %v1018_v28 = vpop.permute.xlu0 %1017 }
 0x2aa   : > { %2531 = vmatpush3.xpose.msk.msra.mxu0 %vm853_vm2, %v852_v26 }
 0x2ab   : > { %2540 = vmatprep.subr.mxu0 %v2945_v13 }
 0x2ad   : > { %2533 = vmatmul.mubr.msk.f32.vlgmr.msra.gmra.mrb[2].mxu0 %vm853_vm2, %v846_v24  ;;  %v1020_v27 = vpop.permute.xlu1 %1019 }
 0x2ae   : > { %2541 = vmatpush3.xpose.msk.msra.mxu0 %vm853_vm2, %v1020_v27  ;;  %2542 = vmatprep.mubr.msk.f32.mxu0 %vm2944_vm1, %v2945_v13 }
 0x2af   : > { %2661 = vmatprep.subr.bf16.mxu0 %v2943_v10 }
 0x2b1   : > { %2543 = vmatmul.mubr.msk.f32.vlgmr.msra.gmra.mrb[4].mxu0 %vm853_vm2, %v1018_v28 }
 0x2b2   : > { %2554 = vmatprep.mubr.msk.f32.mxu0 %vm2944_vm1, %v2945_v13  ;;  %2663 = vmatpush3.bf16.msra.mxu0 %v2662_v57 }
 0x2b3   : > { %2671 = vmatprep.subr.bf16.mxu0 %v2670_v21 }
 0x380   : > { %v924_v29 = vpop.f32.mrb[2].mxu0 }
 0x381   : > { %v928_v30 = vmul.f32 0.35355338, %v924_v29  ;;  %v2534_v31 = vpop.f32.mrb[3].mxu0 }
 0x382   : > { %v2419_v31 = vld [vmem:[%s3570_s8] ss:$0 sm:$0xff]  ;;  %s2952_s8 = smov [#allocation4]  }
 0x383   : > { %v929_v32 = vsel %vm853_vm2, %v928_v30, -inf }
 0x384   : > { %930 = vmax.xlane.f32.xlu1 %v929_v32  ;;  %v1091_v33 = vpop.f32.mrb[4].mxu0 }
 0x385   : > { %v1095_v34 = vmul.f32 0.35355338, %v1091_v33  ;;  %v2544_v35 = vpop.f32.mrb[5].mxu0  ;;  %v2420_v33 = vld [vmem:[%s3571_s9] ss:$0 sm:$0xff]  ;;  %s2823_s9 = sshll.u32 %s2952_s8, 4  ;;  %s2824_s9 = int_to_ptr.vmem [resolvable:$false] %s2823_s9 }
 0x386   : > { %p2826_p0 = scmp.lt.s32.totalorder %s3385_s23, %s2824_s9 }
 0x387   : > { %v1096_v36 = vsel %vm853_vm2, %v1095_v34, -inf }
 0x388   : > { %1097 = vmax.xlane.f32.xlu0 %v1096_v36 }
 0x39e   : > { %1109 = vrot.lane.b32.xlu0 %v846_v24, %s2949_s24  ;;  %s731_s24 = scalar_lea.vmem %s3569_s29, %s2453_s28  ;;  %s736_s29 = scalar_lea.vmem %s3572_s5, %s2453_s28 }
 0x39f   : > { %v738_v25 = vld [vmem:[%s731_s24] sm:$0xff]  ;;  %v739_v26 = vld [vmem:[%s731_s24 + $0x8] sm:$0xff]  ;;  %s3573_s28 = smov 120   ;;  %s3574_s24 = smov 112  }
 0x3a0   : > { %v740_v36 = vld [vmem:[%s736_s29] sm:$0xff]  ;;  %s2819_s5 = scalar_lea.vmem %s3385_s23, 256 }
 0x3a1   : > { %p2820_p11 = scmp.ne.s32.totalorder %s3385_s23, %s2819_s5 }
 0x3a3   : > { %p2821_p12 = pnand %p2820_p11, %p3111_p5 }
 0x3a5   : > { %p2822_p13 = pneg %p2821_p12 }
 0x411   : > { %v931_v37 = vpop.xlane.xlu1 %930 }
 0x412   : > { %v932_v38 = vsub.f32 %v928_v30, %v931_v37  ;;  %v741_v37 = vld [vmem:[%s736_s29 + $0x8] sm:$0xff]  ;;  %s3577_s29 = smov 8  }
 0x414   : > { %v933_v39 = vmul.f32 1.442695, %v932_v38 }
 0x415   : > { %v1098_v40 = vpop.xlane.xlu0 %1097 }
 0x416   : > { %2797 = vpow2.f32 %v933_v39  ;;  %v1099_v41 = vsub.f32 %v1095_v34, %v1098_v40 }
 0x418   : > { %v1100_v42 = vmul.f32 1.442695, %v1099_v41 }
 0x419   : > { %v1110_v52 = vpop.permute.xlu0 %1109 }
 0x41a   : > { %2799 = vpow2.f32 %v1100_v42 }
 0x420   : > { %v2798_v43 = vpop.eup %2797 }
 0x421   : > { %v935_v44 = vsel %vm853_vm2, %v2798_v43, 0.0 }
 0x422   : > { %936 = vadd.xlane.f32.xlu1 %v935_v44 }
 0x424   : > { %v2800_v45 = vpop.eup %2799 }
 0x425   : > { %v1102_v46 = vsel %vm853_vm2, %v2800_v45, 0.0 }
 0x426   : > { %1103 = vadd.xlane.f32.xlu1 %v1102_v46 }
 0x437   : > { %941 = vrot.lane.b32.xlu1 %v846_v24, %s2950_s25  ;;  %v2674_v24 = vpack.c.bf16 %v1384_v23, %v1383_v22 }
 0x4af   : > { %v937_v47 = vpop.xlane.xlu1 %936 }
 0x4b0   : > { %2801 = vrcp.f32 %v937_v47 }
 0x4b3   : > { %v1104_v48 = vpop.xlane.xlu1 %1103 }
 0x4b4   : > { %2803 = vrcp.f32 %v1104_v48 }
 0x4b7   : > { %v942_v49 = vpop.permute.xlu1 %941 }
 0x4b8   : > { %2536 = vmatpush3.msra.mxu1 %v942_v49 }
 0x4b9   : > { %2545 = vmatprep.subr.mxu1 %v2945_v13 }
 0x4ba   : > { %v2802_v50 = vpop.eup %2801 }
 0x4bb   : > { %v939_v51 = vmul.f32 %v2802_v50, %v2798_v43 }
 0x4bd   : > { %2538 = vmatmul.mubr.msk.f32.vlgmr.msra.gmra.mrb[0].mxu1 %vm853_vm2, %v939_v51  ;;  %940 = vst.msk [vmem:[%s3189_s0] sm:$0xff] %vm853_vm2, %v939_v51 }
 0x4be   : > { %v2804_v53 = vpop.eup %2803  ;;  %2546 = vmatpush3.msra.mxu1 %v1110_v52  ;;  %2547 = vmatprep.mubr.msk.f32.mxu1 %vm2944_vm1, %v2945_v13 }
 0x4bf   : > { %v1106_v54 = vmul.f32 %v2804_v53, %v2800_v45  ;;  %2664 = vmatprep.subr.bf16.mxu1 %v2943_v10 }
 0x4c1   : > { %2548 = vmatmul.mubr.msk.f32.vlgmr.msra.gmra.mrb[2].mxu1 %vm853_vm2, %v1106_v54  ;;  %2415 = vst.msk [vmem:[%s3189_s0 + $0x8] sm:$0xff] %vm853_vm2, %v1106_v54 }
 0x4c2   : > { %2565 = vmatprep.mubr.msk.f32.mxu1 %vm2944_vm1, %v2945_v13 }
 0x590   : > { %v1013_v58 = vpop.f32.mrb[0].mxu1 }
 0x591   : > { %v2539_v59 = vpop.f32.mrb[1].mxu1 }
 0x594   : > { %v1181_v60 = vpop.f32.mrb[2].mxu1 }
 0x595   : > { %1186 = vrot.lane.b32.xlu1 %v1181_v60, %s3539_s1  ;;  %v2549_v61 = vpop.f32.mrb[3].mxu1  ;;  %s3576_s1 = sshll.u32 %s3182_s27, 4 }
 0x596   : > { %s3291_s2 = scalar_lea.vmem [#allocation6], %s3576_s1 }
 0x607   : > { %v1187_v62 = vpop.permute.xlu1 %1186 }
 0x608   : > { %v1189_v63 = vsel %vm853_vm2, %v1013_v58, %v1187_v62 }
 0x609   : > { %2555 = vmatmul.mubr.msk.f32.vlgmr.msra.gmra.mrb[6].mxu0 %vm1192_vm3, %v1189_v63 }
 0x60a   : > { %2673 = vmatpush3.bf16.msra.mxu0 %v2670_v21  ;;  %2576 = vmatprep.mubr.msk.f32.mxu0 %vm742_vm0, %v738_v25  ;;  %v1902_v25 = vld [vmem:[%s3516_s12] sm:$0xff] }
 0x60b   : > { %2675 = vmatprep.subr.bf16.mxu0 %v2674_v24 }
 0x60e   : > { %2677 = vmatpush3.bf16.msra.mxu0 %v2674_v24 }
 0x60f   : > { %2686 = vmatprep.subr.bf16.mxu0 %v2943_v10 }
 0x611   : > { %2577 = vmatmul.mubr.msk.f32.vlgmr.msra.gmra.mrb[8].mxu0 %vm742_vm0, %v739_v26  ;;  %v1903_v26 = vld [vmem:[%s3516_s12 + $0x8] sm:$0xff] }
 0x612   : > { %2594 = vmatprep.mubr.msk.f32.mxu0 %vm2944_vm1, %v2945_v13 }
 0x6dc   : > { %v1262_v1 = vpop.f32.mrb[6].mxu0 }
 0x6dd   : > { %v1266_v3 = vadd.f32 %v1262_v1, %v3129_v0  ;;  %v2556_v4 = vpop.f32.mrb[7].mxu0  ;;  %v1305_v0 = vld [vmem:[%s3568_s10 + $0x8] sm:$0xff]  ;;  %s2825_s10 = scalar_lea.vmem %s2824_s9, 512 }
 0x6de   : > { %v2665_v15 = vpack.c.bf16 %v1305_v0, %v1304_v14  ;;  %p2827_p1 = scmp.lt.s32.totalorder %s2825_s10, %s2819_s5 }
 0x6df   : > { %v3214_v5 = vadd.f32 %v2418_v2, %v1266_v3 }
 0x6e0   : > { %2666 = vmatpush3.bf16.msra.mxu1 %v2665_v15  ;;  %p2828_p2 = por %p2827_p1, %p2826_p0 }
 0x6e1   : > { %v1275_v6 = vsel %vm742_vm0, %v3214_v5, 0.0  ;;  %2667 = vmatprep.subr.bf16.mxu1 %v2943_v10 }
 0x6e2   : > { %1276 = vadd.xlane.f32.xlu1 %v1275_v6  ;;  %p2829_p3 = pnand %p2828_p2, %p2822_p13 }
 0x6e4   : > { %2669 = vmatpush3.bf16.msra.mxu1 %v2668_v19  ;;  %v2578_v38 = vpop.f32.mrb[8].mxu0 }
 0x6e5   : > { %2679 = vmatprep.subr.bf16.mxu1 %v2670_v21  ;;  %v1457_v39 = vpop.f32.mrb[9].mxu0 }
 0x6e6   : > { %v2790_v40 = vpack.i.bf16 %v2578_v38, %v1457_v39 }
 0x76f   : > { %v1277_v7 = vpop.xlane.xlu1 %1276 }
 0x770   : > { %v1278_v8 = vmul.f32 0.03125, %v1277_v7 }
 0x772   : > { %v1279_v9 = vsub.f32 %v3214_v5, %v1278_v8 }
 0x774   : > { %v1280_v11 = vmul.f32 %v1279_v9, %v1279_v9 }
 0x776   : > { %v1281_v12 = vsel %vm742_vm0, %v1280_v11, 0.0 }
 0x777   : > { %1282 = vadd.xlane.f32.xlu0 %v1281_v12 }
 0x804   : > { %v1283_v27 = vpop.xlane.xlu0 %1282 }
 0x805   : > { %v1284_v28 = vmul.f32 0.03125, %v1283_v27  ;;  %v2701_v27 = vpack.c.bf16 %v1903_v26, %v1902_v25 }
 0x807   : > { %v1285_v29 = vadd.f32 1e-05, %v1284_v28 }
 0x809   : > { %2805 = vrsqrt.f32 %v1285_v29 }
 0x813   : > { %v2806_v30 = vpop.eup %2805 }
 0x814   : > { %v1287_v32 = vmul.f32 %v2806_v30, %v1279_v9 }
 0x816   : > { %v1295_v34 = vmul.f32 %v2419_v31, %v1287_v32 }
 0x818   : > { %v1303_v35 = vadd.f32 %v2420_v33, %v1295_v34 }
 0x81a   : > { %2566 = vmatmul.mubr.msk.f32.vlgmr.msra.gmra.mrb[4].mxu1 %vm742_vm0, %v1303_v35  ;;  %v2436_v35 = vld [vmem:[%s3517_s13] ss:$0 sm:$0xff] }
 0x81b   : > { %2681 = vmatpush3.bf16.msra.mxu1 %v2670_v21  ;;  %2587 = vmatprep.mubr.msk.f32.mxu1 %vm742_vm0, %v740_v36 }
 0x81c   : > { %2683 = vmatprep.subr.bf16.mxu1 %v2674_v24 }
 0x81f   : > { %2685 = vmatpush3.bf16.msra.mxu1 %v2674_v24 }
 0x820   : > { %2690 = vmatprep.subr.bf16.mxu1 %v2943_v10 }
 0x822   : > { %2588 = vmatmul.mubr.msk.f32.vlgmr.msra.gmra.mrb[6].mxu1 %vm742_vm0, %v741_v37 }
 0x823   : > { %2601 = vmatprep.mubr.msk.f32.mxu1 %vm2944_vm1, %v2945_v13 }
 0x8ed   : > { %v1377_v41 = vpop.f32.mrb[4].mxu1 }
 0x8ee   : > { %1722 = vrot.lane.b32.xlu0 %v1377_v41, %s3573_s28  ;;  %v2567_v42 = vpop.f32.mrb[5].mxu1 }
 0x8f5   : > { %v2589_v43 = vpop.f32.mrb[6].mxu1 }
 0x8f6   : > { %v1548_v44 = vadd.f32 %v2589_v43, %v2578_v38  ;;  %v1538_v45 = vpop.f32.mrb[7].mxu1 }
 0x8f7   : > { %v1547_v46 = vadd.f32 %v1538_v45, %v1457_v39 }
 0x8f9   : > { %v2780_v47 = vpack.i.bf16 %v1548_v44, %v1547_v46  ;;  %v2687_v48 = vpack.c.bf16 %v1548_v44, %v1547_v46  ;;  %v2015_v44 = vld [vmem:[%s3520_s16] sm:$0xff]  ;;  %v2017_v46 = vld [vmem:[%s3520_s16 + $0x10] sm:$0xff] }
 0x8fb   : > { %2781 = vrot.lane.b32.xlu1 %v2780_v47, %s3573_s28  ;;  %2689 = vmatpush3.bf16.xpose.msk.msra.mxu0 %vm2688_vm4, %v2687_v48  ;;  %v2018_v47 = vld [vmem:[%s3520_s16 + $0x18] sm:$0xff]  ;;  %s2200_s28 = sand.u32 1, %s3092_s4  }
 0x8fc   : > { %2693 = vmatprep.subr.bf16.mxu0 %v2943_v10  ;;  %v2707_v48 = vpack.c.bf16 %v2018_v47, %v2017_v46  ;;  %s3387_s25 = scalar_lea.sflag [#allocation5], %s2200_s28 }
 0x902   : > { %2595 = vmatmul.mubr.msk.f32.vlgmr.msra.gmra.mrb[10].mxu0 %vm853_vm2, %v1377_v41 }
 0x903   : > { %2608 = vmatprep.mubr.msk.f32.mxu0 %vm2944_vm1, %v2945_v13 }
 0x960   : > { %v1723_v53 = vpop.permute.xlu0 %1722 }
 0x96d   : > { %v2782_v49 = vpop.permute.xlu1 %2781 }
 0x96e   : > { %v2784_v50 = vunpack.i.h.bf16 %v2782_v49  ;;  %v2783_v51 = vunpack.i.l.bf16 %v2782_v49 }
 0x970   : > { %v2694_v52 = vpack.c.bf16 %v2784_v50, %v2783_v51 }
 0x972   : > { %2696 = vmatpush3.bf16.xpose.msk.msra.mxu0 %vm2688_vm4, %v2694_v52 }
 0x973   : > { %2703 = vmatprep.subr.bf16.mxu0 %v2943_v10 }
 0x979   : > { %2609 = vmatmul.mubr.msk.f32.vlgmr.msra.gmra.mrb[12].mxu0 %vm853_vm2, %v1723_v53  ;;  %v2437_v53 = vld [vmem:[%s3518_s14] ss:$0 sm:$0xff] }
 0x97a   : > { %2633 = vmatprep.mubr.msk.f32.mxu0 %vm2944_vm1, %v2945_v13 }
 0x9d5   : > { %v1624_v54 = vpop.f32.mrb[10].mxu0 }
 0x9d6   : > { %v1628_v55 = vmul.f32 0.35355338, %v1624_v54  ;;  %v2596_v56 = vpop.f32.mrb[11].mxu0 }
 0x9d8   : > { %v1629_v57 = vsel %vm1192_vm3, %v1628_v55, -inf }
 0x9d9   : > { %1630 = vmax.xlane.f32.xlu1 %v1629_v57 }
 0xa4c   : > { %v1800_v58 = vpop.f32.mrb[12].mxu0 }
 0xa4d   : > { %v1804_v59 = vmul.f32 0.35355338, %v1800_v58  ;;  %v2610_v60 = vpop.f32.mrb[13].mxu0  ;;  %v2104_v58 = vld [vmem:[%s3522_s18] sm:$0xff] }
 0xa4f   : > { %v1805_v61 = vsel %vm1192_vm3, %v1804_v59, -inf }
 0xa50   : > { %1806 = vmax.xlane.f32.xlu0 %v1805_v61  ;;  %v2106_v61 = vld [vmem:[%s3522_s18 + $0x10] sm:$0xff] }
 0xa66   : > { %v1631_v62 = vpop.xlane.xlu1 %1630  ;;  %2786 = vrot.lane.b32.xlu0 %v2790_v40, %s3574_s24  ;;  %s2455_s24 = sshll.u32 %s3092_s4, 8 }
 0xa67   : > { %v1632_v63 = vsub.f32 %v1628_v55, %v1631_v62  ;;  %v2438_v55 = vld [vmem:[%s3519_s15] ss:$0 sm:$0xff]  ;;  %v2107_v62 = vld [vmem:[%s3522_s18 + $0x18] sm:$0xff]  ;;  %s3382_s7 = scalar_lea.hbm %s3525_s21, %s2455_s24 }
 0xa69   : > { %v1633_v1 = vmul.f32 1.442695, %v1632_v63  ;;  %v2713_v63 = vpack.c.bf16 %v2107_v62, %v2106_v61 }
 0xa6b   : > { %2807 = vpow2.f32 %v1633_v1  ;;  %v2108_v1 = vld [vmem:[%s3522_s18 + $0x20] sm:$0xff] }
 0xa75   : > { %v2808_v2 = vpop.eup %2807 }
 0xa76   : > { %v1635_v3 = vsel %vm1192_vm3, %v2808_v2, 0.0 }
 0xa77   : > { %1636 = vadd.xlane.f32.xlu1 %v1635_v3 }
 0xadd   : > { %v1807_v4 = vpop.xlane.xlu0 %1806 }
 0xade   : > { %v1808_v6 = vsub.f32 %v1804_v59, %v1807_v4  ;;  %v2105_v59 = vld [vmem:[%s3522_s18 + $0x8] sm:$0xff]  ;;  %v2110_v4 = vld [vmem:[%s3522_s18 + $0x30] sm:$0xff] }
 0xadf   : > { %v2710_v60 = vpack.c.bf16 %v2105_v59, %v2104_v58 }
 0xae0   : > { %v1809_v7 = vmul.f32 1.442695, %v1808_v6  ;;  %v2111_v6 = vld [vmem:[%s3522_s18 + $0x38] sm:$0xff] }
 0xae1   : > { %v2787_v8 = vpop.permute.xlu0 %2786 }
 0xae2   : > { %2809 = vpow2.f32 %v1809_v7  ;;  %v2789_v9 = vunpack.i.h.bf16 %v2787_v8  ;;  %v2788_v11 = vunpack.i.l.bf16 %v2787_v8  ;;  %v2719_v7 = vpack.c.bf16 %v2111_v6, %v2110_v4  ;;  %v2439_v8 = vld [vmem:[%s3521_s17] ss:$0 sm:$0xff] }
 0xae4   : > { %v2691_v12 = vpack.c.bf16 %v2789_v9, %v2788_v11 }
 0xae6   : > { %2692 = vmatpush3.bf16.msra.mxu1 %v2691_v12 }
 0xae7   : > { %2697 = vmatprep.subr.bf16.mxu1 %v2943_v10 }
 0xaec   : > { %v2810_v14 = vpop.eup %2809 }
 0xaed   : > { %v1811_v0 = vsel %vm1192_vm3, %v2810_v14, 0.0 }
 0xaee   : > { %1812 = vadd.xlane.f32.xlu1 %v1811_v0 }
 0xaff   : > { %2791 = vrot.lane.b32.xlu1 %v2790_v40, %s3575_s26 }
 0xb04   : > { %v1637_v15 = vpop.xlane.xlu1 %1636 }
 0xb05   : > { %2811 = vrcp.f32 %v1637_v15 }
 0xb0f   : > { %v2812_v16 = vpop.eup %2811 }
 0xb10   : > { %v1639_v17 = vmul.f32 %v2812_v16, %v2808_v2  ;;  %v2109_v2 = vld [vmem:[%s3522_s18 + $0x28] sm:$0xff] }
 0xb11   : > { %v2716_v3 = vpack.c.bf16 %v2109_v2, %v2108_v1 }
 0xb12   : > { %2602 = vmatmul.mubr.msk.f32.vlgmr.msra.gmra.mrb[8].mxu1 %vm1192_vm3, %v1639_v17  ;;  %1640 = vst.msk [vmem:[%s3291_s2] sm:$0xff] %vm1192_vm3, %v1639_v17 }
 0xb13   : > { %2615 = vmatprep.mubr.msk.f32.mxu1 %vm2944_vm1, %v2945_v13 }
 0xb7b   : > { %v1813_v18 = vpop.xlane.xlu1 %1812 }
 0xb7c   : > { %2813 = vrcp.f32 %v1813_v18 }
 0xb7f   : > { %v2792_v19 = vpop.permute.xlu1 %2791 }
 0xb80   : > { %v2794_v20 = vunpack.i.h.bf16 %v2792_v19  ;;  %v2793_v21 = vunpack.i.l.bf16 %v2792_v19 }
 0xb82   : > { %v2698_v22 = vpack.c.bf16 %v2794_v20, %v2793_v21 }
 0xb84   : > { %2699 = vmatpush3.bf16.msra.mxu1 %v2698_v22 }
 0xb85   : > { %2700 = vmatprep.subr.bf16.mxu1 %v2943_v10 }
 0xb86   : > { %v2814_v23 = vpop.eup %2813 }
 0xb87   : > { %v1815_v24 = vmul.f32 %v2814_v23, %v2810_v14 }
 0xb89   : > { %2616 = vmatmul.mubr.msk.f32.vlgmr.msra.gmra.mrb[10].mxu1 %vm1192_vm3, %v1815_v24  ;;  %2433 = vst.msk [vmem:[%s3291_s2 + $0x8] sm:$0xff] %vm1192_vm3, %v1815_v24 }
 0xb8a   : > { %2622 = vmatprep.mubr.msk.f32.mxu1 %vm2944_vm1, %v2945_v13  ;;  %2702 = vmatpush3.bf16.msra.mxu1 %v2701_v27 }
 0xb8b   : > { %2709 = vmatprep.subr.bf16.mxu1 %v2943_v10 }
 0xbe5   : > { %v1718_v28 = vpop.f32.mrb[8].mxu1 }
 0xbe6   : > { %v2603_v29 = vpop.f32.mrb[9].mxu1 }
 0xc5c   : > { %v1893_v30 = vpop.f32.mrb[10].mxu1 }
 0xc5d   : > { %1898 = vrot.lane.b32.xlu1 %v1893_v30, %s3577_s29  ;;  %v2617_v31 = vpop.f32.mrb[11].mxu1 }
 0xccf   : > { %v1899_v32 = vpop.permute.xlu1 %1898 }
 0xcd0   : > { %v1901_v33 = vsel %vm853_vm2, %v1718_v28, %v1899_v32 }
 0xcd1   : > { %2623 = vmatmul.mubr.msk.f32.vlgmr.msra.gmra.mrb[12].mxu1 %vm1192_vm3, %v1901_v33 }
 0xcd2   : > { %2652 = vmatprep.mubr.msk.f32.mxu1 %vm2944_vm1, %v2945_v13  ;;  %2711 = vmatpush3.bf16.msra.mxu1 %v2710_v60 }
 0xcd3   : > { %2712 = vmatprep.subr.bf16.mxu1 %v2943_v10 }
 0xcd6   : > { %2714 = vmatpush3.bf16.msra.mxu1 %v2713_v63 }
 0xcd7   : > { %2715 = vmatprep.subr.bf16.mxu1 %v2943_v10 }
 0xcda   : > { %2717 = vmatpush3.bf16.msra.mxu1 %v2716_v3 }
 0xcdb   : > { %2718 = vmatprep.subr.bf16.mxu1 %v2943_v10 }
 0xcde   : > { %2720 = vmatpush3.bf16.msra.mxu1 %v2719_v7 }
 0xda4   : > { %v1973_v34 = vpop.f32.mrb[12].mxu1 }
 0xda5   : > { %v1977_v36 = vadd.f32 %v1973_v34, %v3214_v5  ;;  %v2624_v37 = vpop.f32.mrb[13].mxu1  ;;  %v2016_v5 = vld [vmem:[%s3520_s16 + $0x8] sm:$0xff] }
 0xda6   : > { %v2704_v45 = vpack.c.bf16 %v2016_v5, %v2015_v44 }
 0xda7   : > { %v3319_v38 = vadd.f32 %v2436_v35, %v1977_v36 }
 0xda8   : > { %2705 = vmatpush3.bf16.msra.mxu0 %v2704_v45 }
 0xda9   : > { %v1986_v39 = vsel %vm742_vm0, %v3319_v38, 0.0  ;;  %2706 = vmatprep.subr.bf16.mxu0 %v2943_v10 }
 0xdaa   : > { %1987 = vadd.xlane.f32.xlu0 %v1986_v39 }
 0xdac   : > { %2708 = vmatpush3.bf16.msra.mxu0 %v2707_v48 }
 0xe37   : > { %v1988_v40 = vpop.xlane.xlu0 %1987 }
 0xe38   : > { %v1989_v41 = vmul.f32 0.03125, %v1988_v40 }
 0xe3a   : > { %v1990_v42 = vsub.f32 %v3319_v38, %v1989_v41 }
 0xe3c   : > { %v1991_v43 = vmul.f32 %v1990_v42, %v1990_v42 }
 0xe3e   : > { %v1992_v13 = vsel %vm742_vm0, %v1991_v43, 0.0 }
 0xe3f   : > { %1993 = vadd.xlane.f32.xlu1 %v1992_v13 }
 0xecc   : > { %v1994_v49 = vpop.xlane.xlu1 %1993 }
 0xecd   : > { %v1995_v50 = vmul.f32 0.03125, %v1994_v49 }
 0xecf   : > { %v1996_v51 = vadd.f32 1e-05, %v1995_v50 }
 0xed1   : > { %2815 = vrsqrt.f32 %v1996_v51 }
 0xedb   : > { %v2816_v52 = vpop.eup %2815 }
 0xedc   : > { %v1998_v54 = vmul.f32 %v2816_v52, %v1990_v42 }
 0xede   : > { %v2006_v56 = vmul.f32 %v2437_v53, %v1998_v54 }
 0xee0   : > { %v2014_v57 = vadd.f32 %v2438_v55, %v2006_v56 }
 0xee2   : > { %2634 = vmatmul.mubr.msk.f32.vlgmr.msra.gmra.mrb[14].mxu0 %vm742_vm0, %v2014_v57 }
 0xfb5   : > { %v2095_v9 = vpop.f32.mrb[14].mxu0 }
 0xfb6   : > { %v2096_v10 = vadd.f32 %v2439_v8, %v2095_v9  ;;  %v2635_v11 = vpop.f32.mrb[15].mxu0 }
 0xfb8   : > { %v2100_v12 = vmul.f32 0.70710677, %v2096_v10  ;;  %v2099_v0 = vmul.f32 0.5, %v2096_v10 }
 0xfba   : > { %2817 = verf.f32 %v2100_v12 }
 0xfc4   : > { %v2818_v14 = vpop.eup %2817 }
 0xfc5   : > { %v2102_v15 = vadd.f32 1.0, %v2818_v14 }
 0xfc7   : > { %v2103_v16 = vmul.f32 %v2102_v15, %v2099_v0 }
 0xfc9   : > { %2653 = vmatmul.mubr.msk.f32.vlgmr.msra.gmra.mrb[14].mxu1 %vm2119_vm5, %v2103_v16 }
 0xfca   : > { %2832 = shalt.err (!%p2829_p3)
}
 0xfcb   : > { %s2833_s0 = scalar_lea.hbm %s3382_s7, 256  ;;  %s2837_s8 = scalar_lea.hbm %s3525_s21, 512 }
 0xfcc   : > { %p2834_p4 = scmp.ne.s32.totalorder %s3382_s7, %s2833_s0  ;;  %p2838_p9 = scmp.lt.u32.totalorder %s3382_s7, %s3525_s21 }
 0xfcd   : > { %p2839_p10 = scmp.lt.u32.totalorder %s2837_s8, %s2833_s0  ;;  %p2841_p12 = scmp.lt.u32.totalorder %s2833_s0, %s3382_s7 }
 0xfce   : > { %p2835_p7 = pnand %p2834_p4, %p3111_p5 }
 0xfcf   : > { %p2840_p11 = por %p2839_p10, %p2838_p9 }
 0xfd0   : > { %p2836_p8 = pneg %p2835_p7 }
 0xfd1   : > { %p2842_p13 = por %p2841_p12, %p2840_p11 }
 0xfd3   : > { %p2843_p0 = pnand %p2842_p13, %p2836_p8 }
 0xfd5   : > { %2846 = shalt.err (!%p2843_p0)
}
 0xfd6   : > { %s2953_s10 = smov 128   ;;  %s3419_s0 = scalar_lea.hbm %s3526_s22, %s2455_s24 }
 0xfd7   : > { %2722 = dma.vmem_to_hbm [thread:$0]  (%p3111_p5), %s3385_s23, 256, %s3382_s7, %s3387_s25, %s2953_s10, %s2953_s10, %s3577_s29  }
 0xfd8   : > { %s2248_s26 = sshll.u32 %s3291_s2, 4  ;;  %s2954_s1 = smov [#allocation6]   ;;  %s3422_s26 = int_to_ptr.vmem [resolvable:$true] %s2248_s26 }
 0xfd9   : > { %s2847_s8 = scalar_lea.vmem %s3422_s26, 256  ;;  %s2851_s9 = sshll.u32 %s2954_s1, 4  ;;  %s2852_s9 = int_to_ptr.vmem [resolvable:$false] %s2851_s9 }
 0xfda   : > { %p2848_p1 = scmp.ne.s32.totalorder %s3422_s26, %s2847_s8  ;;  %s2853_s7 = scalar_lea.vmem %s2852_s9, 512 }
 0xfdb   : > { %p2854_p4 = scmp.lt.s32.totalorder %s3422_s26, %s2852_s9  ;;  %p2855_p7 = scmp.lt.s32.totalorder %s2853_s7, %s2847_s8 }
 0xfdc   : > { %p2849_p2 = pnand %p2848_p1, %p3111_p5 }
 0xfdd   : > { %p2856_p8 = por %p2855_p7, %p2854_p4 }
 0xfde   : > { %p2850_p3 = pneg %p2849_p2 }
 0xfe0   : > { %p2857_p9 = pnand %p2856_p8, %p2850_p3 }
 0xfe2   : > { %2860 = shalt.err (!%p2857_p9)
}
 0xfe3   : > { %s2861_s2 = scalar_lea.hbm %s3419_s0, 256  ;;  %s2865_s5 = scalar_lea.hbm %s3526_s22, 512 }
 0xfe4   : > { %p2862_p10 = scmp.ne.s32.totalorder %s3419_s0, %s2861_s2  ;;  %p2866_p13 = scmp.lt.u32.totalorder %s3419_s0, %s3526_s22 }
 0xfe5   : > { %p2867_p0 = scmp.lt.u32.totalorder %s2865_s5, %s2861_s2  ;;  %p2869_p2 = scmp.lt.u32.totalorder %s2861_s2, %s3419_s0 }
 0xfe6   : > { %p2863_p11 = pnand %p2862_p10, %p3111_p5 }
 0xfe7   : > { %p2868_p1 = por %p2867_p0, %p2866_p13 }
 0xfe8   : > { %p2864_p12 = pneg %p2863_p11 }
 0xfe9   : > { %p2870_p3 = por %p2869_p2, %p2868_p1 }
 0xfeb   : > { %p2871_p4 = pnand %p2870_p3, %p2864_p12 }
 0xfed   : > { %2874 = shalt.err (!%p2871_p4)
}
 0xfee   : > { %2723 = dma.vmem_to_hbm [thread:$0]  (%p3111_p5), %s3422_s26, 256, %s3419_s0, %s3387_s25, %s2953_s10, %s2953_s10, %s3577_s29  }
 0xfef   : > { %s2399_s8 = sshll.u32 %s3182_s27, 3  ;;  %v2441_v17 = vld [vmem:[%s3523_s19] ss:$0 sm:$0xff]  ;;  %s2446_s2 = sshll.u32 %s3092_s4, 7 }
 0xff0   : > { %s708_s24 = scalar_lea.vmem [#allocation2], %s2399_s8  ;;  %s3458_s1 = scalar_lea.hbm %s3524_s20, %s2446_s2 }
 0xff1   : > { %s2219_s23 = sshll.u32 %s708_s24, 4  ;;  %s2196_s29 = scalar_lea.sflag [#allocation3], %s3182_s27  ;;  %s3460_s23 = int_to_ptr.vmem [resolvable:$true] %s2219_s23 }
 0xff2   : > { %s2875_s4 = scalar_lea.vmem %s3460_s23, 128  ;;  %s2955_s25 = smov [#allocation2]  }
 0xff3   : > { %p2876_p7 = scmp.ne.s32.totalorder %s3460_s23, %s2875_s4  ;;  %s2879_s10 = sshll.u32 %s2955_s25, 4  ;;  %s2880_s10 = int_to_ptr.vmem [resolvable:$false] %s2879_s10 }
 0xff4   : > { %s2881_s0 = scalar_lea.vmem %s2880_s10, 256  ;;  %p2882_p10 = scmp.lt.s32.totalorder %s3460_s23, %s2880_s10 }
 0xff5   : > { %p2877_p8 = pnand %p2876_p7, %p3111_p5  ;;  %p2883_p11 = scmp.lt.s32.totalorder %s2881_s0, %s2875_s4 }
 0xff7   : > { %p2878_p9 = pneg %p2877_p8  ;;  %p2884_p12 = por %p2883_p11, %p2882_p10 }
 0xff9   : > { %p2885_p13 = pnand %p2884_p12, %p2878_p9 }
0x109c   : > { %v2189_v18 = vpop.f32.mrb[14].mxu1 }
0x109d   : > { %v2190_v19 = vadd.f32 %v2441_v17, %v2189_v18  ;;  %v2654_v20 = vpop.f32.mrb[15].mxu1 }
0x109f   : > { %v2193_v21 = vadd.f32 %v2190_v19, %v3319_v38 }
0x10a1   : > { %2194 = vst.msk [vmem:[%s708_s24] sm:$0xff] %vm742_vm0, %v2193_v21 }
0x10a2   : > { %2888 = shalt.err (!%p2885_p13)
}
0x10a3   : > { %s2889_s27 = scalar_lea.hbm %s3458_s1, 128  ;;  %s2893_s9 = scalar_lea.hbm %s3524_s20, 256 }
0x10a4   : > { %p2890_p0 = scmp.ne.s32.totalorder %s3458_s1, %s2889_s27  ;;  %p2894_p3 = scmp.lt.u32.totalorder %s3458_s1, %s3524_s20 }
0x10a5   : > { %p2895_p4 = scmp.lt.u32.totalorder %s2893_s9, %s2889_s27  ;;  %p2897_p8 = scmp.lt.u32.totalorder %s2889_s27, %s3458_s1 }
0x10a6   : > { %p2891_p1 = pnand %p2890_p0, %p3111_p5 }
0x10a7   : > { %p2896_p7 = por %p2895_p4, %p2894_p3 }
0x10a8   : > { %p2892_p2 = pneg %p2891_p1 }
0x10a9   : > { %p2898_p9 = por %p2897_p8, %p2896_p7 }
0x10ab   : > { %p2899_p10 = pnand %p2898_p9, %p2892_p2 }
0x10ad   : > { %2902 = shalt.err (!%p2899_p10)
}
0x10ae   : > { %2721 = dma.vmem_to_hbm [thread:$0]  (%p3111_p5), %s3460_s23, 128, %s3458_s1, %s2196_s29  }
0x10af PF: > { %p2737_p11 = scmp.ge.s32.totalorder %s2941_s30, 2  ;;  %s2263_s5 = sand.u32 1, %s2929_s3  }
0x10b0   : > { %s2264_s28 = scalar_lea.sflag [#allocation3], %s2263_s5 }
0x10b1   : > { %p2728_p12 = pnand %p2737_p11, %p3115_p6 }
0x10b3   : > { %2920 = dma.done.wait (!%p2728_p12), %s2264_s28, 128  }
0x10b4   : > { %2922 = vsyncadd (!%p2728_p12), %s2264_s28, 4294967168  ;;  %s3579_s4 = sadd.s32 4294967294, %s2941_s30  }
0x10b5   : > { %s2272_s25 = sand.u32 1, %s3579_s4  }
0x10b6   : > { %s2273_s10 = scalar_lea.sflag [#allocation5], %s2272_s25 }
0x10b7   : > { %2924 = dma.done.wait (!%p2728_p12), %s2273_s10, 512  }
0x10b8   : > { %2926 = vsyncadd (!%p2728_p12), %s2273_s10, 4294966784  ;;  %s3580_s30 = sld [smem:[#allocation11_spill]]  ;;  %s3581_s3 = sld [smem:[#allocation9_spill]] }
0x10b9   : > { %s3582_s28 = sld [smem:[#allocation10_spill]]  ;;  %s3583_s29 = sld [smem:[#allocation12_spill]] }
0x10be   : > { %p36_p5 = scmp.ge.s32.totalorder %s3580_s30, 4  }
0x10c0   :  { %38 = sbr.rel (!%p36_p5) target bundleno = 17 (0x11), region = 175 }
0x10c7   :  { %2287 = vsyncpa [#allocation3], 1 }
0x10c8   :  { %2289 = vsyncpa [#allocation3 + $0x1], 1 }
0x10c9   :  { %2290 = vsyncpa [#allocation5], 1 }
0x10ca   :  { %2292 = vsyncpa [#allocation5 + $0x1], 1 }

// kernel: transformer_decoder.2
= control target key start
LH: loop header
LB: loop body
LE: loop exit
PB: predicated region body
PF: predicated region fallthrough
CT: control target
= control target key end

     0   :  { %s3634_s0 = inlined_call_operand.vmem [shape: f32[2,8,32], index: 0, kind: input, shape index: {}]   ;;  %s3635_s1 = inlined_call_operand.vmem [shape: f32[2,16,32], index: 1, kind: input, shape index: {}]   ;;  %s3636_s2 = inlined_call_operand.vmem [shape: f32[2,16,32], index: 2, kind: input, shape index: {}]   ;;  %s3637_s3 = inlined_call_operand.vmem [shape: f32[1,32], index: 3, kind: input, shape index: {}]   ;;  %s3638_s4 = inlined_call_operand.vmem [shape: f32[1,32], index: 4, kind: input, shape index: {}]   ;;  %s3639_s5 = inlined_call_operand.vmem [shape: f32[32,48], index: 5, kind: input, shape index: {}]   ;;  %s3640_s6 = inlined_call_operand.vmem [shape: f32[16,32], index: 6, kind: input, shape index: {}]   ;;  %s3641_s7 = inlined_call_operand.vmem [shape: f32[1,32], index: 7, kind: input, shape index: {}]   ;;  %s3642_s8 = inlined_call_operand.vmem [shape: f32[1,32], index: 8, kind: input, shape index: {}]   ;;  %s3643_s9 = inlined_call_operand.vmem [shape: f32[1,32], index: 9, kind: input, shape index: {}]   ;;  %s3644_s10 = inlined_call_operand.vmem [shape: f32[32,16], index: 10, kind: input, shape index: {}]   ;;  %s3645_s11 = inlined_call_operand.vmem [shape: f32[32,32], index: 11, kind: input, shape index: {}]   ;;  %s3646_s12 = inlined_call_operand.vmem [shape: f32[16,32], index: 12, kind: input, shape index: {}]   ;;  %s3647_s13 = inlined_call_operand.vmem [shape: f32[1,32], index: 13, kind: input, shape index: {}]   ;;  %s3648_s14 = inlined_call_operand.vmem [shape: f32[1,32], index: 14, kind: input, shape index: {}]   ;;  %s3649_s15 = inlined_call_operand.vmem [shape: f32[1,32], index: 15, kind: input, shape index: {}]   ;;  %s3650_s16 = inlined_call_operand.vmem [shape: f32[32,64], index: 16, kind: input, shape index: {}]   ;;  %s3651_s17 = inlined_call_operand.hbm [shape: f32[1,64], index: 17, kind: input, shape index: {}]   ;;  %s3652_s18 = inlined_call_operand.vmem [shape: f32[64,32], index: 18, kind: input, shape index: {}]   ;;  %s3653_s19 = inlined_call_operand.hbm [shape: f32[1,32], index: 19, kind: input, shape index: {}]   ;;  %s3654_s20 = inlined_call_operand.vmem [shape: f32[2,8,32], index: 20, kind: output, shape index: {0}]   ;;  %s3655_s21 = inlined_call_operand.hbm [shape: f32[2,2,8,8], index: 21, kind: output, shape index: {1}]   ;;  %s3656_s22 = inlined_call_operand.hbm [shape: f32[2,2,8,16], index: 22, kind: output, shape index: {2}]  }
   0x1   :  { %3677 = sst [smem:[#allocation20_spill]] %s3634_s0 }
   0x2   :  { %3678 = sst [smem:[#allocation21_spill]] %s3635_s1 }
   0x3   :  { %3679 = sst [smem:[#allocation22_spill]] %s3636_s2 }
   0x4   :  { %3680 = sst [smem:[#allocation23_spill]] %s3637_s3 }
   0x5   :  { %3681 = sst [smem:[#allocation24_spill]] %s3638_s4 }
   0x6   :  { %3682 = sst [smem:[#allocation25_spill]] %s3639_s5 }
   0x7   :  { %3683 = sst [smem:[#allocation26_spill]] %s3640_s6 }
   0x8   :  { %3684 = sst [smem:[#allocation27_spill]] %s3641_s7 }
   0x9   :  { %3685 = sst [smem:[#allocation28_spill]] %s3642_s8 }
   0xa   :  { %3686 = sst [smem:[#allocation29_spill]] %s3643_s9 }
   0xb   :  { %3687 = sst [smem:[#allocation30_spill]] %s3644_s10 }
   0xc   :  { %3688 = sst [smem:[#allocation31_spill]] %s3645_s11 }
   0xd   :  { %3689 = sst [smem:[#allocation32_spill]] %s3654_s20 }
   0xe   :  { %28 = vsyncpa [#allocation3], 0 }
   0xf   :  { %29 = vsyncpa [#allocation6], 0 }
  0x10   :  { %30 = vsyncpa [#allocation4], 0 }
  0x11   :  { %32 = vsyncpa [#allocation4 + $0x1], 0 }
  0x12   :  { %33 = vsyncpa [#allocation9], 0 }
  0x13   :  { %35 = vsyncpa [#allocation9 + $0x1], 0  ;;  %s3161_s3 = smov 0   ;;  %s3163_s28 = smov 0  }
  0x14   :  { %s3165_s29 = smov 0   ;;  %s3167_s30 = smov 0  }
  0x15 LB: > { %3690 = sst [smem:[#allocation14_spill]] %s3018_s3  ;;  %s3182_s4 = sadd.s32 4294967295, %s3030_s30   ;;  %s3030_s30 = sphi %s3167_s30, %s3732_s30   ;;  %s3026_s29 = sphi %s3165_s29, %s3734_s29   ;;  %s3022_s28 = sphi %s3163_s28, %s3736_s28   ;;  %s3018_s3 = sphi %s3161_s3, %s3735_s3  }
  0x16   : > { %3691 = sst [smem:[#allocation15_spill]] %s3026_s29  ;;  %s2430_s0 = sadd.s32 4294967294, %s3030_s30  }
  0x17   : > { %3692 = sst [smem:[#allocation16_spill]] %s3030_s30  ;;  %s3186_s23 = sadd.s32 1, %s3030_s30  }
  0x18   : > { %3693 = sst [smem:[#allocation17_spill]] %s3186_s23  ;;  %s509_s1 = sadd.s32 1, %s3026_s29 }
  0x19   : > { %s506_s5 = ssub.s32 %s3030_s30, %s3186_s23  ;;  %p519_p0 = scmp.ne.s32.totalorder %s3026_s29, %s3022_s28 }
  0x1a   : > { %p507_p1 = scmp.eq.s32.totalorder %s506_s5, 0  ;;  %p520_p2 = scmp.eq.s32.totalorder %s3182_s4, 1 }
  0x1b   : > { %p525_p3 = scmp.ne.s32.totalorder %s3022_s28, %s3018_s3  ;;  %p526_p4 = scmp.eq.s32.totalorder %s2430_s0, 1 }
  0x1c   : > { %s3197_s24 = scalar_select %p507_p1, %s3026_s29, %s509_s1  }
  0x1d   : > { %p3199_p5 = por %p520_p2, %p519_p0  ;;  %p3203_p6 = por %p526_p4, %p525_p3 }
  0x1e   : > { %3694 = sst [smem:[#allocation18_spill]] %s3197_s24  ;;  %p2431_p7 = scmp.ge.s32.totalorder %s3030_s30, 1 }
  0x1f   : > { %s3695_s6 = scalar_select %p3199_p5, 1, 0 }
  0x20   : > { %s3696_s25 = scalar_select %p3203_p6, 1, 0 }
  0x21   : > { %p559_p8 = scmp.lt.s32.totalorder %s3030_s30, 3  ;;  %p3665_p9 = scmp.eq.s32.totalorder %s3182_s4, 0 }
  0x22   : > { %3697 = sst [smem:[#allocation19_spill]] %s3696_s25  ;;  %s3032_s2 = smov [#allocation2]  }
  0x23   : > { %p3210_p10 = pnand %p2431_p7, %p559_p8  ;;  %s614_s27 = sshll.u32 %s3032_s2, 4  ;;  %s615_s27 = int_to_ptr.vmem [resolvable:$true] %s614_s27 }
  0x24   : > { %s3033_s0 = smov [#allocation5]   ;;  %s2872_s23 = scalar_lea.hbm %s3651_s17, 16 }
  0x25   : > { %s3698_s26 = scalar_select %p3210_p10, 1, 0 }
  0x26   : > { %p2770_p11 = pneg %p3210_p10  ;;  %s628_s1 = sshll.u32 %s3033_s0, 4  ;;  %s3222_s1 = int_to_ptr.vmem [resolvable:$true] %s628_s1 }
  0x27   : > { %p2873_p13 = scmp.ne.s32.totalorder %s3651_s17, %s2872_s23  ;;  %p2879_p3 = scmp.lt.u32.totalorder %s2872_s23, %s3651_s17 }
  0x28   : > { %p3218_p12 = pnand %p3665_p9, %p2770_p11 }
  0x2a   : > { %p2874_p0 = pneg %p3218_p12 }
  0x2c   : > { %p2875_p1 = pnand %p2874_p0, %p2873_p13 }
  0x2e   : > { %p2876_p2 = pneg %p2875_p1 }
  0x30   : > { %p2881_p4 = pnand %p2879_p3, %p2876_p2 }
  0x32   : > { %2884 = shalt.err (!%p2881_p4)
}
  0x33   : > { %s2885_s30 = scalar_lea.vmem %s615_s27, 16  ;;  %s2892_s29 = scalar_lea.vmem %s615_s27, 32 }
  0x34   : > { %p2886_p7 = scmp.ne.s32.totalorder %s615_s27, %s2885_s30  ;;  %p2893_p9 = scmp.lt.s32.totalorder %s615_s27, %s615_s27 }
  0x35   : > { %p2894_p6 = scmp.lt.s32.totalorder %s2892_s29, %s2885_s30 }
  0x36   : > { %p2888_p8 = pnand %p2886_p7, %p2874_p0 }
  0x37   : > { %p2895_p5 = por %p2894_p6, %p2893_p9 }
  0x38   : > { %p2889_p11 = pneg %p2888_p8 }
  0x3a   : > { %p2896_p10 = pnand %p2895_p5, %p2889_p11 }
  0x3c   : > { %2899 = shalt.err (!%p2896_p10)
}
  0x3d   : > { %2773 = dma.hbm_to_vmem [thread:$0]  (!%p3218_p12), %s3651_s17, 16, %s615_s27, [#allocation3]  }
  0x3e   : > { %s2900_s2 = scalar_lea.hbm %s3653_s19, 16 }
  0x3f   : > { %p2901_p13 = scmp.ne.s32.totalorder %s3653_s19, %s2900_s2  ;;  %p2907_p9 = scmp.lt.u32.totalorder %s2900_s2, %s3653_s19 }
  0x41   : > { %p2903_p6 = pnand %p2901_p13, %p2874_p0 }
  0x43   : > { %p2904_p5 = pneg %p2903_p6 }
  0x45   : > { %p2909_p10 = pnand %p2907_p9, %p2904_p5 }
  0x47   : > { %2912 = shalt.err (!%p2909_p10)
}
  0x48   : > { %s2913_s27 = scalar_lea.vmem %s3222_s1, 16  ;;  %s2920_s20 = scalar_lea.vmem %s3222_s1, 32 }
  0x49   : > { %p2914_p1 = scmp.ne.s32.totalorder %s3222_s1, %s2913_s27  ;;  %p2921_p4 = scmp.lt.s32.totalorder %s3222_s1, %s3222_s1 }
  0x4a   : > { %p2922_p7 = scmp.lt.s32.totalorder %s2920_s20, %s2913_s27 }
  0x4b   : > { %p2916_p2 = pnand %p2914_p1, %p2874_p0 }
  0x4c   : > { %p2923_p8 = por %p2922_p7, %p2921_p4 }
  0x4d   : > { %p2917_p3 = pneg %p2916_p2 }
  0x4f   : > { %p2924_p11 = pnand %p2923_p8, %p2917_p3 }
  0x51   : > { %2927 = shalt.err (!%p2924_p11)
}
  0x52   : > { %2776 = dma.hbm_to_vmem [thread:$0]  (!%p3218_p12), %s3653_s19, 16, %s3222_s1, [#allocation6]  }
  0x53   : > { %p3700_p13 = scmp.ne.s32.totalorder %s3698_s26, 0 }
  0x54   : > { %p3701_p0 = scmp.eq.s32.totalorder (!%p3700_p13), %s3182_s4, 0 }
  0x55   : > { %664 = sbr.rel (%p3700_p13) target bundleno = 4320 (0x10e0), region = 100 }
  0x5c   : > { %3001 = dma.done.wait (%p3701_p0), [#allocation3], 16   ;;  %p3702_p6 = pmov %p3701_p0 }
  0x5d   : > { %p3703_p5 = pmov %p3701_p0 }
  0x5e   : > { %3003 = vsyncadd (%p3702_p6), [#allocation3], 4294967280 }
  0x5f   : > { %3005 = dma.done.wait (%p3703_p5), [#allocation6], 16   ;;  %p3704_p9 = pmov %p3701_p0 }
  0x60   : > { %p748_p10 = scmp.lt.s32.totalorder %s3182_s4, 1  ;;  %s3705_s25 = sld [smem:[#allocation20_spill]]  ;;  %vm771_vm0 = vcmask 261120   ;;  %v3034_v10 = vmov 0.0|0.0   ;;  %vm3035_vm1 = vmmov 0   ;;  %v3036_v13 = vmov 0.0  }
  0x61   : > { %3007 = vsyncadd (%p3704_p9), [#allocation6], 4294967280  ;;  %s3706_s29 = sld [smem:[#allocation25_spill]]  ;;  %2692 = vmatprep.subr.bf16.mxu0 %v3034_v10  ;;  %2564 = vmatprep.mubr.msk.f32.mxu0 %vm3035_vm1, %v3036_v13  ;;  %s3708_s30 = sld [smem:[#allocation23_spill]]  ;;  %vm882_vm2 = vcmask 64512   ;;  %vm1221_vm3 = vcmask 130048  }
  0x62   : > { %s3284_s5 = scalar_select %p748_p10, %s3182_s4, 1  ;;  %2572 = vmatprep.subr.mxu1 %v3036_v13  ;;  %2574 = vmatprep.mubr.msk.f32.mxu1 %vm3035_vm1, %v3036_v13  ;;  %vm2725_vm4 = vmpackc.low %vm882_vm2, %vm882_vm2  ;;  %vm2148_vm5 = vcmask 523264  }
  0x63   : > { %s3709_s24 = sld [smem:[#allocation24_spill]]  ;;  %s3674_s3 = smov 120  }
  0x64   : > { %s3668_s26 = sshll.u32 %s3284_s5, 3  ;;  %s3673_s1 = smov 112  }
  0x65   : > { %s3672_s23 = smov 104   ;;  %s3345_s0 = sand.u32 1, %s3022_s28  }
  0x66   : > { %s751_s2 = scalar_lea.vmem %s3705_s25, %s3668_s26  ;;  %s3040_s25 = smov 88  }
  0x67   : > { %v3292_v0 = vld [vmem:[%s751_s2] sm:$0xff]  ;;  %s3707_s27 = smov %s3706_s29  ;;  %s3041_s2 = smov 96  }
  0x68   : > { %v772_v1 = vsel %vm771_vm0, %v3292_v0, 0.0  ;;  %v802_v7 = vld [vmem:[%s3706_s29] sm:$0xff]  ;;  %v803_v8 = vld [vmem:[%s3707_s27 + $0x8] sm:$0xff]  ;;  %v804_v9 = vld [vmem:[%s3707_s27 + $0x10] sm:$0xff]  ;;  %s3711_s7 = sld [smem:[#allocation27_spill]]  ;;  %s3712_s10 = sld [smem:[#allocation30_spill]] }
  0x69   : > { %773 = vadd.xlane.f32.xlu0 %v772_v1  ;;  %v2693_v11 = vpack.c.bf16 %v803_v8, %v802_v7  ;;  %v805_v12 = vld [vmem:[%s3707_s27 + $0x18] sm:$0xff]  ;;  %v2446_v19 = vld [vmem:[%s3708_s30] ss:$0 sm:$0xff]  ;;  %s3669_s30 = sshll.u32 %s3345_s0, 4  ;;  %s3713_s11 = sld [smem:[#allocation31_spill]] }
  0x6a   : > { %v2696_v14 = vpack.c.bf16 %v805_v12, %v804_v9  ;;  %v2447_v21 = vld [vmem:[%s3709_s24] ss:$0 sm:$0xff]  ;;  %s3352_s29 = scalar_lea.vmem [#allocation7], %s3669_s30  ;;  %s3670_s30 = smov 8  }
  0x6b   : > { %2694 = vmatpush3.bf16.msra.mxu0 %v2693_v11  ;;  %s3715_s8 = sld [smem:[#allocation28_spill]]  ;;  %s3716_s9 = sld [smem:[#allocation29_spill]] }
  0x6c   : > { %2695 = vmatprep.subr.bf16.mxu0 %v3034_v10  ;;  %p3723_p1 = scmp.ne.s32.totalorder %s3695_s6, 0 }
  0x6f   : > { %2697 = vmatpush3.bf16.msra.mxu0 %v2696_v14  ;;  %v1333_v14 = vld [vmem:[%s3712_s10] sm:$0xff] }
  0x70   : > { %2567 = vmatprep.subr.mxu0 %v3036_v13 }
  0xf6   : > { %v774_v2 = vpop.xlane.xlu0 %773 }
  0xf7   : > { %v776_v3 = vmul.f32 0.03125, %v774_v2  ;;  %v2457_v2 = vld [vmem:[%s3711_s7] ss:$0 sm:$0xff]  ;;  %s2490_s7 = sshll.u32 %s3284_s5, 4 }
  0xf9   : > { %v777_v4 = vsub.f32 %v3292_v0, %v776_v3 }
  0xfb   : > { %v778_v5 = vmul.f32 %v777_v4, %v777_v4 }
  0xfd   : > { %v779_v6 = vsel %vm771_vm0, %v778_v5, 0.0 }
  0xfe   : > { %780 = vadd.xlane.f32.xlu0 %v779_v6 }
 0x18b   : > { %v781_v15 = vpop.xlane.xlu0 %780 }
 0x18c   : > { %v782_v16 = vmul.f32 0.03125, %v781_v15 }
 0x18e   : > { %v783_v17 = vadd.f32 1e-05, %v782_v16  ;;  %v1335_v16 = vld [vmem:[%s3712_s10 + $0x10] sm:$0xff] }
 0x190   : > { %2848 = vrsqrt.f32 %v783_v17  ;;  %v1336_v17 = vld [vmem:[%s3712_s10 + $0x18] sm:$0xff] }
 0x19a   : > { %v2849_v18 = vpop.eup %2848 }
 0x19b   : > { %v785_v20 = vmul.f32 %v2849_v18, %v777_v4  ;;  %v1410_v18 = vld [vmem:[%s3713_s11] sm:$0xff] }
 0x19d   : > { %v793_v22 = vmul.f32 %v2446_v19, %v785_v20  ;;  %v2705_v19 = vpack.c.bf16 %v1336_v17, %v1335_v16  ;;  %v1411_v20 = vld [vmem:[%s3713_s11 + $0x8] sm:$0xff] }
 0x19f   : > { %v801_v23 = vadd.f32 %v2447_v21, %v793_v22  ;;  %v2707_v21 = vpack.c.bf16 %v1411_v20, %v1410_v18  ;;  %v1412_v22 = vld [vmem:[%s3713_s11 + $0x10] sm:$0xff] }
 0x1a1   : > { %2565 = vmatmul.mubr.msk.f32.vlgmr.msra.gmra.mrb[0].mxu0 %vm771_vm0, %v801_v23  ;;  %v1413_v23 = vld [vmem:[%s3713_s11 + $0x18] sm:$0xff] }
 0x1a2   : > { %2569 = vmatprep.mubr.msk.f32.mxu0 %vm3035_vm1, %v3036_v13 }
 0x274   : > { %v875_v24 = vpop.f32.mrb[0].mxu0 }
 0x275   : > { %1046 = vrot.lane.b32.xlu0 %v875_v24, %s3674_s3  ;;  %880 = vrot.lane.b32.xlu1 %v875_v24, %s3673_s1  ;;  %v2566_v25 = vpop.f32.mrb[1].mxu0  ;;  %s3721_s3 = sshll.u32 %s3345_s0, 4 }
 0x276   : > { %s3454_s1 = scalar_lea.vmem [#allocation8], %s3721_s3 }
 0x279   : > { %1048 = vrot.lane.b32.xlu1 %v875_v24, %s3672_s23  ;;  %s3719_s23 = smov 112  }
 0x2e7   : > { %v881_v26 = vpop.permute.xlu1 %880  ;;  %v1047_v28 = vpop.permute.xlu0 %1046 }
 0x2e8   : > { %2568 = vmatpush3.xpose.msk.msra.mxu0 %vm882_vm2, %v881_v26 }
 0x2e9   : > { %2577 = vmatprep.subr.mxu0 %v3036_v13 }
 0x2eb   : > { %2570 = vmatmul.mubr.msk.f32.vlgmr.msra.gmra.mrb[2].mxu0 %vm882_vm2, %v875_v24  ;;  %v1049_v27 = vpop.permute.xlu1 %1048 }
 0x2ec   : > { %2578 = vmatpush3.xpose.msk.msra.mxu0 %vm882_vm2, %v1049_v27  ;;  %2579 = vmatprep.mubr.msk.f32.mxu0 %vm3035_vm1, %v3036_v13 }
 0x2ed   : > { %2698 = vmatprep.subr.bf16.mxu0 %v3034_v10 }
 0x2ef   : > { %2580 = vmatmul.mubr.msk.f32.vlgmr.msra.gmra.mrb[4].mxu0 %vm882_vm2, %v1047_v28 }
 0x2f0   : > { %2591 = vmatprep.mubr.msk.f32.mxu0 %vm3035_vm1, %v3036_v13 }
 0x3be   : > { %v953_v29 = vpop.f32.mrb[2].mxu0 }
 0x3bf   : > { %v957_v30 = vmul.f32 0.35355338, %v953_v29  ;;  %v2571_v31 = vpop.f32.mrb[3].mxu0 }
 0x3c0   : > { %v2458_v31 = vld [vmem:[%s3715_s8] ss:$0 sm:$0xff]  ;;  %s3676_s8 = sshll.u32 %s3182_s4, 8 }
 0x3c1   : > { %v958_v32 = vsel %vm882_vm2, %v957_v30, -inf  ;;  %s3542_s3 = scalar_lea.hbm %s3655_s21, %s3676_s8 }
 0x3c2   : > { %959 = vmax.xlane.f32.xlu1 %v958_v32  ;;  %v1120_v33 = vpop.f32.mrb[4].mxu0 }
 0x3c3   : > { %v1124_v34 = vmul.f32 0.35355338, %v1120_v33  ;;  %v2581_v35 = vpop.f32.mrb[5].mxu0  ;;  %v2459_v33 = vld [vmem:[%s3716_s9] ss:$0 sm:$0xff] }
 0x3c5   : > { %v1125_v36 = vsel %vm882_vm2, %v1124_v34, -inf }
 0x3c6   : > { %1126 = vmax.xlane.f32.xlu0 %v1125_v36 }
 0x3dc   : > { %1138 = vrot.lane.b32.xlu0 %v875_v24, %s3040_s25  ;;  %s3710_s25 = sld [smem:[#allocation26_spill]] }
 0x3e2   : > { %v1219_v55 = vld [vmem:[%s3710_s25] sm:$0xff]  ;;  %v1220_v56 = vld [vmem:[%s3710_s25 + $0x8] sm:$0xff] }
 0x3e3   : > { %v2699_v57 = vpack.c.bf16 %v1220_v56, %v1219_v55 }
 0x3e5   : > { %2700 = vmatpush3.bf16.msra.mxu0 %v2699_v57 }
 0x3e6   : > { %2708 = vmatprep.subr.bf16.mxu0 %v2707_v21 }
 0x44f   : > { %v960_v37 = vpop.xlane.xlu1 %959 }
 0x450   : > { %v961_v38 = vsub.f32 %v957_v30, %v960_v37 }
 0x452   : > { %v962_v39 = vmul.f32 1.442695, %v961_v38 }
 0x453   : > { %v1127_v40 = vpop.xlane.xlu0 %1126 }
 0x454   : > { %2850 = vpow2.f32 %v962_v39  ;;  %v1128_v41 = vsub.f32 %v1124_v34, %v1127_v40 }
 0x456   : > { %v1129_v42 = vmul.f32 1.442695, %v1128_v41 }
 0x457   : > { %v1139_v52 = vpop.permute.xlu0 %1138 }
 0x458   : > { %2852 = vpow2.f32 %v1129_v42 }
 0x45e   : > { %v2851_v43 = vpop.eup %2850 }
 0x45f   : > { %v964_v44 = vsel %vm882_vm2, %v2851_v43, 0.0 }
 0x460   : > { %965 = vadd.xlane.f32.xlu1 %v964_v44 }
 0x462   : > { %v2853_v45 = vpop.eup %2852 }
 0x463   : > { %v1131_v46 = vsel %vm882_vm2, %v2853_v45, 0.0 }
 0x464   : > { %1132 = vadd.xlane.f32.xlu1 %v1131_v46 }
 0x475   : > { %970 = vrot.lane.b32.xlu1 %v875_v24, %s3041_s2  ;;  %v2711_v24 = vpack.c.bf16 %v1413_v23, %v1412_v22  ;;  %s3714_s2 = sld [smem:[#allocation21_spill]] }
 0x47b   : > { %s756_s20 = scalar_lea.vmem %s3714_s2, %s2490_s7  ;;  %s3717_s2 = sld [smem:[#allocation22_spill]] }
 0x47c   : > { %v767_v25 = vld [vmem:[%s756_s20] sm:$0xff]  ;;  %v768_v26 = vld [vmem:[%s756_s20 + $0x8] sm:$0xff] }
 0x481   : > { %s761_s20 = scalar_lea.vmem %s3717_s2, %s2490_s7  ;;  %s3718_s7 = smov 120  }
 0x482   : > { %v769_v36 = vld [vmem:[%s761_s20] sm:$0xff]  ;;  %v770_v37 = vld [vmem:[%s761_s20 + $0x8] sm:$0xff]  ;;  %s2250_s20 = sshll.u32 %s3352_s29, 4  ;;  %s3043_s2 = smov [#allocation7]   ;;  %s3544_s20 = int_to_ptr.vmem [resolvable:$true] %s2250_s20 }
 0x483   : > { %s2928_s26 = scalar_lea.vmem %s3544_s20, 256  ;;  %s2932_s9 = sshll.u32 %s3043_s2, 4  ;;  %s2933_s9 = int_to_ptr.vmem [resolvable:$false] %s2932_s9 }
 0x484   : > { %p2929_p12 = scmp.ne.s32.totalorder %s3544_s20, %s2928_s26  ;;  %p2935_p4 = scmp.lt.s32.totalorder %s3544_s20, %s2933_s9 }
 0x486   : > { %p2930_p2 = pnand %p2929_p12, %p3723_p1 }
 0x488   : > { %p2931_p3 = pneg %p2930_p2 }
 0x4ed   : > { %v966_v47 = vpop.xlane.xlu1 %965 }
 0x4ee   : > { %2854 = vrcp.f32 %v966_v47 }
 0x4f1   : > { %v1133_v48 = vpop.xlane.xlu1 %1132 }
 0x4f2   : > { %2856 = vrcp.f32 %v1133_v48 }
 0x4f5   : > { %v971_v49 = vpop.permute.xlu1 %970 }
 0x4f6   : > { %2573 = vmatpush3.msra.mxu1 %v971_v49 }
 0x4f7   : > { %2582 = vmatprep.subr.mxu1 %v3036_v13 }
 0x4f8   : > { %v2855_v50 = vpop.eup %2854 }
 0x4f9   : > { %v968_v51 = vmul.f32 %v2855_v50, %v2851_v43 }
 0x4fb   : > { %2575 = vmatmul.mubr.msk.f32.vlgmr.msra.gmra.mrb[0].mxu1 %vm882_vm2, %v968_v51  ;;  %969 = vst.msk [vmem:[%s3352_s29] sm:$0xff] %vm882_vm2, %v968_v51 }
 0x4fc   : > { %v2857_v53 = vpop.eup %2856  ;;  %2583 = vmatpush3.msra.mxu1 %v1139_v52  ;;  %2584 = vmatprep.mubr.msk.f32.mxu1 %vm3035_vm1, %v3036_v13 }
 0x4fd   : > { %v1135_v54 = vmul.f32 %v2857_v53, %v2853_v45  ;;  %2701 = vmatprep.subr.bf16.mxu1 %v3034_v10 }
 0x4ff   : > { %2585 = vmatmul.mubr.msk.f32.vlgmr.msra.gmra.mrb[2].mxu1 %vm882_vm2, %v1135_v54  ;;  %2454 = vst.msk [vmem:[%s3352_s29 + $0x8] sm:$0xff] %vm882_vm2, %v1135_v54  ;;  %s2934_s29 = scalar_lea.vmem %s2933_s9, 512 }
 0x500   : > { %2602 = vmatprep.mubr.msk.f32.mxu1 %vm3035_vm1, %v3036_v13  ;;  %p2936_p7 = scmp.lt.s32.totalorder %s2934_s29, %s2928_s26 }
 0x502   : > { %p2937_p8 = por %p2936_p7, %p2935_p4 }
 0x504   : > { %p2938_p11 = pnand %p2937_p8, %p2931_p3 }
 0x5ce   : > { %v1042_v58 = vpop.f32.mrb[0].mxu1 }
 0x5cf   : > { %v2576_v59 = vpop.f32.mrb[1].mxu1 }
 0x5d2   : > { %v1210_v60 = vpop.f32.mrb[2].mxu1 }
 0x5d3   : > { %1215 = vrot.lane.b32.xlu1 %v1210_v60, %s3670_s30  ;;  %v2586_v61 = vpop.f32.mrb[3].mxu1  ;;  %s3720_s30 = smov 104  }
 0x645   : > { %v1216_v62 = vpop.permute.xlu1 %1215 }
 0x646   : > { %v1218_v63 = vsel %vm882_vm2, %v1042_v58, %v1216_v62 }
 0x647   : > { %2592 = vmatmul.mubr.msk.f32.vlgmr.msra.gmra.mrb[6].mxu0 %vm1221_vm3, %v1218_v63 }
 0x648   : > { %2710 = vmatpush3.bf16.msra.mxu0 %v2707_v21  ;;  %2613 = vmatprep.mubr.msk.f32.mxu0 %vm771_vm0, %v767_v25  ;;  %v1931_v25 = vld [vmem:[%s3646_s12] sm:$0xff] }
 0x649   : > { %2712 = vmatprep.subr.bf16.mxu0 %v2711_v24 }
 0x64c   : > { %2714 = vmatpush3.bf16.msra.mxu0 %v2711_v24 }
 0x64d   : > { %2723 = vmatprep.subr.bf16.mxu0 %v3034_v10 }
 0x64f   : > { %2614 = vmatmul.mubr.msk.f32.vlgmr.msra.gmra.mrb[8].mxu0 %vm771_vm0, %v768_v26  ;;  %v1932_v26 = vld [vmem:[%s3646_s12 + $0x8] sm:$0xff] }
 0x650   : > { %2631 = vmatprep.mubr.msk.f32.mxu0 %vm3035_vm1, %v3036_v13 }
 0x71a   : > { %v1291_v1 = vpop.f32.mrb[6].mxu0 }
 0x71b   : > { %v1295_v3 = vadd.f32 %v1291_v1, %v3292_v0  ;;  %v2593_v4 = vpop.f32.mrb[7].mxu0  ;;  %v1334_v0 = vld [vmem:[%s3712_s10 + $0x8] sm:$0xff] }
 0x71c   : > { %v2702_v15 = vpack.c.bf16 %v1334_v0, %v1333_v14 }
 0x71d   : > { %v3377_v5 = vadd.f32 %v2457_v2, %v1295_v3 }
 0x71e   : > { %2703 = vmatpush3.bf16.msra.mxu1 %v2702_v15 }
 0x71f   : > { %v1304_v6 = vsel %vm771_vm0, %v3377_v5, 0.0  ;;  %2704 = vmatprep.subr.bf16.mxu1 %v3034_v10 }
 0x720   : > { %1305 = vadd.xlane.f32.xlu1 %v1304_v6 }
 0x722   : > { %2706 = vmatpush3.bf16.msra.mxu1 %v2705_v19  ;;  %v2615_v38 = vpop.f32.mrb[8].mxu0 }
 0x723   : > { %2716 = vmatprep.subr.bf16.mxu1 %v2707_v21  ;;  %v1486_v39 = vpop.f32.mrb[9].mxu0 }
 0x724   : > { %v2843_v40 = vpack.i.bf16 %v2615_v38, %v1486_v39 }
 0x7ad   : > { %v1306_v7 = vpop.xlane.xlu1 %1305 }
 0x7ae   : > { %v1307_v8 = vmul.f32 0.03125, %v1306_v7 }
 0x7b0   : > { %v1308_v9 = vsub.f32 %v3377_v5, %v1307_v8 }
 0x7b2   : > { %v1309_v11 = vmul.f32 %v1308_v9, %v1308_v9 }
 0x7b4   : > { %v1310_v12 = vsel %vm771_vm0, %v1309_v11, 0.0 }
 0x7b5   : > { %1311 = vadd.xlane.f32.xlu0 %v1310_v12 }
 0x842   : > { %v1312_v27 = vpop.xlane.xlu0 %1311 }
 0x843   : > { %v1313_v28 = vmul.f32 0.03125, %v1312_v27  ;;  %v2738_v27 = vpack.c.bf16 %v1932_v26, %v1931_v25 }
 0x845   : > { %v1314_v29 = vadd.f32 1e-05, %v1313_v28 }
 0x847   : > { %2858 = vrsqrt.f32 %v1314_v29 }
 0x851   : > { %v2859_v30 = vpop.eup %2858 }
 0x852   : > { %v1316_v32 = vmul.f32 %v2859_v30, %v1308_v9 }
 0x854   : > { %v1324_v34 = vmul.f32 %v2458_v31, %v1316_v32 }
 0x856   : > { %v1332_v35 = vadd.f32 %v2459_v33, %v1324_v34 }
 0x858   : > { %2603 = vmatmul.mubr.msk.f32.vlgmr.msra.gmra.mrb[4].mxu1 %vm771_vm0, %v1332_v35  ;;  %v2475_v35 = vld [vmem:[%s3647_s13] ss:$0 sm:$0xff] }
 0x859   : > { %2718 = vmatpush3.bf16.msra.mxu1 %v2707_v21  ;;  %2624 = vmatprep.mubr.msk.f32.mxu1 %vm771_vm0, %v769_v36 }
 0x85a   : > { %2720 = vmatprep.subr.bf16.mxu1 %v2711_v24 }
 0x85d   : > { %2722 = vmatpush3.bf16.msra.mxu1 %v2711_v24 }
 0x85e   : > { %2727 = vmatprep.subr.bf16.mxu1 %v3034_v10 }
 0x860   : > { %2625 = vmatmul.mubr.msk.f32.vlgmr.msra.gmra.mrb[6].mxu1 %vm771_vm0, %v770_v37 }
 0x861   : > { %2638 = vmatprep.mubr.msk.f32.mxu1 %vm3035_vm1, %v3036_v13 }
 0x92b   : > { %v1406_v41 = vpop.f32.mrb[4].mxu1 }
 0x92c   : > { %1751 = vrot.lane.b32.xlu0 %v1406_v41, %s3718_s7  ;;  %v2604_v42 = vpop.f32.mrb[5].mxu1 }
 0x933   : > { %v2626_v43 = vpop.f32.mrb[6].mxu1 }
 0x934   : > { %v1577_v44 = vadd.f32 %v2626_v43, %v2615_v38  ;;  %v1567_v45 = vpop.f32.mrb[7].mxu1 }
 0x935   : > { %v1576_v46 = vadd.f32 %v1567_v45, %v1486_v39 }
 0x937   : > { %v2833_v47 = vpack.i.bf16 %v1577_v44, %v1576_v46  ;;  %v2724_v48 = vpack.c.bf16 %v1577_v44, %v1576_v46  ;;  %v2044_v44 = vld [vmem:[%s3650_s16] sm:$0xff]  ;;  %v2046_v46 = vld [vmem:[%s3650_s16 + $0x10] sm:$0xff] }
 0x939   : > { %2834 = vrot.lane.b32.xlu1 %v2833_v47, %s3718_s7  ;;  %2726 = vmatpush3.bf16.xpose.msk.msra.mxu0 %vm2725_vm4, %v2724_v48  ;;  %s3722_s7 = smov 8   ;;  %v2047_v47 = vld [vmem:[%s3650_s16 + $0x18] sm:$0xff] }
 0x93a   : > { %2730 = vmatprep.subr.bf16.mxu0 %v3034_v10  ;;  %v2744_v48 = vpack.c.bf16 %v2047_v47, %v2046_v46 }
 0x940   : > { %2632 = vmatmul.mubr.msk.f32.vlgmr.msra.gmra.mrb[10].mxu0 %vm882_vm2, %v1406_v41 }
 0x941   : > { %2645 = vmatprep.mubr.msk.f32.mxu0 %vm3035_vm1, %v3036_v13 }
 0x99e   : > { %v1752_v53 = vpop.permute.xlu0 %1751 }
 0x9ab   : > { %v2835_v49 = vpop.permute.xlu1 %2834 }
 0x9ac   : > { %v2837_v50 = vunpack.i.h.bf16 %v2835_v49  ;;  %v2836_v51 = vunpack.i.l.bf16 %v2835_v49 }
 0x9ae   : > { %v2731_v52 = vpack.c.bf16 %v2837_v50, %v2836_v51 }
 0x9b0   : > { %2733 = vmatpush3.bf16.xpose.msk.msra.mxu0 %vm2725_vm4, %v2731_v52 }
 0x9b1   : > { %2740 = vmatprep.subr.bf16.mxu0 %v3034_v10 }
 0x9b7   : > { %2646 = vmatmul.mubr.msk.f32.vlgmr.msra.gmra.mrb[12].mxu0 %vm882_vm2, %v1752_v53  ;;  %v2476_v53 = vld [vmem:[%s3648_s14] ss:$0 sm:$0xff] }
 0x9b8   : > { %2670 = vmatprep.mubr.msk.f32.mxu0 %vm3035_vm1, %v3036_v13 }
 0xa13   : > { %v1653_v54 = vpop.f32.mrb[10].mxu0 }
 0xa14   : > { %v1657_v55 = vmul.f32 0.35355338, %v1653_v54  ;;  %v2633_v56 = vpop.f32.mrb[11].mxu0 }
 0xa16   : > { %v1658_v57 = vsel %vm1221_vm3, %v1657_v55, -inf }
 0xa17   : > { %1659 = vmax.xlane.f32.xlu1 %v1658_v57 }
 0xa8a   : > { %v1829_v58 = vpop.f32.mrb[12].mxu0 }
 0xa8b   : > { %v1833_v59 = vmul.f32 0.35355338, %v1829_v58  ;;  %v2647_v60 = vpop.f32.mrb[13].mxu0  ;;  %v2133_v58 = vld [vmem:[%s3652_s18] sm:$0xff] }
 0xa8d   : > { %v1834_v61 = vsel %vm1221_vm3, %v1833_v59, -inf }
 0xa8e   : > { %1835 = vmax.xlane.f32.xlu0 %v1834_v61  ;;  %v2135_v61 = vld [vmem:[%s3652_s18 + $0x10] sm:$0xff] }
 0xaa4   : > { %v1660_v62 = vpop.xlane.xlu1 %1659  ;;  %2839 = vrot.lane.b32.xlu0 %v2843_v40, %s3719_s23 }
 0xaa5   : > { %v1661_v63 = vsub.f32 %v1657_v55, %v1660_v62  ;;  %v2477_v55 = vld [vmem:[%s3649_s15] ss:$0 sm:$0xff]  ;;  %v2136_v62 = vld [vmem:[%s3652_s18 + $0x18] sm:$0xff] }
 0xaa7   : > { %v1662_v1 = vmul.f32 1.442695, %v1661_v63  ;;  %v2750_v63 = vpack.c.bf16 %v2136_v62, %v2135_v61 }
 0xaa9   : > { %2860 = vpow2.f32 %v1662_v1  ;;  %v2137_v1 = vld [vmem:[%s3652_s18 + $0x20] sm:$0xff] }
 0xab3   : > { %v2861_v2 = vpop.eup %2860 }
 0xab4   : > { %v1664_v3 = vsel %vm1221_vm3, %v2861_v2, 0.0 }
 0xab5   : > { %1665 = vadd.xlane.f32.xlu1 %v1664_v3 }
 0xb1b   : > { %v1836_v4 = vpop.xlane.xlu0 %1835 }
 0xb1c   : > { %v1837_v6 = vsub.f32 %v1833_v59, %v1836_v4  ;;  %v2134_v59 = vld [vmem:[%s3652_s18 + $0x8] sm:$0xff]  ;;  %v2139_v4 = vld [vmem:[%s3652_s18 + $0x30] sm:$0xff] }
 0xb1d   : > { %v2747_v60 = vpack.c.bf16 %v2134_v59, %v2133_v58 }
 0xb1e   : > { %v1838_v7 = vmul.f32 1.442695, %v1837_v6  ;;  %v2140_v6 = vld [vmem:[%s3652_s18 + $0x38] sm:$0xff] }
 0xb1f   : > { %v2840_v8 = vpop.permute.xlu0 %2839 }
 0xb20   : > { %2862 = vpow2.f32 %v1838_v7  ;;  %v2842_v9 = vunpack.i.h.bf16 %v2840_v8  ;;  %v2841_v11 = vunpack.i.l.bf16 %v2840_v8  ;;  %v2756_v7 = vpack.c.bf16 %v2140_v6, %v2139_v4  ;;  %v2478_v8 = vld [vmem:[#allocation2] ss:$0 sm:$0xff] }
 0xb22   : > { %v2728_v12 = vpack.c.bf16 %v2842_v9, %v2841_v11 }
 0xb24   : > { %2729 = vmatpush3.bf16.msra.mxu1 %v2728_v12 }
 0xb25   : > { %2734 = vmatprep.subr.bf16.mxu1 %v3034_v10 }
 0xb2a   : > { %v2863_v14 = vpop.eup %2862 }
 0xb2b   : > { %v1840_v0 = vsel %vm1221_vm3, %v2863_v14, 0.0 }
 0xb2c   : > { %1841 = vadd.xlane.f32.xlu1 %v1840_v0 }
 0xb3d   : > { %2844 = vrot.lane.b32.xlu1 %v2843_v40, %s3720_s30 }
 0xb42   : > { %v1666_v15 = vpop.xlane.xlu1 %1665 }
 0xb43   : > { %2864 = vrcp.f32 %v1666_v15 }
 0xb4d   : > { %v2865_v16 = vpop.eup %2864 }
 0xb4e   : > { %v1668_v17 = vmul.f32 %v2865_v16, %v2861_v2  ;;  %v2138_v2 = vld [vmem:[%s3652_s18 + $0x28] sm:$0xff] }
 0xb4f   : > { %v2753_v3 = vpack.c.bf16 %v2138_v2, %v2137_v1 }
 0xb50   : > { %2639 = vmatmul.mubr.msk.f32.vlgmr.msra.gmra.mrb[8].mxu1 %vm1221_vm3, %v1668_v17  ;;  %1669 = vst.msk [vmem:[%s3454_s1] sm:$0xff] %vm1221_vm3, %v1668_v17 }
 0xb51   : > { %2652 = vmatprep.mubr.msk.f32.mxu1 %vm3035_vm1, %v3036_v13 }
 0xbb9   : > { %v1842_v18 = vpop.xlane.xlu1 %1841 }
 0xbba   : > { %2866 = vrcp.f32 %v1842_v18 }
 0xbbd   : > { %v2845_v19 = vpop.permute.xlu1 %2844 }
 0xbbe   : > { %v2847_v20 = vunpack.i.h.bf16 %v2845_v19  ;;  %v2846_v21 = vunpack.i.l.bf16 %v2845_v19 }
 0xbc0   : > { %v2735_v22 = vpack.c.bf16 %v2847_v20, %v2846_v21 }
 0xbc2   : > { %2736 = vmatpush3.bf16.msra.mxu1 %v2735_v22 }
 0xbc3   : > { %2737 = vmatprep.subr.bf16.mxu1 %v3034_v10 }
 0xbc4   : > { %v2867_v23 = vpop.eup %2866 }
 0xbc5   : > { %v1844_v24 = vmul.f32 %v2867_v23, %v2863_v14 }
 0xbc7   : > { %2653 = vmatmul.mubr.msk.f32.vlgmr.msra.gmra.mrb[10].mxu1 %vm1221_vm3, %v1844_v24  ;;  %2472 = vst.msk [vmem:[%s3454_s1 + $0x8] sm:$0xff] %vm1221_vm3, %v1844_v24 }
 0xbc8   : > { %2659 = vmatprep.mubr.msk.f32.mxu1 %vm3035_vm1, %v3036_v13  ;;  %2739 = vmatpush3.bf16.msra.mxu1 %v2738_v27 }
 0xbc9   : > { %2746 = vmatprep.subr.bf16.mxu1 %v3034_v10 }
 0xc23   : > { %v1747_v28 = vpop.f32.mrb[8].mxu1 }
 0xc24   : > { %v2640_v29 = vpop.f32.mrb[9].mxu1 }
 0xc9a   : > { %v1922_v30 = vpop.f32.mrb[10].mxu1 }
 0xc9b   : > { %1927 = vrot.lane.b32.xlu1 %v1922_v30, %s3722_s7  ;;  %v2654_v31 = vpop.f32.mrb[11].mxu1 }
 0xd0d   : > { %v1928_v32 = vpop.permute.xlu1 %1927 }
 0xd0e   : > { %v1930_v33 = vsel %vm882_vm2, %v1747_v28, %v1928_v32 }
 0xd0f   : > { %2660 = vmatmul.mubr.msk.f32.vlgmr.msra.gmra.mrb[12].mxu1 %vm1221_vm3, %v1930_v33 }
 0xd10   : > { %2689 = vmatprep.mubr.msk.f32.mxu1 %vm3035_vm1, %v3036_v13  ;;  %2748 = vmatpush3.bf16.msra.mxu1 %v2747_v60 }
 0xd11   : > { %2749 = vmatprep.subr.bf16.mxu1 %v3034_v10 }
 0xd14   : > { %2751 = vmatpush3.bf16.msra.mxu1 %v2750_v63 }
 0xd15   : > { %2752 = vmatprep.subr.bf16.mxu1 %v3034_v10 }
 0xd18   : > { %2754 = vmatpush3.bf16.msra.mxu1 %v2753_v3 }
 0xd19   : > { %2755 = vmatprep.subr.bf16.mxu1 %v3034_v10 }
 0xd1c   : > { %2757 = vmatpush3.bf16.msra.mxu1 %v2756_v7 }
 0xde2   : > { %v2002_v34 = vpop.f32.mrb[12].mxu1 }
 0xde3   : > { %v2006_v36 = vadd.f32 %v2002_v34, %v3377_v5  ;;  %v2661_v37 = vpop.f32.mrb[13].mxu1  ;;  %v2045_v5 = vld [vmem:[%s3650_s16 + $0x8] sm:$0xff] }
 0xde4   : > { %v2741_v45 = vpack.c.bf16 %v2045_v5, %v2044_v44 }
 0xde5   : > { %v3482_v38 = vadd.f32 %v2475_v35, %v2006_v36 }
 0xde6   : > { %2742 = vmatpush3.bf16.msra.mxu0 %v2741_v45 }
 0xde7   : > { %v2015_v39 = vsel %vm771_vm0, %v3482_v38, 0.0  ;;  %2743 = vmatprep.subr.bf16.mxu0 %v3034_v10 }
 0xde8   : > { %2016 = vadd.xlane.f32.xlu0 %v2015_v39 }
 0xdea   : > { %2745 = vmatpush3.bf16.msra.mxu0 %v2744_v48 }
 0xe75   : > { %v2017_v40 = vpop.xlane.xlu0 %2016 }
 0xe76   : > { %v2018_v41 = vmul.f32 0.03125, %v2017_v40 }
 0xe78   : > { %v2019_v42 = vsub.f32 %v3482_v38, %v2018_v41 }
 0xe7a   : > { %v2020_v43 = vmul.f32 %v2019_v42, %v2019_v42 }
 0xe7c   : > { %v2021_v13 = vsel %vm771_vm0, %v2020_v43, 0.0 }
 0xe7d   : > { %2022 = vadd.xlane.f32.xlu1 %v2021_v13 }
 0xf0a   : > { %v2023_v49 = vpop.xlane.xlu1 %2022 }
 0xf0b   : > { %v2024_v50 = vmul.f32 0.03125, %v2023_v49 }
 0xf0d   : > { %v2025_v51 = vadd.f32 1e-05, %v2024_v50 }
 0xf0f   : > { %2868 = vrsqrt.f32 %v2025_v51 }
 0xf19   : > { %v2869_v52 = vpop.eup %2868 }
 0xf1a   : > { %v2027_v54 = vmul.f32 %v2869_v52, %v2019_v42 }
 0xf1c   : > { %v2035_v56 = vmul.f32 %v2476_v53, %v2027_v54 }
 0xf1e   : > { %v2043_v57 = vadd.f32 %v2477_v55, %v2035_v56 }
 0xf20   : > { %2671 = vmatmul.mubr.msk.f32.vlgmr.msra.gmra.mrb[14].mxu0 %vm771_vm0, %v2043_v57 }
 0xff3   : > { %v2124_v9 = vpop.f32.mrb[14].mxu0 }
 0xff4   : > { %v2125_v11 = vadd.f32 %v2478_v8, %v2124_v9  ;;  %v2672_v12 = vpop.f32.mrb[15].mxu0 }
 0xff6   : > { %v2129_v10 = vmul.f32 0.70710677, %v2125_v11  ;;  %v2128_v0 = vmul.f32 0.5, %v2125_v11 }
 0xff8   : > { %2870 = verf.f32 %v2129_v10 }
0x1002   : > { %v2871_v14 = vpop.eup %2870 }
0x1003   : > { %v2131_v15 = vadd.f32 1.0, %v2871_v14 }
0x1005   : > { %v2132_v16 = vmul.f32 %v2131_v15, %v2128_v0 }
0x1007   : > { %2690 = vmatmul.mubr.msk.f32.vlgmr.msra.gmra.mrb[14].mxu1 %vm2148_vm5, %v2132_v16 }
0x1008   : > { %2941 = shalt.err (!%p2938_p11)
}
0x1009   : > { %s2942_s23 = scalar_lea.hbm %s3542_s3, 256  ;;  %s2946_s2 = scalar_lea.hbm %s3655_s21, 512 }
0x100a   : > { %p2943_p13 = scmp.ne.s32.totalorder %s3542_s3, %s2942_s23  ;;  %p2947_p5 = scmp.lt.u32.totalorder %s3542_s3, %s3655_s21 }
0x100b   : > { %p2948_p9 = scmp.lt.u32.totalorder %s2946_s2, %s2942_s23  ;;  %p2950_p12 = scmp.lt.u32.totalorder %s2942_s23, %s3542_s3 }
0x100c   : > { %p2944_p0 = pnand %p2943_p13, %p3723_p1 }
0x100d   : > { %p2949_p10 = por %p2948_p9, %p2947_p5 }
0x100e   : > { %p2945_p6 = pneg %p2944_p0 }
0x100f   : > { %p2951_p2 = por %p2950_p12, %p2949_p10 }
0x1011   : > { %p2952_p3 = pnand %p2951_p2, %p2945_p6 }
0x1013   : > { %2955 = shalt.err (!%p2952_p3)
}
0x1014   : > { %s3044_s26 = smov 128   ;;  %s3724_s29 = scalar_lea.sflag [#allocation4], %s3345_s0 }
0x1015   : > { %2766 = dma.vmem_to_hbm [thread:$0]  (%p3723_p1), %s3544_s20, 256, %s3542_s3, %s3724_s29, %s3044_s26, %s3044_s26, %s3722_s7  }
0x1016   : > { %s3725_s8 = sshll.u32 %s3182_s4, 8  ;;  %s2266_s2 = sshll.u32 %s3454_s1, 4  ;;  %s3581_s2 = int_to_ptr.vmem [resolvable:$true] %s2266_s2 }
0x1017   : > { %s3578_s30 = scalar_lea.hbm %s3656_s22, %s3725_s8  ;;  %s2234_s9 = scalar_lea.sflag [#allocation9], %s3345_s0 }
0x1018   : > { %s2956_s10 = scalar_lea.vmem %s3581_s2, 256  ;;  %s3045_s11 = smov [#allocation8]  }
0x1019   : > { %p2957_p4 = scmp.ne.s32.totalorder %s3581_s2, %s2956_s10  ;;  %s2960_s20 = sshll.u32 %s3045_s11, 4  ;;  %s2961_s20 = int_to_ptr.vmem [resolvable:$false] %s2960_s20 }
0x101a   : > { %s2962_s4 = scalar_lea.vmem %s2961_s20, 512  ;;  %p2963_p11 = scmp.lt.s32.totalorder %s3581_s2, %s2961_s20 }
0x101b   : > { %p2958_p7 = pnand %p2957_p4, %p3723_p1  ;;  %p2964_p13 = scmp.lt.s32.totalorder %s2962_s4, %s2956_s10 }
0x101d   : > { %p2959_p8 = pneg %p2958_p7  ;;  %p2965_p0 = por %p2964_p13, %p2963_p11 }
0x101f   : > { %p2966_p6 = pnand %p2965_p0, %p2959_p8 }
0x1021   : > { %2969 = shalt.err (!%p2966_p6)
}
0x1022   : > { %s2970_s1 = scalar_lea.hbm %s3578_s30, 256  ;;  %s2974_s11 = scalar_lea.hbm %s3656_s22, 512 }
0x1023   : > { %p2971_p5 = scmp.ne.s32.totalorder %s3578_s30, %s2970_s1  ;;  %p2975_p12 = scmp.lt.u32.totalorder %s3578_s30, %s3656_s22 }
0x1024   : > { %p2976_p2 = scmp.lt.u32.totalorder %s2974_s11, %s2970_s1  ;;  %p2978_p4 = scmp.lt.u32.totalorder %s2970_s1, %s3578_s30 }
0x1025   : > { %p2972_p9 = pnand %p2971_p5, %p3723_p1 }
0x1026   : > { %p2977_p3 = por %p2976_p2, %p2975_p12 }
0x1027   : > { %p2973_p10 = pneg %p2972_p9 }
0x1028   : > { %p2979_p7 = por %p2978_p4, %p2977_p3 }
0x102a   : > { %p2980_p8 = pnand %p2979_p7, %p2973_p10 }
0x102c   : > { %2983 = shalt.err (!%p2980_p8)
}
0x102d   : > { %2767 = dma.vmem_to_hbm [thread:$0]  (%p3723_p1), %s3581_s2, 256, %s3578_s30, %s2234_s9, %s3044_s26, %s3044_s26, %s3722_s7   ;;  %v2480_v17 = vld [vmem:[#allocation5] ss:$0 sm:$0xff] }
0x102e   : > { %s3726_s10 = sshll.u32 %s3284_s5, 3  ;;  %s3727_s4 = sld [smem:[#allocation32_spill]] }
0x1034   : > { %s765_s1 = scalar_lea.vmem %s3727_s4, %s3726_s10 }
0x10da   : > { %v2218_v18 = vpop.f32.mrb[14].mxu1 }
0x10db   : > { %v2219_v19 = vadd.f32 %v2480_v17, %v2218_v18  ;;  %v2691_v20 = vpop.f32.mrb[15].mxu1 }
0x10dd   : > { %v2222_v21 = vadd.f32 %v2219_v19, %v3482_v38 }
0x10df   : > { %2223 = vst.msk [vmem:[%s765_s1] sm:$0xff] %vm771_vm0, %v2222_v21 }
0x10e0 PF: > { %s3728_s6 = sld [smem:[#allocation16_spill]]  ;;  %s3729_s0 = sld [smem:[#allocation14_spill]] }
0x10e1   : > { %s3730_s3 = sld [smem:[#allocation19_spill]] }
0x10e6   : > { %p2788_p11 = scmp.ge.s32.totalorder %s3728_s6, 2  ;;  %s2288_s29 = sand.u32 1, %s3729_s0  }
0x10e7   : > { %p3731_p1 = scmp.ne.s32.totalorder %s3730_s3, 0  ;;  %s2289_s7 = scalar_lea.sflag [#allocation4], %s2288_s29 }
0x10e9   : > { %p2778_p13 = pnand %p2788_p11, %p3731_p1 }
0x10eb   : > { %3009 = dma.done.wait (!%p2778_p13), %s2289_s7, 256  }
0x10ec   : > { %3011 = vsyncadd (!%p2778_p13), %s2289_s7, 4294967040  ;;  %s2298_s5 = scalar_lea.sflag [#allocation9], %s2288_s29 }
0x10ed   : > { %3013 = dma.done.wait (!%p2778_p13), %s2298_s5, 256  }
0x10ee   : > { %3015 = vsyncadd (!%p2778_p13), %s2298_s5, 4294967040  ;;  %s3732_s30 = sld [smem:[#allocation17_spill]]  ;;  %s3733_s26 = sld [smem:[#allocation15_spill]] }
0x10ef   : > { %s3734_s29 = sld [smem:[#allocation18_spill]]  ;;  %s3735_s3 = smov %s3022_s28 }
0x10f4   : > { %p38_p0 = scmp.ge.s32.totalorder %s3732_s30, 4   ;;  %s3736_s28 = smov %s3733_s26 }
0x10f6   :  { %40 = sbr.rel (!%p38_p0) target bundleno = 21 (0x15), region = 181 }
0x10fd   :  { %2303 = vsyncpa [#allocation3], 1 }
0x10fe   :  { %2305 = vsyncpa [#allocation3 + $0x1], 1 }
0x10ff   :  { %2306 = vsyncpa [#allocation6], 1 }
0x1100   :  { %2307 = vsyncpa [#allocation4], 1 }
0x1101   :  { %2309 = vsyncpa [#allocation4 + $0x1], 1 }
0x1102   :  { %2310 = vsyncpa [#allocation9], 1 }
0x1103   :  { %2312 = vsyncpa [#allocation9 + $0x1], 1 }

</bundles_post_ra>
